<compile_context>
chip_gen: v6e
topology: v6e:2x2x1
jax: 0.10.0
libtpu: 0.0.40
codegen_flags: <defaults>
</compile_context>

<pallas_src>
import functools
import math

import numpy as np
import jax
import jax.numpy as jnp
from jax.experimental import pallas as pl
from jax.experimental.pallas import tpu as pltpu

_NEG_INF = -1e30   # finite stand-in for -inf: identical softmax for any row
                   # with at least one kept key, and no NaN for all-masked rows


# ----------------------------- Pallas kernels -------------------------------

def _mha_ln_kernel(xq_ref, xkv_ref, bias_ref, wq_ref, bq_ref, wkv_ref, bkv_ref,
                   wo_ref, bo_ref, g_ref, beta_ref, o_ref, *,
                   num_heads, dq, dk, sqrt_dq, eps):
    """Fused MHA sublayer:  LN(x_q + Wo @ concat_h Attn_h(x_q, x_kv))."""
    xq = xq_ref[...]                       # (Sq, D)
    xkv = xkv_ref[...]                     # (Sk, D)
    bias = bias_ref[...]                   # (1 or Sq, Sk) additive mask

    q = jnp.dot(xq, wq_ref[...], preferred_element_type=jnp.float32) + bq_ref[...]
    kv = jnp.dot(xkv, wkv_ref[...], preferred_element_type=jnp.float32) + bkv_ref[...]
    k = kv[:, :num_heads * dk]
    v = kv[:, num_heads * dk:]
    wo = wo_ref[...]

    acc = None
    for h in range(num_heads):             # unrolled; all heads in one launch
        qh = q[:, h * dq:(h + 1) * dq]
        kh = k[:, h * dk:(h + 1) * dk]
        vh = v[:, h * dk:(h + 1) * dk]
        # reference scales by sqrt(q.size(-1)) == sqrt(dq)
        logits = jnp.dot(qh, kh.T, preferred_element_type=jnp.float32) / sqrt_dq
        logits = logits + bias             # additive mask (0 keep / -1e30 drop)
        logits = logits - jnp.max(logits, axis=-1, keepdims=True)
        p = jnp.exp(logits)
        attn = p / jnp.sum(p, axis=-1, keepdims=True)
        ctx = jnp.dot(attn, vh, preferred_element_type=jnp.float32)      # (Sq, dk)
        # concat(heads) @ Wo  ==  sum_h ctx_h @ Wo[h*dk:(h+1)*dk, :]
        part = jnp.dot(ctx, wo[h * dk:(h + 1) * dk, :],
                       preferred_element_type=jnp.float32)
        acc = part if acc is None else acc + part
    y = acc + bo_ref[...]

    s = xq + y                             # residual (dropout == identity)
    mu = jnp.mean(s, axis=-1, keepdims=True)
    var = jnp.mean((s - mu) ** 2, axis=-1, keepdims=True)   # biased, like torch
    o_ref[...] = (s - mu) / jnp.sqrt(var + eps) * g_ref[...] + beta_ref[...]


def _ffn_ln_kernel(x_ref, w1_ref, b1_ref, w2_ref, b2_ref, g_ref, beta_ref,
                   o_ref, *, eps):
    """Fused Linear -> ReLU -> Linear + residual + LayerNorm."""
    # TODO(synk): for large hidden dims on v7x (64 MiB VMEM), add a K-tiled grid
    # axis with an f32 accumulator instead of keeping full w1/w2 resident.
    x = x_ref[...]
    h = jnp.dot(x, w1_ref[...], preferred_element_type=jnp.float32) + b1_ref[...]
    h = jnp.maximum(h, 0.0)
    y = jnp.dot(h, w2_ref[...], preferred_element_type=jnp.float32) + b2_ref[...]
    s = x + y
    mu = jnp.mean(s, axis=-1, keepdims=True)
    var = jnp.mean((s - mu) ** 2, axis=-1, keepdims=True)
    o_ref[...] = (s - mu) / jnp.sqrt(var + eps) * g_ref[...] + beta_ref[...]


def _linear_kernel(x_ref, w_ref, b_ref, o_ref):
    o_ref[...] = (jnp.dot(x_ref[...], w_ref[...],
                          preferred_element_type=jnp.float32) + b_ref[...])


# --------------------------- Pallas call wrappers ----------------------------

def _row_tile(rows, cap=512):
    """Largest row tile (full rows, or a multiple-of-8 divisor up to `cap`)."""
    if rows <= cap:
        return rows
    for t in range(cap, 0, -8):
        if rows % t == 0:
            return t
    return rows


def mha_ln_op(x_q, x_kv, mask_bias, mp, ln_g, ln_b, num_heads, eps=1e-5):
    """Fused attention sublayer with exact PyTorch masked_fill broadcasting.

    x_q / x_kv: (Bb, S, D) or (Bm, Bb, S, D); mask_bias: (Bm, 1 or Sq, Sk).
    Output: (Bm, Bb, Sq, D).  Broadcasting is done via index_maps (no HBM dup).
    """
    d = x_q.shape[-1]
    sq = x_q.shape[-2]
    sk = x_kv.shape[-2]
    bm = mask_bias.shape[0]
    bb = x_q.shape[-3]
    sqm = mask_bias.shape[1]
    h_dq = mp['wq'].shape[1]
    h_dk = mp['wkv'].shape[1] // 2
    dq = h_dq // num_heads
    dk = h_dk // num_heads

    def act_spec(arr, s):
        if arr.ndim == 3:    # (Bb, s, d): broadcast over the mask batch axis
            return pl.BlockSpec((None, s, d), lambda mb, b: (b, 0, 0))
        return pl.BlockSpec((None, None, s, d), lambda mb, b: (mb, b, 0, 0))

    rep = lambda mb, b: (0, 0)   # weights/biases: same block every grid step

    kernel = functools.partial(_mha_ln_kernel, num_heads=num_heads, dq=dq,
                               dk=dk, sqrt_dq=math.sqrt(dq), eps=eps)
    return pl.pallas_call(
        kernel,
        out_shape=jax.ShapeDtypeStruct((bm, bb, sq, d), jnp.float32),
        grid=(bm, bb),
        in_specs=[act_spec(x_q, sq),
                  act_spec(x_kv, sk),
                  pl.BlockSpec((None, sqm, sk), lambda mb, b: (mb, 0, 0)),
                  pl.BlockSpec((d, h_dq), rep),
                  pl.BlockSpec((1, h_dq), rep),
                  pl.BlockSpec((d, 2 * h_dk), rep),
                  pl.BlockSpec((1, 2 * h_dk), rep),
                  pl.BlockSpec((h_dk, d), rep),
                  pl.BlockSpec((1, d), rep),
                  pl.BlockSpec((1, d), rep),
                  pl.BlockSpec((1, d), rep)],
        out_specs=pl.BlockSpec((None, None, sq, d), lambda mb, b: (mb, b, 0, 0)),
        compiler_params=pltpu.CompilerParams(
            dimension_semantics=("parallel", "parallel")),
    )(x_q, x_kv, mask_bias,
      mp['wq'], mp['bq'].reshape(1, h_dq),
      mp['wkv'], mp['bkv'].reshape(1, 2 * h_dk),
      mp['wo'], mp['bo'].reshape(1, d),
      ln_g.reshape(1, d), ln_b.reshape(1, d))


def ffn_ln_op(x, w1, b1, w2, b2, ln_g, ln_b, eps=1e-5):
    """LN(x + Linear(ReLU(Linear(x)))), one fused kernel."""
    shape = x.shape
    d = shape[-1]
    hid = w1.shape[1]
    rows = int(np.prod(shape[:-1]))
    x2 = x.reshape(rows, d)
    tr = _row_tile(rows)
    out = pl.pallas_call(
        functools.partial(_ffn_ln_kernel, eps=eps),
        out_shape=jax.ShapeDtypeStruct((rows, d), jnp.float32),
        grid=(rows // tr,),
        in_specs=[pl.BlockSpec((tr, d), lambda i: (i, 0)),
                  pl.BlockSpec((d, hid), lambda i: (0, 0)),
                  pl.BlockSpec((1, hid), lambda i: (0, 0)),
                  pl.BlockSpec((hid, d), lambda i: (0, 0)),
                  pl.BlockSpec((1, d), lambda i: (0, 0)),
                  pl.BlockSpec((1, d), lambda i: (0, 0)),
                  pl.BlockSpec((1, d), lambda i: (0, 0))],
        out_specs=pl.BlockSpec((tr, d), lambda i: (i, 0)),
        compiler_params=pltpu.CompilerParams(dimension_semantics=("parallel",)),
    )(x2, w1, b1.reshape(1, hid), w2, b2.reshape(1, d),
      ln_g.reshape(1, d), ln_b.reshape(1, d))
    return out.reshape(shape)


def linear_op(x, w, b):
    """x(..., din) @ w(din, dout) + b -> (..., dout)."""
    din, dout = w.shape
    lead = x.shape[:-1]
    rows = int(np.prod(lead)) if lead else 1
    x2 = x.reshape(rows, din)
    tr = _row_tile(rows)
    out = pl.pallas_call(
        _linear_kernel,
        out_shape=jax.ShapeDtypeStruct((rows, dout), jnp.float32),
        grid=(rows // tr,),
        in_specs=[pl.BlockSpec((tr, din), lambda i: (i, 0)),
                  pl.BlockSpec((din, dout), lambda i: (0, 0)),
                  pl.BlockSpec((1, dout), lambda i: (0, 0))],
        out_specs=pl.BlockSpec((tr, dout), lambda i: (i, 0)),
        compiler_params=pltpu.CompilerParams(dimension_semantics=("parallel",)),
    )(x2, w, b.reshape(1, dout))
    return out.reshape(lead + (dout,))


# ------------------------------ model pieces ---------------------------------

def position_encoding(seq_len, d_model):
    pos = np.arange(seq_len)[:, np.newaxis]
    i = np.arange(d_model)[np.newaxis, :]
    angle_rates = 1 / np.power(10000, 2 * (i // 2) / np.float32(d_model))
    angle_rads = pos * angle_rates
    angle_rads[:, 0::2] = np.sin(angle_rads[:, 0::2])
    angle_rads[:, 1::2] = np.cos(angle_rads[:, 1::2])
    return jnp.asarray(angle_rads[np.newaxis, ...], dtype=jnp.float32)


def create_mask_biases(src, tgt):
    """Additive masks: 0 where kept, -1e30 where masked (PyTorch mask==0)."""
    src_keep = (src != 0)[:, None, :]                       # (B, 1, Ss)
    src_bias = jnp.where(src_keep, 0.0, _NEG_INF).astype(jnp.float32)
    st = tgt.shape[1]
    future = jnp.tril(jnp.ones((st, st), dtype=bool))       # (St, St)
    tgt_keep = (tgt != 0)[:, :, None] & future[None]        # (B, St, St)
    tgt_bias = jnp.where(tgt_keep, 0.0, _NEG_INF).astype(jnp.float32)
    return src_bias, tgt_bias


def transformer_forward(params, src, tgt, *, num_heads):
    src_bias, tgt_bias = create_mask_biases(src, tgt)
    d_model = params['enc_emb'].shape[1]

    # encode (embedding gather + pos encoding are plain-JAX glue; dropout = id)
    enc = params['enc_emb'][src] + position_encoding(src.shape[1], d_model)
    for lp in params['enc_layers']:
        enc = mha_ln_op(enc, enc, src_bias, lp['mha'],
                        lp['ln1_g'], lp['ln1_b'], num_heads)
        enc = ffn_ln_op(enc, lp['w1'], lp['b1'], lp['w2'], lp['b2'],
                        lp['ln2_g'], lp['ln2_b'])

    # decode
    dec = params['dec_emb'][tgt] + position_encoding(tgt.shape[1], d_model)
    for lp in params['dec_layers']:
        dec = mha_ln_op(dec, dec, tgt_bias, lp['self_mha'],
                        lp['ln1_g'], lp['ln1_b'], num_heads)
        dec = mha_ln_op(dec, enc, src_bias, lp['cross_mha'],
                        lp['ln2_g'], lp['ln2_b'], num_heads)
        dec = ffn_ln_op(dec, lp['w1'], lp['b1'], lp['w2'], lp['b2'],
                        lp['ln3_g'], lp['ln3_b'])

    return linear_op(dec, params['w_fc'], params['b_fc'])


# ------------------------------ parameter init --------------------------------

def _init_linear(key, din, dout):
    k1, k2 = jax.random.split(key)
    s = 1.0 / math.sqrt(din)
    w = jax.random.uniform(k1, (din, dout), jnp.float32, -s, s)
    b = jax.random.uniform(k2, (dout,), jnp.float32, -s, s)
    return w, b


def _init_mha(key, num_heads, d_model, dq, dk):
    ks = jax.random.split(key, 4)
    wq, bq = _init_linear(ks[0], d_model, num_heads * dq)
    wk, bk = _init_linear(ks[1], d_model, num_heads * dk)
    wv, bv = _init_linear(ks[2], d_model, num_heads * dk)
    wo, bo = _init_linear(ks[3], num_heads * dk, d_model)
    return dict(wq=wq, bq=bq,
                wkv=jnp.concatenate([wk, wv], axis=1),   # folded K|V weights
                bkv=jnp.concatenate([bk, bv], axis=0),
                wo=wo, bo=bo)


def _init_encoder_layer(key, d_model, num_heads, hidden):
    qd = d_model // num_heads if d_model % num_heads == 0 else d_model // num_heads + 1
    ks = jax.random.split(key, 3)
    w1, b1 = _init_linear(ks[1], d_model, hidden)
    w2, b2 = _init_linear(ks[2], hidden, d_model)
    return dict(mha=_init_mha(ks[0], num_heads, d_model, qd, qd),
                ln1_g=jnp.ones(d_model), ln1_b=jnp.zeros(d_model),
                w1=w1, b1=b1, w2=w2, b2=b2,
                ln2_g=jnp.ones(d_model), ln2_b=jnp.zeros(d_model))


def _init_decoder_layer(key, d_model, num_heads, hidden):
    hd = max(d_model // num_heads, 1)
    ks = jax.random.split(key, 4)
    w1, b1 = _init_linear(ks[2], d_model, hidden)
    w2, b2 = _init_linear(ks[3], hidden, d_model)
    return dict(self_mha=_init_mha(ks[0], num_heads, d_model, hd, hd),
                cross_mha=_init_mha(ks[1], num_heads, d_model, hd, hd),
                ln1_g=jnp.ones(d_model), ln1_b=jnp.zeros(d_model),
                ln2_g=jnp.ones(d_model), ln2_b=jnp.zeros(d_model),
                w1=w1, b1=b1, w2=w2, b2=b2,
                ln3_g=jnp.ones(d_model), ln3_b=jnp.zeros(d_model))


def init_params(key, src_vocab, tgt_vocab, d_model, num_heads, num_layers, hidden):
    keys = jax.random.split(key, 2 * num_layers + 3)
    enc_emb = jax.random.normal(keys[0], (src_vocab, d_model), jnp.float32)
    dec_emb = jax.random.normal(keys[1], (tgt_vocab, d_model), jnp.float32)
    enc_layers = [_init_encoder_layer(keys[2 + i], d_model, num_heads, hidden)
                  for i in range(num_layers)]
    dec_layers = [_init_decoder_layer(keys[2 + num_layers + i], d_model, num_heads, hidden)
                  for i in range(num_layers)]
    w_fc, b_fc = _init_linear(keys[2 + 2 * num_layers], d_model, tgt_vocab)
    return dict(enc_emb=enc_emb, dec_emb=dec_emb,
                enc_layers=enc_layers, dec_layers=dec_layers,
                w_fc=w_fc, b_fc=b_fc)


# ----------------------------------- main -------------------------------------

if __name__ == "__main__":
    SRC_VOCAB = TGT_VOCAB = 32
    D_MODEL = 32
    NUM_HEADS = 4
    NUM_LAYERS = 2
    HIDDEN = 64
    SEQ = 8
    BATCH = 2

    root = jax.random.PRNGKey(0)
    kp, ks, kt = jax.random.split(root, 3)
    params = init_params(kp, SRC_VOCAB, TGT_VOCAB, D_MODEL, NUM_HEADS,
                         NUM_LAYERS, HIDDEN)
    # tokens in [1, vocab) so no fully-masked softmax rows, like any sane usage
    src = jax.random.randint(ks, (BATCH, SEQ), 1, SRC_VOCAB, dtype=jnp.int32)
    tgt = jax.random.randint(kt, (BATCH, SEQ), 1, TGT_VOCAB, dtype=jnp.int32)

    fwd = jax.jit(functools.partial(transformer_forward, num_heads=NUM_HEADS))
    out = fwd(params, src, tgt)
    jax.block_until_ready(out)

    # PyTorch masked_fill broadcasting makes the output (B, B, S_tgt, tgt_vocab)
    assert out.shape == (BATCH, BATCH, SEQ, TGT_VOCAB), out.shape
    assert out.dtype == jnp.float32
    assert bool(jnp.all(jnp.isfinite(out)))
    print("KERNEL_OK")
</pallas_src>

<mosaic_0001>
module attributes {stable_mosaic.version = 11 : i64} {
  func.func @_ffn_ln_kernel(%arg0: i32, %arg1: memref<32x32xf32, #tpu.memory_space<vmem>>, %arg2: memref<32x64xf32, #tpu.memory_space<vmem>>, %arg3: memref<1x64xf32, #tpu.memory_space<vmem>>, %arg4: memref<64x32xf32, #tpu.memory_space<vmem>>, %arg5: memref<1x32xf32, #tpu.memory_space<vmem>>, %arg6: memref<1x32xf32, #tpu.memory_space<vmem>>, %arg7: memref<1x32xf32, #tpu.memory_space<vmem>>, %arg8: memref<32x32xf32, #tpu.memory_space<vmem>>) attributes {dimension_semantics = [#tpu.dimension_semantics<parallel>], iteration_bounds = array<i64: 1>, scalar_prefetch = 0 : i64, scratch_operands = 0 : i64, tpu.core_type = #tpu.core_type<tc>, window_params = [{transform_indices = @transform_0, window_bounds = array<i64: 32, 32>}, {pipeline_mode = #tpu.pipeline_mode<synchronous>, transform_indices = @transform_1, window_bounds = array<i64: 32, 64>}, {pipeline_mode = #tpu.pipeline_mode<synchronous>, transform_indices = @transform_2, window_bounds = array<i64: 1, 64>}, {pipeline_mode = #tpu.pipeline_mode<synchronous>, transform_indices = @transform_3, window_bounds = array<i64: 64, 32>}, {pipeline_mode = #tpu.pipeline_mode<synchronous>, transform_indices = @transform_4, window_bounds = array<i64: 1, 32>}, {pipeline_mode = #tpu.pipeline_mode<synchronous>, transform_indices = @transform_5, window_bounds = array<i64: 1, 32>}, {pipeline_mode = #tpu.pipeline_mode<synchronous>, transform_indices = @transform_6, window_bounds = array<i64: 1, 32>}, {transform_indices = @transform_7, window_bounds = array<i64: 32, 32>}]} {
    %c0 = arith.constant 0 : index
    %c0_0 = arith.constant 0 : index
    %0 = vector.load %arg1[%c0, %c0_0] : memref<32x32xf32, #tpu.memory_space<vmem>>, vector<32x32xf32>
    %c0_1 = arith.constant 0 : index
    %c0_2 = arith.constant 0 : index
    %1 = vector.load %arg2[%c0_1, %c0_2] : memref<32x64xf32, #tpu.memory_space<vmem>>, vector<32x64xf32>
    %cst = arith.constant dense<0.000000e+00> : vector<32x64xf32>
    %2 = tpu.matmul %0, %1, %cst {dimension_numbers = #tpu.dot_dimension_numbers<[1], [0], [0], [1], [0, 0, 1, 1], [], []>} : vector<32x32xf32>, vector<32x64xf32>, vector<32x64xf32> -> vector<32x64xf32>
    %c0_3 = arith.constant 0 : index
    %c0_4 = arith.constant 0 : index
    %3 = vector.load %arg3[%c0_3, %c0_4] : memref<1x64xf32, #tpu.memory_space<vmem>>, vector<1x64xf32>
    %4 = vector.broadcast %3 : vector<1x64xf32> to vector<32x64xf32>
    %5 = arith.addf %2, %4 : vector<32x64xf32>
    %cst_5 = arith.constant 0.000000e+00 : f32
    %6 = vector.broadcast %cst_5 : f32 to vector<32x64xf32>
    %7 = arith.maximumf %5, %6 : vector<32x64xf32>
    %c0_6 = arith.constant 0 : index
    %c0_7 = arith.constant 0 : index
    %8 = vector.load %arg4[%c0_6, %c0_7] : memref<64x32xf32, #tpu.memory_space<vmem>>, vector<64x32xf32>
    %cst_8 = arith.constant dense<0.000000e+00> : vector<32x32xf32>
    %9 = tpu.matmul %7, %8, %cst_8 {dimension_numbers = #tpu.dot_dimension_numbers<[1], [0], [0], [1], [0, 0, 1, 1], [], []>} : vector<32x64xf32>, vector<64x32xf32>, vector<32x32xf32> -> vector<32x32xf32>
    %c0_9 = arith.constant 0 : index
    %c0_10 = arith.constant 0 : index
    %10 = vector.load %arg5[%c0_9, %c0_10] : memref<1x32xf32, #tpu.memory_space<vmem>>, vector<1x32xf32>
    %11 = vector.broadcast %10 : vector<1x32xf32> to vector<32x32xf32>
    %12 = arith.addf %9, %11 : vector<32x32xf32>
    %13 = arith.addf %0, %12 : vector<32x32xf32>
    %cst_11 = arith.constant dense<0.000000e+00> : vector<32xf32>
    %14 = vector.multi_reduction <add>, %13, %cst_11 [1] : vector<32x32xf32> to vector<32xf32>
    %15 = vector.shape_cast %14 : vector<32xf32> to vector<32x1xf32>
    %cst_12 = arith.constant 3.200000e+01 : f32
    %16 = vector.broadcast %cst_12 : f32 to vector<32x1xf32>
    %17 = arith.divf %15, %16 : vector<32x1xf32>
    %18 = vector.broadcast %17 : vector<32x1xf32> to vector<32x32xf32>
    %19 = arith.subf %13, %18 : vector<32x32xf32>
    %20 = arith.mulf %19, %19 : vector<32x32xf32>
    %cst_13 = arith.constant dense<0.000000e+00> : vector<32xf32>
    %21 = vector.multi_reduction <add>, %20, %cst_13 [1] : vector<32x32xf32> to vector<32xf32>
    %22 = vector.shape_cast %21 : vector<32xf32> to vector<32x1xf32>
    %cst_14 = arith.constant 3.200000e+01 : f32
    %23 = vector.broadcast %cst_14 : f32 to vector<32x1xf32>
    %24 = arith.divf %22, %23 : vector<32x1xf32>
    %25 = vector.broadcast %17 : vector<32x1xf32> to vector<32x32xf32>
    %26 = arith.subf %13, %25 : vector<32x32xf32>
    %cst_15 = arith.constant 9.99999974E-6 : f32
    %27 = vector.broadcast %cst_15 : f32 to vector<32x1xf32>
    %28 = arith.addf %24, %27 : vector<32x1xf32>
    %29 = math.sqrt %28 : vector<32x1xf32>
    %30 = vector.broadcast %29 : vector<32x1xf32> to vector<32x32xf32>
    %31 = arith.divf %26, %30 : vector<32x32xf32>
    %c0_16 = arith.constant 0 : index
    %c0_17 = arith.constant 0 : index
    %32 = vector.load %arg6[%c0_16, %c0_17] : memref<1x32xf32, #tpu.memory_space<vmem>>, vector<1x32xf32>
    %33 = vector.broadcast %32 : vector<1x32xf32> to vector<32x32xf32>
    %34 = arith.mulf %31, %33 : vector<32x32xf32>
    %c0_18 = arith.constant 0 : index
    %c0_19 = arith.constant 0 : index
    %35 = vector.load %arg7[%c0_18, %c0_19] : memref<1x32xf32, #tpu.memory_space<vmem>>, vector<1x32xf32>
    %36 = vector.broadcast %35 : vector<1x32xf32> to vector<32x32xf32>
    %37 = arith.addf %34, %36 : vector<32x32xf32>
    %c0_20 = arith.constant 0 : index
    %c0_21 = arith.constant 0 : index
    %38 = vector.load %arg8[%c0_20, %c0_21] : memref<32x32xf32, #tpu.memory_space<vmem>>, vector<32x32xf32>
    tpu.vector_store %arg8[%c0_20, %c0_21], %37 {strides = array<i32>} : memref<32x32xf32, #tpu.memory_space<vmem>>, vector<32x32xf32>,
    return
  }
  func.func @transform_0(%arg0: i32) -> (i32, i32) {
    %c0_i32 = arith.constant 0 : i32
    %c0_i32_0 = arith.constant 0 : i32
    return %arg0, %c0_i32 : i32, i32
  }
  func.func @transform_1(%arg0: i32) -> (i32, i32) {
    %c0_i32 = arith.constant 0 : i32
    %c0_i32_0 = arith.constant 0 : i32
    %c0_i32_1 = arith.constant 0 : i32
    return %c0_i32, %c0_i32_0 : i32, i32
  }
  func.func @transform_2(%arg0: i32) -> (i32, i32) {
    %c0_i32 = arith.constant 0 : i32
    %c0_i32_0 = arith.constant 0 : i32
    %c0_i32_1 = arith.constant 0 : i32
    return %c0_i32, %c0_i32_0 : i32, i32
  }
  func.func @transform_3(%arg0: i32) -> (i32, i32) {
    %c0_i32 = arith.constant 0 : i32
    %c0_i32_0 = arith.constant 0 : i32
    %c0_i32_1 = arith.constant 0 : i32
    return %c0_i32, %c0_i32_0 : i32, i32
  }
  func.func @transform_4(%arg0: i32) -> (i32, i32) {
    %c0_i32 = arith.constant 0 : i32
    %c0_i32_0 = arith.constant 0 : i32
    %c0_i32_1 = arith.constant 0 : i32
    return %c0_i32, %c0_i32_0 : i32, i32
  }
  func.func @transform_5(%arg0: i32) -> (i32, i32) {
    %c0_i32 = arith.constant 0 : i32
    %c0_i32_0 = arith.constant 0 : i32
    %c0_i32_1 = arith.constant 0 : i32
    return %c0_i32, %c0_i32_0 : i32, i32
  }
  func.func @transform_6(%arg0: i32) -> (i32, i32) {
    %c0_i32 = arith.constant 0 : i32
    %c0_i32_0 = arith.constant 0 : i32
    %c0_i32_1 = arith.constant 0 : i32
    return %c0_i32, %c0_i32_0 : i32, i32
  }
  func.func @transform_7(%arg0: i32) -> (i32, i32) {
    %c0_i32 = arith.constant 0 : i32
    %c0_i32_0 = arith.constant 0 : i32
    return %arg0, %c0_i32 : i32, i32
  }
}

module attributes {stable_mosaic.version = 11 : i64} {
  func.func @_mha_ln_kernel(%arg0: i32, %arg1: i32, %arg2: memref<1x8x32xf32, #tpu.memory_space<vmem>>, %arg3: memref<1x8x32xf32, #tpu.memory_space<vmem>>, %arg4: memref<1x8x8xf32, #tpu.memory_space<vmem>>, %arg5: memref<32x32xf32, #tpu.memory_space<vmem>>, %arg6: memref<1x32xf32, #tpu.memory_space<vmem>>, %arg7: memref<32x64xf32, #tpu.memory_space<vmem>>, %arg8: memref<1x64xf32, #tpu.memory_space<vmem>>, %arg9: memref<32x32xf32, #tpu.memory_space<vmem>>, %arg10: memref<1x32xf32, #tpu.memory_space<vmem>>, %arg11: memref<1x32xf32, #tpu.memory_space<vmem>>, %arg12: memref<1x32xf32, #tpu.memory_space<vmem>>, %arg13: memref<1x1x8x32xf32, #tpu.memory_space<vmem>>) attributes {dimension_semantics = [#tpu.dimension_semantics<parallel>, #tpu.dimension_semantics<parallel>], iteration_bounds = array<i64: 2, 2>, scalar_prefetch = 0 : i64, scratch_operands = 0 : i64, tpu.core_type = #tpu.core_type<tc>, window_params = [{transform_indices = @transform_0, window_bounds = array<i64: 1, 8, 32>}, {transform_indices = @transform_1, window_bounds = array<i64: 1, 8, 32>}, {transform_indices = @transform_2, window_bounds = array<i64: 1, 8, 8>}, {pipeline_mode = #tpu.pipeline_mode<synchronous>, transform_indices = @transform_3, window_bounds = array<i64: 32, 32>}, {pipeline_mode = #tpu.pipeline_mode<synchronous>, transform_indices = @transform_4, window_bounds = array<i64: 1, 32>}, {pipeline_mode = #tpu.pipeline_mode<synchronous>, transform_indices = @transform_5, window_bounds = array<i64: 32, 64>}, {pipeline_mode = #tpu.pipeline_mode<synchronous>, transform_indices = @transform_6, window_bounds = array<i64: 1, 64>}, {pipeline_mode = #tpu.pipeline_mode<synchronous>, transform_indices = @transform_7, window_bounds = array<i64: 32, 32>}, {pipeline_mode = #tpu.pipeline_mode<synchronous>, transform_indices = @transform_8, window_bounds = array<i64: 1, 32>}, {pipeline_mode = #tpu.pipeline_mode<synchronous>, transform_indices = @transform_9, window_bounds = array<i64: 1, 32>}, {pipeline_mode = #tpu.pipeline_mode<synchronous>, transform_indices = @transform_10, window_bounds = array<i64: 1, 32>}, {transform_indices = @transform_11, window_bounds = array<i64: 1, 1, 8, 32>}]} {
    %c0 = arith.constant 0 : index
    %c0_0 = arith.constant 0 : index
    %c0_1 = arith.constant 0 : index
    %0 = vector.load %arg2[%c0, %c0_0, %c0_1] : memref<1x8x32xf32, #tpu.memory_space<vmem>>, vector<1x8x32xf32>
    %1 = vector.shape_cast %0 : vector<1x8x32xf32> to vector<8x32xf32>
    %c0_2 = arith.constant 0 : index
    %c0_3 = arith.constant 0 : index
    %c0_4 = arith.constant 0 : index
    %2 = vector.load %arg3[%c0_2, %c0_3, %c0_4] : memref<1x8x32xf32, #tpu.memory_space<vmem>>, vector<1x8x32xf32>
    %3 = vector.shape_cast %2 : vector<1x8x32xf32> to vector<8x32xf32>
    %c0_5 = arith.constant 0 : index
    %c0_6 = arith.constant 0 : index
    %c0_7 = arith.constant 0 : index
    %4 = vector.load %arg4[%c0_5, %c0_6, %c0_7] : memref<1x8x8xf32, #tpu.memory_space<vmem>>, vector<1x8x8xf32>
    %5 = vector.shape_cast %4 : vector<1x8x8xf32> to vector<8x8xf32>
    %c0_8 = arith.constant 0 : index
    %c0_9 = arith.constant 0 : index
    %6 = vector.load %arg5[%c0_8, %c0_9] : memref<32x32xf32, #tpu.memory_space<vmem>>, vector<32x32xf32>
    %cst = arith.constant dense<0.000000e+00> : vector<8x32xf32>
    %7 = tpu.matmul %1, %6, %cst {dimension_numbers = #tpu.dot_dimension_numbers<[1], [0], [0], [1], [0, 0, 1, 1], [], []>} : vector<8x32xf32>, vector<32x32xf32>, vector<8x32xf32> -> vector<8x32xf32>
    %c0_10 = arith.constant 0 : index
    %c0_11 = arith.constant 0 : index
    %8 = vector.load %arg6[%c0_10, %c0_11] : memref<1x32xf32, #tpu.memory_space<vmem>>, vector<1x32xf32>
    %9 = vector.broadcast %8 : vector<1x32xf32> to vector<8x32xf32>
    %10 = arith.addf %7, %9 : vector<8x32xf32>
    %c0_12 = arith.constant 0 : index
    %c0_13 = arith.constant 0 : index
    %11 = vector.load %arg7[%c0_12, %c0_13] : memref<32x64xf32, #tpu.memory_space<vmem>>, vector<32x64xf32>
    %cst_14 = arith.constant dense<0.000000e+00> : vector<8x64xf32>
    %12 = tpu.matmul %3, %11, %cst_14 {dimension_numbers = #tpu.dot_dimension_numbers<[1], [0], [0], [1], [0, 0, 1, 1], [], []>} : vector<8x32xf32>, vector<32x64xf32>, vector<8x64xf32> -> vector<8x64xf32>
    %c0_15 = arith.constant 0 : index
    %c0_16 = arith.constant 0 : index
    %13 = vector.load %arg8[%c0_15, %c0_16] : memref<1x64xf32, #tpu.memory_space<vmem>>, vector<1x64xf32>
    %14 = vector.broadcast %13 : vector<1x64xf32> to vector<8x64xf32>
    %15 = arith.addf %12, %14 : vector<8x64xf32>
    %16 = vector.extract_strided_slice %15 {offsets = [0, 0], sizes = [8, 32], strides = [1, 1]} : vector<8x64xf32> to vector<8x32xf32>
    %17 = vector.extract_strided_slice %15 {offsets = [0, 32], sizes = [8, 32], strides = [1, 1]} : vector<8x64xf32> to vector<8x32xf32>
    %c0_17 = arith.constant 0 : index
    %c0_18 = arith.constant 0 : index
    %18 = vector.load %arg9[%c0_17, %c0_18] : memref<32x32xf32, #tpu.memory_space<vmem>>, vector<32x32xf32>
    %19 = vector.extract_strided_slice %10 {offsets = [0, 0], sizes = [8, 8], strides = [1, 1]} : vector<8x32xf32> to vector<8x8xf32>
    %20 = vector.extract_strided_slice %16 {offsets = [0, 0], sizes = [8, 8], strides = [1, 1]} : vector<8x32xf32> to vector<8x8xf32>
    %21 = vector.extract_strided_slice %17 {offsets = [0, 0], sizes = [8, 8], strides = [1, 1]} : vector<8x32xf32> to vector<8x8xf32>
    %22 = tpu.transpose %20, [1, 0] : vector<8x8xf32> -> vector<8x8xf32>
    %cst_19 = arith.constant dense<0.000000e+00> : vector<8x8xf32>
    %23 = tpu.matmul %19, %22, %cst_19 {dimension_numbers = #tpu.dot_dimension_numbers<[1], [0], [0], [1], [0, 0, 1, 1], [], []>} : vector<8x8xf32>, vector<8x8xf32>, vector<8x8xf32> -> vector<8x8xf32>
    %cst_20 = arith.constant 2.82842708 : f32
    %24 = vector.broadcast %cst_20 : f32 to vector<8x8xf32>
    %25 = arith.divf %23, %24 : vector<8x8xf32>
    %26 = arith.addf %25, %5 : vector<8x8xf32>
    %cst_21 = arith.constant dense<0xFF800000> : vector<8xf32>
    %27 = vector.multi_reduction <maximumf>, %26, %cst_21 [1] : vector<8x8xf32> to vector<8xf32>
    %28 = vector.shape_cast %27 : vector<8xf32> to vector<8x1xf32>
    %29 = vector.broadcast %28 : vector<8x1xf32> to vector<8x8xf32>
    %30 = arith.subf %26, %29 : vector<8x8xf32>
    %31 = math.exp %30 : vector<8x8xf32>
    %cst_22 = arith.constant dense<0.000000e+00> : vector<8xf32>
    %32 = vector.multi_reduction <add>, %31, %cst_22 [1] : vector<8x8xf32> to vector<8xf32>
    %33 = vector.shape_cast %32 : vector<8xf32> to vector<8x1xf32>
    %34 = vector.broadcast %33 : vector<8x1xf32> to vector<8x8xf32>
    %35 = arith.divf %31, %34 : vector<8x8xf32>
    %cst_23 = arith.constant dense<0.000000e+00> : vector<8x8xf32>
    %36 = tpu.matmul %35, %21, %cst_23 {dimension_numbers = #tpu.dot_dimension_numbers<[1], [0], [0], [1], [0, 0, 1, 1], [], []>} : vector<8x8xf32>, vector<8x8xf32>, vector<8x8xf32> -> vector<8x8xf32>
    %37 = vector.extract_strided_slice %18 {offsets = [0, 0], sizes = [8, 32], strides = [1, 1]} : vector<32x32xf32> to vector<8x32xf32>
    %cst_24 = arith.constant dense<0.000000e+00> : vector<8x32xf32>
    %38 = tpu.matmul %36, %37, %cst_24 {dimension_numbers = #tpu.dot_dimension_numbers<[1], [0], [0], [1], [0, 0, 1, 1], [], []>} : vector<8x8xf32>, vector<8x32xf32>, vector<8x32xf32> -> vector<8x32xf32>
    %39 = vector.extract_strided_slice %10 {offsets = [0, 8], sizes = [8, 8], strides = [1, 1]} : vector<8x32xf32> to vector<8x8xf32>
    %40 = vector.extract_strided_slice %16 {offsets = [0, 8], sizes = [8, 8], strides = [1, 1]} : vector<8x32xf32> to vector<8x8xf32>
    %41 = vector.extract_strided_slice %17 {offsets = [0, 8], sizes = [8, 8], strides = [1, 1]} : vector<8x32xf32> to vector<8x8xf32>
    %42 = tpu.transpose %40, [1, 0] : vector<8x8xf32> -> vector<8x8xf32>
    %cst_25 = arith.constant dense<0.000000e+00> : vector<8x8xf32>
    %43 = tpu.matmul %39, %42, %cst_25 {dimension_numbers = #tpu.dot_dimension_numbers<[1], [0], [0], [1], [0, 0, 1, 1], [], []>} : vector<8x8xf32>, vector<8x8xf32>, vector<8x8xf32> -> vector<8x8xf32>
    %cst_26 = arith.constant 2.82842708 : f32
    %44 = vector.broadcast %cst_26 : f32 to vector<8x8xf32>
    %45 = arith.divf %43, %44 : vector<8x8xf32>
    %46 = arith.addf %45, %5 : vector<8x8xf32>
    %cst_27 = arith.constant dense<0xFF800000> : vector<8xf32>
    %47 = vector.multi_reduction <maximumf>, %46, %cst_27 [1] : vector<8x8xf32> to vector<8xf32>
    %48 = vector.shape_cast %47 : vector<8xf32> to vector<8x1xf32>
    %49 = vector.broadcast %48 : vector<8x1xf32> to vector<8x8xf32>
    %50 = arith.subf %46, %49 : vector<8x8xf32>
    %51 = math.exp %50 : vector<8x8xf32>
    %cst_28 = arith.constant dense<0.000000e+00> : vector<8xf32>
    %52 = vector.multi_reduction <add>, %51, %cst_28 [1] : vector<8x8xf32> to vector<8xf32>
    %53 = vector.shape_cast %52 : vector<8xf32> to vector<8x1xf32>
    %54 = vector.broadcast %53 : vector<8x1xf32> to vector<8x8xf32>
    %55 = arith.divf %51, %54 : vector<8x8xf32>
    %cst_29 = arith.constant dense<0.000000e+00> : vector<8x8xf32>
    %56 = tpu.matmul %55, %41, %cst_29 {dimension_numbers = #tpu.dot_dimension_numbers<[1], [0], [0], [1], [0, 0, 1, 1], [], []>} : vector<8x8xf32>, vector<8x8xf32>, vector<8x8xf32> -> vector<8x8xf32>
    %57 = vector.extract_strided_slice %18 {offsets = [8, 0], sizes = [8, 32], strides = [1, 1]} : vector<32x32xf32> to vector<8x32xf32>
    %cst_30 = arith.constant dense<0.000000e+00> : vector<8x32xf32>
    %58 = tpu.matmul %56, %57, %cst_30 {dimension_numbers = #tpu.dot_dimension_numbers<[1], [0], [0], [1], [0, 0, 1, 1], [], []>} : vector<8x8xf32>, vector<8x32xf32>, vector<8x32xf32> -> vector<8x32xf32>
    %59 = arith.addf %38, %58 : vector<8x32xf32>
    %60 = vector.extract_strided_slice %10 {offsets = [0, 16], sizes = [8, 8], strides = [1, 1]} : vector<8x32xf32> to vector<8x8xf32>
    %61 = vector.extract_strided_slice %16 {offsets = [0, 16], sizes = [8, 8], strides = [1, 1]} : vector<8x32xf32> to vector<8x8xf32>
    %62 = vector.extract_strided_slice %17 {offsets = [0, 16], sizes = [8, 8], strides = [1, 1]} : vector<8x32xf32> to vector<8x8xf32>
    %63 = tpu.transpose %61, [1, 0] : vector<8x8xf32> -> vector<8x8xf32>
    %cst_31 = arith.constant dense<0.000000e+00> : vector<8x8xf32>
    %64 = tpu.matmul %60, %63, %cst_31 {dimension_numbers = #tpu.dot_dimension_numbers<[1], [0], [0], [1], [0, 0, 1, 1], [], []>} : vector<8x8xf32>, vector<8x8xf32>, vector<8x8xf32> -> vector<8x8xf32>
    %cst_32 = arith.constant 2.82842708 : f32
    %65 = vector.broadcast %cst_32 : f32 to vector<8x8xf32>
    %66 = arith.divf %64, %65 : vector<8x8xf32>
    %67 = arith.addf %66, %5 : vector<8x8xf32>
    %cst_33 = arith.constant dense<0xFF800000> : vector<8xf32>
    %68 = vector.multi_reduction <maximumf>, %67, %cst_33 [1] : vector<8x8xf32> to vector<8xf32>
    %69 = vector.shape_cast %68 : vector<8xf32> to vector<8x1xf32>
    %70 = vector.broadcast %69 : vector<8x1xf32> to vector<8x8xf32>
    %71 = arith.subf %67, %70 : vector<8x8xf32>
    %72 = math.exp %71 : vector<8x8xf32>
    %cst_34 = arith.constant dense<0.000000e+00> : vector<8xf32>
    %73 = vector.multi_reduction <add>, %72, %cst_34 [1] : vector<8x8xf32> to vector<8xf32>
    %74 = vector.shape_cast %73 : vector<8xf32> to vector<8x1xf32>
    %75 = vector.broadcast %74 : vector<8x1xf32> to vector<8x8xf32>
    %76 = arith.divf %72, %75 : vector<8x8xf32>
    %cst_35 = arith.constant dense<0.000000e+00> : vector<8x8xf32>
    %77 = tpu.matmul %76, %62, %cst_35 {dimension_numbers = #tpu.dot_dimension_numbers<[1], [0], [0], [1], [0, 0, 1, 1], [], []>} : vector<8x8xf32>, vector<8x8xf32>, vector<8x8xf32> -> vector<8x8xf32>
    %78 = vector.extract_strided_slice %18 {offsets = [16, 0], sizes = [8, 32], strides = [1, 1]} : vector<32x32xf32> to vector<8x32xf32>
    %cst_36 = arith.constant dense<0.000000e+00> : vector<8x32xf32>
    %79 = tpu.matmul %77, %78, %cst_36 {dimension_numbers = #tpu.dot_dimension_numbers<[1], [0], [0], [1], [0, 0, 1, 1], [], []>} : vector<8x8xf32>, vector<8x32xf32>, vector<8x32xf32> -> vector<8x32xf32>
    %80 = arith.addf %59, %79 : vector<8x32xf32>
    %81 = vector.extract_strided_slice %10 {offsets = [0, 24], sizes = [8, 8], strides = [1, 1]} : vector<8x32xf32> to vector<8x8xf32>
    %82 = vector.extract_strided_slice %16 {offsets = [0, 24], sizes = [8, 8], strides = [1, 1]} : vector<8x32xf32> to vector<8x8xf32>
    %83 = vector.extract_strided_slice %17 {offsets = [0, 24], sizes = [8, 8], strides = [1, 1]} : vector<8x32xf32> to vector<8x8xf32>
    %84 = tpu.transpose %82, [1, 0] : vector<8x8xf32> -> vector<8x8xf32>
    %cst_37 = arith.constant dense<0.000000e+00> : vector<8x8xf32>
    %85 = tpu.matmul %81, %84, %cst_37 {dimension_numbers = #tpu.dot_dimension_numbers<[1], [0], [0], [1], [0, 0, 1, 1], [], []>} : vector<8x8xf32>, vector<8x8xf32>, vector<8x8xf32> -> vector<8x8xf32>
    %cst_38 = arith.constant 2.82842708 : f32
    %86 = vector.broadcast %cst_38 : f32 to vector<8x8xf32>
    %87 = arith.divf %85, %86 : vector<8x8xf32>
    %88 = arith.addf %87, %5 : vector<8x8xf32>
    %cst_39 = arith.constant dense<0xFF800000> : vector<8xf32>
    %89 = vector.multi_reduction <maximumf>, %88, %cst_39 [1] : vector<8x8xf32> to vector<8xf32>
    %90 = vector.shape_cast %89 : vector<8xf32> to vector<8x1xf32>
    %91 = vector.broadcast %90 : vector<8x1xf32> to vector<8x8xf32>
    %92 = arith.subf %88, %91 : vector<8x8xf32>
    %93 = math.exp %92 : vector<8x8xf32>
    %cst_40 = arith.constant dense<0.000000e+00> : vector<8xf32>
    %94 = vector.multi_reduction <add>, %93, %cst_40 [1] : vector<8x8xf32> to vector<8xf32>
    %95 = vector.shape_cast %94 : vector<8xf32> to vector<8x1xf32>
    %96 = vector.broadcast %95 : vector<8x1xf32> to vector<8x8xf32>
    %97 = arith.divf %93, %96 : vector<8x8xf32>
    %cst_41 = arith.constant dense<0.000000e+00> : vector<8x8xf32>
    %98 = tpu.matmul %97, %83, %cst_41 {dimension_numbers = #tpu.dot_dimension_numbers<[1], [0], [0], [1], [0, 0, 1, 1], [], []>} : vector<8x8xf32>, vector<8x8xf32>, vector<8x8xf32> -> vector<8x8xf32>
    %99 = vector.extract_strided_slice %18 {offsets = [24, 0], sizes = [8, 32], strides = [1, 1]} : vector<32x32xf32> to vector<8x32xf32>
    %cst_42 = arith.constant dense<0.000000e+00> : vector<8x32xf32>
    %100 = tpu.matmul %98, %99, %cst_42 {dimension_numbers = #tpu.dot_dimension_numbers<[1], [0], [0], [1], [0, 0, 1, 1], [], []>} : vector<8x8xf32>, vector<8x32xf32>, vector<8x32xf32> -> vector<8x32xf32>
    %101 = arith.addf %80, %100 : vector<8x32xf32>
    %c0_43 = arith.constant 0 : index
    %c0_44 = arith.constant 0 : index
    %102 = vector.load %arg10[%c0_43, %c0_44] : memref<1x32xf32, #tpu.memory_space<vmem>>, vector<1x32xf32>
    %103 = vector.broadcast %102 : vector<1x32xf32> to vector<8x32xf32>
    %104 = arith.addf %101, %103 : vector<8x32xf32>
    %105 = arith.addf %1, %104 : vector<8x32xf32>
    %cst_45 = arith.constant dense<0.000000e+00> : vector<8xf32>
    %106 = vector.multi_reduction <add>, %105, %cst_45 [1] : vector<8x32xf32> to vector<8xf32>
    %107 = vector.shape_cast %106 : vector<8xf32> to vector<8x1xf32>
    %cst_46 = arith.constant 3.200000e+01 : f32
    %108 = vector.broadcast %cst_46 : f32 to vector<8x1xf32>
    %109 = arith.divf %107, %108 : vector<8x1xf32>
    %110 = vector.broadcast %109 : vector<8x1xf32> to vector<8x32xf32>
    %111 = arith.subf %105, %110 : vector<8x32xf32>
    %112 = arith.mulf %111, %111 : vector<8x32xf32>
    %cst_47 = arith.constant dense<0.000000e+00> : vector<8xf32>
    %113 = vector.multi_reduction <add>, %112, %cst_47 [1] : vector<8x32xf32> to vector<8xf32>
    %114 = vector.shape_cast %113 : vector<8xf32> to vector<8x1xf32>
    %cst_48 = arith.constant 3.200000e+01 : f32
    %115 = vector.broadcast %cst_48 : f32 to vector<8x1xf32>
    %116 = arith.divf %114, %115 : vector<8x1xf32>
    %117 = vector.broadcast %109 : vector<8x1xf32> to vector<8x32xf32>
    %118 = arith.subf %105, %117 : vector<8x32xf32>
    %cst_49 = arith.constant 9.99999974E-6 : f32
    %119 = vector.broadcast %cst_49 : f32 to vector<8x1xf32>
    %120 = arith.addf %116, %119 : vector<8x1xf32>
    %121 = math.sqrt %120 : vector<8x1xf32>
    %122 = vector.broadcast %121 : vector<8x1xf32> to vector<8x32xf32>
    %123 = arith.divf %118, %122 : vector<8x32xf32>
    %c0_50 = arith.constant 0 : index
    %c0_51 = arith.constant 0 : index
    %124 = vector.load %arg11[%c0_50, %c0_51] : memref<1x32xf32, #tpu.memory_space<vmem>>, vector<1x32xf32>
    %125 = vector.broadcast %124 : vector<1x32xf32> to vector<8x32xf32>
    %126 = arith.mulf %123, %125 : vector<8x32xf32>
    %c0_52 = arith.constant 0 : index
    %c0_53 = arith.constant 0 : index
    %127 = vector.load %arg12[%c0_52, %c0_53] : memref<1x32xf32, #tpu.memory_space<vmem>>, vector<1x32xf32>
    %128 = vector.broadcast %127 : vector<1x32xf32> to vector<8x32xf32>
    %129 = arith.addf %126, %128 : vector<8x32xf32>
    %c0_54 = arith.constant 0 : index
    %c0_55 = arith.constant 0 : index
    %c0_56 = arith.constant 0 : index
    %c0_57 = arith.constant 0 : index
    %130 = vector.load %arg13[%c0_54, %c0_55, %c0_56, %c0_57] : memref<1x1x8x32xf32, #tpu.memory_space<vmem>>, vector<1x1x8x32xf32>
    %131 = vector.shape_cast %130 : vector<1x1x8x32xf32> to vector<8x32xf32>
    %132 = vector.shape_cast %129 : vector<8x32xf32> to vector<1x1x8x32xf32>
    tpu.vector_store %arg13[%c0_54, %c0_55, %c0_56, %c0_57], %132 {strides = array<i32>} : memref<1x1x8x32xf32, #tpu.memory_space<vmem>>, vector<1x1x8x32xf32>,
    return
  }
  func.func @transform_0(%arg0: i32, %arg1: i32) -> (i32, i32, i32) {
    %c0_i32 = arith.constant 0 : i32
    %c0_i32_0 = arith.constant 0 : i32
    %c0_i32_1 = arith.constant 0 : i32
    return %arg1, %c0_i32, %c0_i32_0 : i32, i32, i32
  }
  func.func @transform_1(%arg0: i32, %arg1: i32) -> (i32, i32, i32) {
    %c0_i32 = arith.constant 0 : i32
    %c0_i32_0 = arith.constant 0 : i32
    %c0_i32_1 = arith.constant 0 : i32
    return %arg1, %c0_i32, %c0_i32_0 : i32, i32, i32
  }
  func.func @transform_2(%arg0: i32, %arg1: i32) -> (i32, i32, i32) {
    %c0_i32 = arith.constant 0 : i32
    %c0_i32_0 = arith.constant 0 : i32
    %c0_i32_1 = arith.constant 0 : i32
    return %arg0, %c0_i32, %c0_i32_0 : i32, i32, i32
  }
  func.func @transform_3(%arg0: i32, %arg1: i32) -> (i32, i32) {
    %c0_i32 = arith.constant 0 : i32
    %c0_i32_0 = arith.constant 0 : i32
    %c0_i32_1 = arith.constant 0 : i32
    return %c0_i32, %c0_i32_0 : i32, i32
  }
  func.func @transform_4(%arg0: i32, %arg1: i32) -> (i32, i32) {
    %c0_i32 = arith.constant 0 : i32
    %c0_i32_0 = arith.constant 0 : i32
    %c0_i32_1 = arith.constant 0 : i32
    return %c0_i32, %c0_i32_0 : i32, i32
  }
  func.func @transform_5(%arg0: i32, %arg1: i32) -> (i32, i32) {
    %c0_i32 = arith.constant 0 : i32
    %c0_i32_0 = arith.constant 0 : i32
    %c0_i32_1 = arith.constant 0 : i32
    return %c0_i32, %c0_i32_0 : i32, i32
  }
  func.func @transform_6(%arg0: i32, %arg1: i32) -> (i32, i32) {
    %c0_i32 = arith.constant 0 : i32
    %c0_i32_0 = arith.constant 0 : i32
    %c0_i32_1 = arith.constant 0 : i32
    return %c0_i32, %c0_i32_0 : i32, i32
  }
  func.func @transform_7(%arg0: i32, %arg1: i32) -> (i32, i32) {
    %c0_i32 = arith.constant 0 : i32
    %c0_i32_0 = arith.constant 0 : i32
    %c0_i32_1 = arith.constant 0 : i32
    return %c0_i32, %c0_i32_0 : i32, i32
  }
  func.func @transform_8(%arg0: i32, %arg1: i32) -> (i32, i32) {
    %c0_i32 = arith.constant 0 : i32
    %c0_i32_0 = arith.constant 0 : i32
    %c0_i32_1 = arith.constant 0 : i32
    return %c0_i32, %c0_i32_0 : i32, i32
  }
  func.func @transform_9(%arg0: i32, %arg1: i32) -> (i32, i32) {
    %c0_i32 = arith.constant 0 : i32
    %c0_i32_0 = arith.constant 0 : i32
    %c0_i32_1 = arith.constant 0 : i32
    return %c0_i32, %c0_i32_0 : i32, i32
  }
  func.func @transform_10(%arg0: i32, %arg1: i32) -> (i32, i32) {
    %c0_i32 = arith.constant 0 : i32
    %c0_i32_0 = arith.constant 0 : i32
    %c0_i32_1 = arith.constant 0 : i32
    return %c0_i32, %c0_i32_0 : i32, i32
  }
  func.func @transform_11(%arg0: i32, %arg1: i32) -> (i32, i32, i32, i32) {
    %c0_i32 = arith.constant 0 : i32
    %c0_i32_0 = arith.constant 0 : i32
    %c0_i32_1 = arith.constant 0 : i32
    return %arg0, %arg1, %c0_i32, %c0_i32_0 : i32, i32, i32, i32
  }
}

module attributes {stable_mosaic.version = 11 : i64} {
  func.func @_mha_ln_kernel(%arg0: i32, %arg1: i32, %arg2: memref<1x1x8x32xf32, #tpu.memory_space<vmem>>, %arg3: memref<1x1x8x32xf32, #tpu.memory_space<vmem>>, %arg4: memref<1x1x8xf32, #tpu.memory_space<vmem>>, %arg5: memref<32x32xf32, #tpu.memory_space<vmem>>, %arg6: memref<1x32xf32, #tpu.memory_space<vmem>>, %arg7: memref<32x64xf32, #tpu.memory_space<vmem>>, %arg8: memref<1x64xf32, #tpu.memory_space<vmem>>, %arg9: memref<32x32xf32, #tpu.memory_space<vmem>>, %arg10: memref<1x32xf32, #tpu.memory_space<vmem>>, %arg11: memref<1x32xf32, #tpu.memory_space<vmem>>, %arg12: memref<1x32xf32, #tpu.memory_space<vmem>>, %arg13: memref<1x1x8x32xf32, #tpu.memory_space<vmem>>) attributes {dimension_semantics = [#tpu.dimension_semantics<parallel>, #tpu.dimension_semantics<parallel>], iteration_bounds = array<i64: 2, 2>, scalar_prefetch = 0 : i64, scratch_operands = 0 : i64, tpu.core_type = #tpu.core_type<tc>, window_params = [{transform_indices = @transform_0, window_bounds = array<i64: 1, 1, 8, 32>}, {transform_indices = @transform_1, window_bounds = array<i64: 1, 1, 8, 32>}, {transform_indices = @transform_2, window_bounds = array<i64: 1, 1, 8>}, {pipeline_mode = #tpu.pipeline_mode<synchronous>, transform_indices = @transform_3, window_bounds = array<i64: 32, 32>}, {pipeline_mode = #tpu.pipeline_mode<synchronous>, transform_indices = @transform_4, window_bounds = array<i64: 1, 32>}, {pipeline_mode = #tpu.pipeline_mode<synchronous>, transform_indices = @transform_5, window_bounds = array<i64: 32, 64>}, {pipeline_mode = #tpu.pipeline_mode<synchronous>, transform_indices = @transform_6, window_bounds = array<i64: 1, 64>}, {pipeline_mode = #tpu.pipeline_mode<synchronous>, transform_indices = @transform_7, window_bounds = array<i64: 32, 32>}, {pipeline_mode = #tpu.pipeline_mode<synchronous>, transform_indices = @transform_8, window_bounds = array<i64: 1, 32>}, {pipeline_mode = #tpu.pipeline_mode<synchronous>, transform_indices = @transform_9, window_bounds = array<i64: 1, 32>}, {pipeline_mode = #tpu.pipeline_mode<synchronous>, transform_indices = @transform_10, window_bounds = array<i64: 1, 32>}, {transform_indices = @transform_11, window_bounds = array<i64: 1, 1, 8, 32>}]} {
    %c0 = arith.constant 0 : index
    %c0_0 = arith.constant 0 : index
    %c0_1 = arith.constant 0 : index
    %c0_2 = arith.constant 0 : index
    %0 = vector.load %arg2[%c0, %c0_0, %c0_1, %c0_2] : memref<1x1x8x32xf32, #tpu.memory_space<vmem>>, vector<1x1x8x32xf32>
    %1 = vector.shape_cast %0 : vector<1x1x8x32xf32> to vector<8x32xf32>
    %c0_3 = arith.constant 0 : index
    %c0_4 = arith.constant 0 : index
    %c0_5 = arith.constant 0 : index
    %c0_6 = arith.constant 0 : index
    %2 = vector.load %arg3[%c0_3, %c0_4, %c0_5, %c0_6] : memref<1x1x8x32xf32, #tpu.memory_space<vmem>>, vector<1x1x8x32xf32>
    %3 = vector.shape_cast %2 : vector<1x1x8x32xf32> to vector<8x32xf32>
    %c0_7 = arith.constant 0 : index
    %c0_8 = arith.constant 0 : index
    %c0_9 = arith.constant 0 : index
    %4 = vector.load %arg4[%c0_7, %c0_8, %c0_9] : memref<1x1x8xf32, #tpu.memory_space<vmem>>, vector<1x1x8xf32>
    %5 = vector.shape_cast %4 : vector<1x1x8xf32> to vector<1x8xf32>
    %c0_10 = arith.constant 0 : index
    %c0_11 = arith.constant 0 : index
    %6 = vector.load %arg5[%c0_10, %c0_11] : memref<32x32xf32, #tpu.memory_space<vmem>>, vector<32x32xf32>
    %cst = arith.constant dense<0.000000e+00> : vector<8x32xf32>
    %7 = tpu.matmul %1, %6, %cst {dimension_numbers = #tpu.dot_dimension_numbers<[1], [0], [0], [1], [0, 0, 1, 1], [], []>} : vector<8x32xf32>, vector<32x32xf32>, vector<8x32xf32> -> vector<8x32xf32>
    %c0_12 = arith.constant 0 : index
    %c0_13 = arith.constant 0 : index
    %8 = vector.load %arg6[%c0_12, %c0_13] : memref<1x32xf32, #tpu.memory_space<vmem>>, vector<1x32xf32>
    %9 = vector.broadcast %8 : vector<1x32xf32> to vector<8x32xf32>
    %10 = arith.addf %7, %9 : vector<8x32xf32>
    %c0_14 = arith.constant 0 : index
    %c0_15 = arith.constant 0 : index
    %11 = vector.load %arg7[%c0_14, %c0_15] : memref<32x64xf32, #tpu.memory_space<vmem>>, vector<32x64xf32>
    %cst_16 = arith.constant dense<0.000000e+00> : vector<8x64xf32>
    %12 = tpu.matmul %3, %11, %cst_16 {dimension_numbers = #tpu.dot_dimension_numbers<[1], [0], [0], [1], [0, 0, 1, 1], [], []>} : vector<8x32xf32>, vector<32x64xf32>, vector<8x64xf32> -> vector<8x64xf32>
    %c0_17 = arith.constant 0 : index
    %c0_18 = arith.constant 0 : index
    %13 = vector.load %arg8[%c0_17, %c0_18] : memref<1x64xf32, #tpu.memory_space<vmem>>, vector<1x64xf32>
    %14 = vector.broadcast %13 : vector<1x64xf32> to vector<8x64xf32>
    %15 = arith.addf %12, %14 : vector<8x64xf32>
    %16 = vector.extract_strided_slice %15 {offsets = [0, 0], sizes = [8, 32], strides = [1, 1]} : vector<8x64xf32> to vector<8x32xf32>
    %17 = vector.extract_strided_slice %15 {offsets = [0, 32], sizes = [8, 32], strides = [1, 1]} : vector<8x64xf32> to vector<8x32xf32>
    %c0_19 = arith.constant 0 : index
    %c0_20 = arith.constant 0 : index
    %18 = vector.load %arg9[%c0_19, %c0_20] : memref<32x32xf32, #tpu.memory_space<vmem>>, vector<32x32xf32>
    %19 = vector.extract_strided_slice %10 {offsets = [0, 0], sizes = [8, 8], strides = [1, 1]} : vector<8x32xf32> to vector<8x8xf32>
    %20 = vector.extract_strided_slice %16 {offsets = [0, 0], sizes = [8, 8], strides = [1, 1]} : vector<8x32xf32> to vector<8x8xf32>
    %21 = vector.extract_strided_slice %17 {offsets = [0, 0], sizes = [8, 8], strides = [1, 1]} : vector<8x32xf32> to vector<8x8xf32>
    %22 = tpu.transpose %20, [1, 0] : vector<8x8xf32> -> vector<8x8xf32>
    %cst_21 = arith.constant dense<0.000000e+00> : vector<8x8xf32>
    %23 = tpu.matmul %19, %22, %cst_21 {dimension_numbers = #tpu.dot_dimension_numbers<[1], [0], [0], [1], [0, 0, 1, 1], [], []>} : vector<8x8xf32>, vector<8x8xf32>, vector<8x8xf32> -> vector<8x8xf32>
    %cst_22 = arith.constant 2.82842708 : f32
    %24 = vector.broadcast %cst_22 : f32 to vector<8x8xf32>
    %25 = arith.divf %23, %24 : vector<8x8xf32>
    %26 = vector.broadcast %5 : vector<1x8xf32> to vector<8x8xf32>
    %27 = arith.addf %25, %26 : vector<8x8xf32>
    %cst_23 = arith.constant dense<0xFF800000> : vector<8xf32>
    %28 = vector.multi_reduction <maximumf>, %27, %cst_23 [1] : vector<8x8xf32> to vector<8xf32>
    %29 = vector.shape_cast %28 : vector<8xf32> to vector<8x1xf32>
    %30 = vector.broadcast %29 : vector<8x1xf32> to vector<8x8xf32>
    %31 = arith.subf %27, %30 : vector<8x8xf32>
    %32 = math.exp %31 : vector<8x8xf32>
    %cst_24 = arith.constant dense<0.000000e+00> : vector<8xf32>
    %33 = vector.multi_reduction <add>, %32, %cst_24 [1] : vector<8x8xf32> to vector<8xf32>
    %34 = vector.shape_cast %33 : vector<8xf32> to vector<8x1xf32>
    %35 = vector.broadcast %34 : vector<8x1xf32> to vector<8x8xf32>
    %36 = arith.divf %32, %35 : vector<8x8xf32>
    %cst_25 = arith.constant dense<0.000000e+00> : vector<8x8xf32>
    %37 = tpu.matmul %36, %21, %cst_25 {dimension_numbers = #tpu.dot_dimension_numbers<[1], [0], [0], [1], [0, 0, 1, 1], [], []>} : vector<8x8xf32>, vector<8x8xf32>, vector<8x8xf32> -> vector<8x8xf32>
    %38 = vector.extract_strided_slice %18 {offsets = [0, 0], sizes = [8, 32], strides = [1, 1]} : vector<32x32xf32> to vector<8x32xf32>
    %cst_26 = arith.constant dense<0.000000e+00> : vector<8x32xf32>
    %39 = tpu.matmul %37, %38, %cst_26 {dimension_numbers = #tpu.dot_dimension_numbers<[1], [0], [0], [1], [0, 0, 1, 1], [], []>} : vector<8x8xf32>, vector<8x32xf32>, vector<8x32xf32> -> vector<8x32xf32>
    %40 = vector.extract_strided_slice %10 {offsets = [0, 8], sizes = [8, 8], strides = [1, 1]} : vector<8x32xf32> to vector<8x8xf32>
    %41 = vector.extract_strided_slice %16 {offsets = [0, 8], sizes = [8, 8], strides = [1, 1]} : vector<8x32xf32> to vector<8x8xf32>
    %42 = vector.extract_strided_slice %17 {offsets = [0, 8], sizes = [8, 8], strides = [1, 1]} : vector<8x32xf32> to vector<8x8xf32>
    %43 = tpu.transpose %41, [1, 0] : vector<8x8xf32> -> vector<8x8xf32>
    %cst_27 = arith.constant dense<0.000000e+00> : vector<8x8xf32>
    %44 = tpu.matmul %40, %43, %cst_27 {dimension_numbers = #tpu.dot_dimension_numbers<[1], [0], [0], [1], [0, 0, 1, 1], [], []>} : vector<8x8xf32>, vector<8x8xf32>, vector<8x8xf32> -> vector<8x8xf32>
    %cst_28 = arith.constant 2.82842708 : f32
    %45 = vector.broadcast %cst_28 : f32 to vector<8x8xf32>
    %46 = arith.divf %44, %45 : vector<8x8xf32>
    %47 = vector.broadcast %5 : vector<1x8xf32> to vector<8x8xf32>
    %48 = arith.addf %46, %47 : vector<8x8xf32>
    %cst_29 = arith.constant dense<0xFF800000> : vector<8xf32>
    %49 = vector.multi_reduction <maximumf>, %48, %cst_29 [1] : vector<8x8xf32> to vector<8xf32>
    %50 = vector.shape_cast %49 : vector<8xf32> to vector<8x1xf32>
    %51 = vector.broadcast %50 : vector<8x1xf32> to vector<8x8xf32>
    %52 = arith.subf %48, %51 : vector<8x8xf32>
    %53 = math.exp %52 : vector<8x8xf32>
    %cst_30 = arith.constant dense<0.000000e+00> : vector<8xf32>
    %54 = vector.multi_reduction <add>, %53, %cst_30 [1] : vector<8x8xf32> to vector<8xf32>
    %55 = vector.shape_cast %54 : vector<8xf32> to vector<8x1xf32>
    %56 = vector.broadcast %55 : vector<8x1xf32> to vector<8x8xf32>
    %57 = arith.divf %53, %56 : vector<8x8xf32>
    %cst_31 = arith.constant dense<0.000000e+00> : vector<8x8xf32>
    %58 = tpu.matmul %57, %42, %cst_31 {dimension_numbers = #tpu.dot_dimension_numbers<[1], [0], [0], [1], [0, 0, 1, 1], [], []>} : vector<8x8xf32>, vector<8x8xf32>, vector<8x8xf32> -> vector<8x8xf32>
    %59 = vector.extract_strided_slice %18 {offsets = [8, 0], sizes = [8, 32], strides = [1, 1]} : vector<32x32xf32> to vector<8x32xf32>
    %cst_32 = arith.constant dense<0.000000e+00> : vector<8x32xf32>
    %60 = tpu.matmul %58, %59, %cst_32 {dimension_numbers = #tpu.dot_dimension_numbers<[1], [0], [0], [1], [0, 0, 1, 1], [], []>} : vector<8x8xf32>, vector<8x32xf32>, vector<8x32xf32> -> vector<8x32xf32>
    %61 = arith.addf %39, %60 : vector<8x32xf32>
    %62 = vector.extract_strided_slice %10 {offsets = [0, 16], sizes = [8, 8], strides = [1, 1]} : vector<8x32xf32> to vector<8x8xf32>
    %63 = vector.extract_strided_slice %16 {offsets = [0, 16], sizes = [8, 8], strides = [1, 1]} : vector<8x32xf32> to vector<8x8xf32>
    %64 = vector.extract_strided_slice %17 {offsets = [0, 16], sizes = [8, 8], strides = [1, 1]} : vector<8x32xf32> to vector<8x8xf32>
    %65 = tpu.transpose %63, [1, 0] : vector<8x8xf32> -> vector<8x8xf32>
    %cst_33 = arith.constant dense<0.000000e+00> : vector<8x8xf32>
    %66 = tpu.matmul %62, %65, %cst_33 {dimension_numbers = #tpu.dot_dimension_numbers<[1], [0], [0], [1], [0, 0, 1, 1], [], []>} : vector<8x8xf32>, vector<8x8xf32>, vector<8x8xf32> -> vector<8x8xf32>
    %cst_34 = arith.constant 2.82842708 : f32
    %67 = vector.broadcast %cst_34 : f32 to vector<8x8xf32>
    %68 = arith.divf %66, %67 : vector<8x8xf32>
    %69 = vector.broadcast %5 : vector<1x8xf32> to vector<8x8xf32>
    %70 = arith.addf %68, %69 : vector<8x8xf32>
    %cst_35 = arith.constant dense<0xFF800000> : vector<8xf32>
    %71 = vector.multi_reduction <maximumf>, %70, %cst_35 [1] : vector<8x8xf32> to vector<8xf32>
    %72 = vector.shape_cast %71 : vector<8xf32> to vector<8x1xf32>
    %73 = vector.broadcast %72 : vector<8x1xf32> to vector<8x8xf32>
    %74 = arith.subf %70, %73 : vector<8x8xf32>
    %75 = math.exp %74 : vector<8x8xf32>
    %cst_36 = arith.constant dense<0.000000e+00> : vector<8xf32>
    %76 = vector.multi_reduction <add>, %75, %cst_36 [1] : vector<8x8xf32> to vector<8xf32>
    %77 = vector.shape_cast %76 : vector<8xf32> to vector<8x1xf32>
    %78 = vector.broadcast %77 : vector<8x1xf32> to vector<8x8xf32>
    %79 = arith.divf %75, %78 : vector<8x8xf32>
    %cst_37 = arith.constant dense<0.000000e+00> : vector<8x8xf32>
    %80 = tpu.matmul %79, %64, %cst_37 {dimension_numbers = #tpu.dot_dimension_numbers<[1], [0], [0], [1], [0, 0, 1, 1], [], []>} : vector<8x8xf32>, vector<8x8xf32>, vector<8x8xf32> -> vector<8x8xf32>
    %81 = vector.extract_strided_slice %18 {offsets = [16, 0], sizes = [8, 32], strides = [1, 1]} : vector<32x32xf32> to vector<8x32xf32>
    %cst_38 = arith.constant dense<0.000000e+00> : vector<8x32xf32>
    %82 = tpu.matmul %80, %81, %cst_38 {dimension_numbers = #tpu.dot_dimension_numbers<[1], [0], [0], [1], [0, 0, 1, 1], [], []>} : vector<8x8xf32>, vector<8x32xf32>, vector<8x32xf32> -> vector<8x32xf32>
    %83 = arith.addf %61, %82 : vector<8x32xf32>
    %84 = vector.extract_strided_slice %10 {offsets = [0, 24], sizes = [8, 8], strides = [1, 1]} : vector<8x32xf32> to vector<8x8xf32>
    %85 = vector.extract_strided_slice %16 {offsets = [0, 24], sizes = [8, 8], strides = [1, 1]} : vector<8x32xf32> to vector<8x8xf32>
    %86 = vector.extract_strided_slice %17 {offsets = [0, 24], sizes = [8, 8], strides = [1, 1]} : vector<8x32xf32> to vector<8x8xf32>
    %87 = tpu.transpose %85, [1, 0] : vector<8x8xf32> -> vector<8x8xf32>
    %cst_39 = arith.constant dense<0.000000e+00> : vector<8x8xf32>
    %88 = tpu.matmul %84, %87, %cst_39 {dimension_numbers = #tpu.dot_dimension_numbers<[1], [0], [0], [1], [0, 0, 1, 1], [], []>} : vector<8x8xf32>, vector<8x8xf32>, vector<8x8xf32> -> vector<8x8xf32>
    %cst_40 = arith.constant 2.82842708 : f32
    %89 = vector.broadcast %cst_40 : f32 to vector<8x8xf32>
    %90 = arith.divf %88, %89 : vector<8x8xf32>
    %91 = vector.broadcast %5 : vector<1x8xf32> to vector<8x8xf32>
    %92 = arith.addf %90, %91 : vector<8x8xf32>
    %cst_41 = arith.constant dense<0xFF800000> : vector<8xf32>
    %93 = vector.multi_reduction <maximumf>, %92, %cst_41 [1] : vector<8x8xf32> to vector<8xf32>
    %94 = vector.shape_cast %93 : vector<8xf32> to vector<8x1xf32>
    %95 = vector.broadcast %94 : vector<8x1xf32> to vector<8x8xf32>
    %96 = arith.subf %92, %95 : vector<8x8xf32>
    %97 = math.exp %96 : vector<8x8xf32>
    %cst_42 = arith.constant dense<0.000000e+00> : vector<8xf32>
    %98 = vector.multi_reduction <add>, %97, %cst_42 [1] : vector<8x8xf32> to vector<8xf32>
    %99 = vector.shape_cast %98 : vector<8xf32> to vector<8x1xf32>
    %100 = vector.broadcast %99 : vector<8x1xf32> to vector<8x8xf32>
    %101 = arith.divf %97, %100 : vector<8x8xf32>
    %cst_43 = arith.constant dense<0.000000e+00> : vector<8x8xf32>
    %102 = tpu.matmul %101, %86, %cst_43 {dimension_numbers = #tpu.dot_dimension_numbers<[1], [0], [0], [1], [0, 0, 1, 1], [], []>} : vector<8x8xf32>, vector<8x8xf32>, vector<8x8xf32> -> vector<8x8xf32>
    %103 = vector.extract_strided_slice %18 {offsets = [24, 0], sizes = [8, 32], strides = [1, 1]} : vector<32x32xf32> to vector<8x32xf32>
    %cst_44 = arith.constant dense<0.000000e+00> : vector<8x32xf32>
    %104 = tpu.matmul %102, %103, %cst_44 {dimension_numbers = #tpu.dot_dimension_numbers<[1], [0], [0], [1], [0, 0, 1, 1], [], []>} : vector<8x8xf32>, vector<8x32xf32>, vector<8x32xf32> -> vector<8x32xf32>
    %105 = arith.addf %83, %104 : vector<8x32xf32>
    %c0_45 = arith.constant 0 : index
    %c0_46 = arith.constant 0 : index
    %106 = vector.load %arg10[%c0_45, %c0_46] : memref<1x32xf32, #tpu.memory_space<vmem>>, vector<1x32xf32>
    %107 = vector.broadcast %106 : vector<1x32xf32> to vector<8x32xf32>
    %108 = arith.addf %105, %107 : vector<8x32xf32>
    %109 = arith.addf %1, %108 : vector<8x32xf32>
    %cst_47 = arith.constant dense<0.000000e+00> : vector<8xf32>
    %110 = vector.multi_reduction <add>, %109, %cst_47 [1] : vector<8x32xf32> to vector<8xf32>
    %111 = vector.shape_cast %110 : vector<8xf32> to vector<8x1xf32>
    %cst_48 = arith.constant 3.200000e+01 : f32
    %112 = vector.broadcast %cst_48 : f32 to vector<8x1xf32>
    %113 = arith.divf %111, %112 : vector<8x1xf32>
    %114 = vector.broadcast %113 : vector<8x1xf32> to vector<8x32xf32>
    %115 = arith.subf %109, %114 : vector<8x32xf32>
    %116 = arith.mulf %115, %115 : vector<8x32xf32>
    %cst_49 = arith.constant dense<0.000000e+00> : vector<8xf32>
    %117 = vector.multi_reduction <add>, %116, %cst_49 [1] : vector<8x32xf32> to vector<8xf32>
    %118 = vector.shape_cast %117 : vector<8xf32> to vector<8x1xf32>
    %cst_50 = arith.constant 3.200000e+01 : f32
    %119 = vector.broadcast %cst_50 : f32 to vector<8x1xf32>
    %120 = arith.divf %118, %119 : vector<8x1xf32>
    %121 = vector.broadcast %113 : vector<8x1xf32> to vector<8x32xf32>
    %122 = arith.subf %109, %121 : vector<8x32xf32>
    %cst_51 = arith.constant 9.99999974E-6 : f32
    %123 = vector.broadcast %cst_51 : f32 to vector<8x1xf32>
    %124 = arith.addf %120, %123 : vector<8x1xf32>
    %125 = math.sqrt %124 : vector<8x1xf32>
    %126 = vector.broadcast %125 : vector<8x1xf32> to vector<8x32xf32>
    %127 = arith.divf %122, %126 : vector<8x32xf32>
    %c0_52 = arith.constant 0 : index
    %c0_53 = arith.constant 0 : index
    %128 = vector.load %arg11[%c0_52, %c0_53] : memref<1x32xf32, #tpu.memory_space<vmem>>, vector<1x32xf32>
    %129 = vector.broadcast %128 : vector<1x32xf32> to vector<8x32xf32>
    %130 = arith.mulf %127, %129 : vector<8x32xf32>
    %c0_54 = arith.constant 0 : index
    %c0_55 = arith.constant 0 : index
    %131 = vector.load %arg12[%c0_54, %c0_55] : memref<1x32xf32, #tpu.memory_space<vmem>>, vector<1x32xf32>
    %132 = vector.broadcast %131 : vector<1x32xf32> to vector<8x32xf32>
    %133 = arith.addf %130, %132 : vector<8x32xf32>
    %c0_56 = arith.constant 0 : index
    %c0_57 = arith.constant 0 : index
    %c0_58 = arith.constant 0 : index
    %c0_59 = arith.constant 0 : index
    %134 = vector.load %arg13[%c0_56, %c0_57, %c0_58, %c0_59] : memref<1x1x8x32xf32, #tpu.memory_space<vmem>>, vector<1x1x8x32xf32>
    %135 = vector.shape_cast %134 : vector<1x1x8x32xf32> to vector<8x32xf32>
    %136 = vector.shape_cast %133 : vector<8x32xf32> to vector<1x1x8x32xf32>
    tpu.vector_store %arg13[%c0_56, %c0_57, %c0_58, %c0_59], %136 {strides = array<i32>} : memref<1x1x8x32xf32, #tpu.memory_space<vmem>>, vector<1x1x8x32xf32>,
    return
  }
  func.func @transform_0(%arg0: i32, %arg1: i32) -> (i32, i32, i32, i32) {
    %c0_i32 = arith.constant 0 : i32
    %c0_i32_0 = arith.constant 0 : i32
    %c0_i32_1 = arith.constant 0 : i32
    return %arg0, %arg1, %c0_i32, %c0_i32_0 : i32, i32, i32, i32
  }
  func.func @transform_1(%arg0: i32, %arg1: i32) -> (i32, i32, i32, i32) {
    %c0_i32 = arith.constant 0 : i32
    %c0_i32_0 = arith.constant 0 : i32
    %c0_i32_1 = arith.constant 0 : i32
    return %arg0, %arg1, %c0_i32, %c0_i32_0 : i32, i32, i32, i32
  }
  func.func @transform_2(%arg0: i32, %arg1: i32) -> (i32, i32, i32) {
    %c0_i32 = arith.constant 0 : i32
    %c0_i32_0 = arith.constant 0 : i32
    %c0_i32_1 = arith.constant 0 : i32
    return %arg0, %c0_i32, %c0_i32_0 : i32, i32, i32
  }
  func.func @transform_3(%arg0: i32, %arg1: i32) -> (i32, i32) {
    %c0_i32 = arith.constant 0 : i32
    %c0_i32_0 = arith.constant 0 : i32
    %c0_i32_1 = arith.constant 0 : i32
    return %c0_i32, %c0_i32_0 : i32, i32
  }
  func.func @transform_4(%arg0: i32, %arg1: i32) -> (i32, i32) {
    %c0_i32 = arith.constant 0 : i32
    %c0_i32_0 = arith.constant 0 : i32
    %c0_i32_1 = arith.constant 0 : i32
    return %c0_i32, %c0_i32_0 : i32, i32
  }
  func.func @transform_5(%arg0: i32, %arg1: i32) -> (i32, i32) {
    %c0_i32 = arith.constant 0 : i32
    %c0_i32_0 = arith.constant 0 : i32
    %c0_i32_1 = arith.constant 0 : i32
    return %c0_i32, %c0_i32_0 : i32, i32
  }
  func.func @transform_6(%arg0: i32, %arg1: i32) -> (i32, i32) {
    %c0_i32 = arith.constant 0 : i32
    %c0_i32_0 = arith.constant 0 : i32
    %c0_i32_1 = arith.constant 0 : i32
    return %c0_i32, %c0_i32_0 : i32, i32
  }
  func.func @transform_7(%arg0: i32, %arg1: i32) -> (i32, i32) {
    %c0_i32 = arith.constant 0 : i32
    %c0_i32_0 = arith.constant 0 : i32
    %c0_i32_1 = arith.constant 0 : i32
    return %c0_i32, %c0_i32_0 : i32, i32
  }
  func.func @transform_8(%arg0: i32, %arg1: i32) -> (i32, i32) {
    %c0_i32 = arith.constant 0 : i32
    %c0_i32_0 = arith.constant 0 : i32
    %c0_i32_1 = arith.constant 0 : i32
    return %c0_i32, %c0_i32_0 : i32, i32
  }
  func.func @transform_9(%arg0: i32, %arg1: i32) -> (i32, i32) {
    %c0_i32 = arith.constant 0 : i32
    %c0_i32_0 = arith.constant 0 : i32
    %c0_i32_1 = arith.constant 0 : i32
    return %c0_i32, %c0_i32_0 : i32, i32
  }
  func.func @transform_10(%arg0: i32, %arg1: i32) -> (i32, i32) {
    %c0_i32 = arith.constant 0 : i32
    %c0_i32_0 = arith.constant 0 : i32
    %c0_i32_1 = arith.constant 0 : i32
    return %c0_i32, %c0_i32_0 : i32, i32
  }
  func.func @transform_11(%arg0: i32, %arg1: i32) -> (i32, i32, i32, i32) {
    %c0_i32 = arith.constant 0 : i32
    %c0_i32_0 = arith.constant 0 : i32
    %c0_i32_1 = arith.constant 0 : i32
    return %arg0, %arg1, %c0_i32, %c0_i32_0 : i32, i32, i32, i32
  }
}

module attributes {stable_mosaic.version = 11 : i64} {
  func.func @_mha_ln_kernel(%arg0: i32, %arg1: i32, %arg2: memref<1x8x32xf32, #tpu.memory_space<vmem>>, %arg3: memref<1x8x32xf32, #tpu.memory_space<vmem>>, %arg4: memref<1x1x8xf32, #tpu.memory_space<vmem>>, %arg5: memref<32x32xf32, #tpu.memory_space<vmem>>, %arg6: memref<1x32xf32, #tpu.memory_space<vmem>>, %arg7: memref<32x64xf32, #tpu.memory_space<vmem>>, %arg8: memref<1x64xf32, #tpu.memory_space<vmem>>, %arg9: memref<32x32xf32, #tpu.memory_space<vmem>>, %arg10: memref<1x32xf32, #tpu.memory_space<vmem>>, %arg11: memref<1x32xf32, #tpu.memory_space<vmem>>, %arg12: memref<1x32xf32, #tpu.memory_space<vmem>>, %arg13: memref<1x1x8x32xf32, #tpu.memory_space<vmem>>) attributes {dimension_semantics = [#tpu.dimension_semantics<parallel>, #tpu.dimension_semantics<parallel>], iteration_bounds = array<i64: 2, 2>, scalar_prefetch = 0 : i64, scratch_operands = 0 : i64, tpu.core_type = #tpu.core_type<tc>, window_params = [{transform_indices = @transform_0, window_bounds = array<i64: 1, 8, 32>}, {transform_indices = @transform_1, window_bounds = array<i64: 1, 8, 32>}, {transform_indices = @transform_2, window_bounds = array<i64: 1, 1, 8>}, {pipeline_mode = #tpu.pipeline_mode<synchronous>, transform_indices = @transform_3, window_bounds = array<i64: 32, 32>}, {pipeline_mode = #tpu.pipeline_mode<synchronous>, transform_indices = @transform_4, window_bounds = array<i64: 1, 32>}, {pipeline_mode = #tpu.pipeline_mode<synchronous>, transform_indices = @transform_5, window_bounds = array<i64: 32, 64>}, {pipeline_mode = #tpu.pipeline_mode<synchronous>, transform_indices = @transform_6, window_bounds = array<i64: 1, 64>}, {pipeline_mode = #tpu.pipeline_mode<synchronous>, transform_indices = @transform_7, window_bounds = array<i64: 32, 32>}, {pipeline_mode = #tpu.pipeline_mode<synchronous>, transform_indices = @transform_8, window_bounds = array<i64: 1, 32>}, {pipeline_mode = #tpu.pipeline_mode<synchronous>, transform_indices = @transform_9, window_bounds = array<i64: 1, 32>}, {pipeline_mode = #tpu.pipeline_mode<synchronous>, transform_indices = @transform_10, window_bounds = array<i64: 1, 32>}, {transform_indices = @transform_11, window_bounds = array<i64: 1, 1, 8, 32>}]} {
    %c0 = arith.constant 0 : index
    %c0_0 = arith.constant 0 : index
    %c0_1 = arith.constant 0 : index
    %0 = vector.load %arg2[%c0, %c0_0, %c0_1] : memref<1x8x32xf32, #tpu.memory_space<vmem>>, vector<1x8x32xf32>
    %1 = vector.shape_cast %0 : vector<1x8x32xf32> to vector<8x32xf32>
    %c0_2 = arith.constant 0 : index
    %c0_3 = arith.constant 0 : index
    %c0_4 = arith.constant 0 : index
    %2 = vector.load %arg3[%c0_2, %c0_3, %c0_4] : memref<1x8x32xf32, #tpu.memory_space<vmem>>, vector<1x8x32xf32>
    %3 = vector.shape_cast %2 : vector<1x8x32xf32> to vector<8x32xf32>
    %c0_5 = arith.constant 0 : index
    %c0_6 = arith.constant 0 : index
    %c0_7 = arith.constant 0 : index
    %4 = vector.load %arg4[%c0_5, %c0_6, %c0_7] : memref<1x1x8xf32, #tpu.memory_space<vmem>>, vector<1x1x8xf32>
    %5 = vector.shape_cast %4 : vector<1x1x8xf32> to vector<1x8xf32>
    %c0_8 = arith.constant 0 : index
    %c0_9 = arith.constant 0 : index
    %6 = vector.load %arg5[%c0_8, %c0_9] : memref<32x32xf32, #tpu.memory_space<vmem>>, vector<32x32xf32>
    %cst = arith.constant dense<0.000000e+00> : vector<8x32xf32>
    %7 = tpu.matmul %1, %6, %cst {dimension_numbers = #tpu.dot_dimension_numbers<[1], [0], [0], [1], [0, 0, 1, 1], [], []>} : vector<8x32xf32>, vector<32x32xf32>, vector<8x32xf32> -> vector<8x32xf32>
    %c0_10 = arith.constant 0 : index
    %c0_11 = arith.constant 0 : index
    %8 = vector.load %arg6[%c0_10, %c0_11] : memref<1x32xf32, #tpu.memory_space<vmem>>, vector<1x32xf32>
    %9 = vector.broadcast %8 : vector<1x32xf32> to vector<8x32xf32>
    %10 = arith.addf %7, %9 : vector<8x32xf32>
    %c0_12 = arith.constant 0 : index
    %c0_13 = arith.constant 0 : index
    %11 = vector.load %arg7[%c0_12, %c0_13] : memref<32x64xf32, #tpu.memory_space<vmem>>, vector<32x64xf32>
    %cst_14 = arith.constant dense<0.000000e+00> : vector<8x64xf32>
    %12 = tpu.matmul %3, %11, %cst_14 {dimension_numbers = #tpu.dot_dimension_numbers<[1], [0], [0], [1], [0, 0, 1, 1], [], []>} : vector<8x32xf32>, vector<32x64xf32>, vector<8x64xf32> -> vector<8x64xf32>
    %c0_15 = arith.constant 0 : index
    %c0_16 = arith.constant 0 : index
    %13 = vector.load %arg8[%c0_15, %c0_16] : memref<1x64xf32, #tpu.memory_space<vmem>>, vector<1x64xf32>
    %14 = vector.broadcast %13 : vector<1x64xf32> to vector<8x64xf32>
    %15 = arith.addf %12, %14 : vector<8x64xf32>
    %16 = vector.extract_strided_slice %15 {offsets = [0, 0], sizes = [8, 32], strides = [1, 1]} : vector<8x64xf32> to vector<8x32xf32>
    %17 = vector.extract_strided_slice %15 {offsets = [0, 32], sizes = [8, 32], strides = [1, 1]} : vector<8x64xf32> to vector<8x32xf32>
    %c0_17 = arith.constant 0 : index
    %c0_18 = arith.constant 0 : index
    %18 = vector.load %arg9[%c0_17, %c0_18] : memref<32x32xf32, #tpu.memory_space<vmem>>, vector<32x32xf32>
    %19 = vector.extract_strided_slice %10 {offsets = [0, 0], sizes = [8, 8], strides = [1, 1]} : vector<8x32xf32> to vector<8x8xf32>
    %20 = vector.extract_strided_slice %16 {offsets = [0, 0], sizes = [8, 8], strides = [1, 1]} : vector<8x32xf32> to vector<8x8xf32>
    %21 = vector.extract_strided_slice %17 {offsets = [0, 0], sizes = [8, 8], strides = [1, 1]} : vector<8x32xf32> to vector<8x8xf32>
    %22 = tpu.transpose %20, [1, 0] : vector<8x8xf32> -> vector<8x8xf32>
    %cst_19 = arith.constant dense<0.000000e+00> : vector<8x8xf32>
    %23 = tpu.matmul %19, %22, %cst_19 {dimension_numbers = #tpu.dot_dimension_numbers<[1], [0], [0], [1], [0, 0, 1, 1], [], []>} : vector<8x8xf32>, vector<8x8xf32>, vector<8x8xf32> -> vector<8x8xf32>
    %cst_20 = arith.constant 2.82842708 : f32
    %24 = vector.broadcast %cst_20 : f32 to vector<8x8xf32>
    %25 = arith.divf %23, %24 : vector<8x8xf32>
    %26 = vector.broadcast %5 : vector<1x8xf32> to vector<8x8xf32>
    %27 = arith.addf %25, %26 : vector<8x8xf32>
    %cst_21 = arith.constant dense<0xFF800000> : vector<8xf32>
    %28 = vector.multi_reduction <maximumf>, %27, %cst_21 [1] : vector<8x8xf32> to vector<8xf32>
    %29 = vector.shape_cast %28 : vector<8xf32> to vector<8x1xf32>
    %30 = vector.broadcast %29 : vector<8x1xf32> to vector<8x8xf32>
    %31 = arith.subf %27, %30 : vector<8x8xf32>
    %32 = math.exp %31 : vector<8x8xf32>
    %cst_22 = arith.constant dense<0.000000e+00> : vector<8xf32>
    %33 = vector.multi_reduction <add>, %32, %cst_22 [1] : vector<8x8xf32> to vector<8xf32>
    %34 = vector.shape_cast %33 : vector<8xf32> to vector<8x1xf32>
    %35 = vector.broadcast %34 : vector<8x1xf32> to vector<8x8xf32>
    %36 = arith.divf %32, %35 : vector<8x8xf32>
    %cst_23 = arith.constant dense<0.000000e+00> : vector<8x8xf32>
    %37 = tpu.matmul %36, %21, %cst_23 {dimension_numbers = #tpu.dot_dimension_numbers<[1], [0], [0], [1], [0, 0, 1, 1], [], []>} : vector<8x8xf32>, vector<8x8xf32>, vector<8x8xf32> -> vector<8x8xf32>
    %38 = vector.extract_strided_slice %18 {offsets = [0, 0], sizes = [8, 32], strides = [1, 1]} : vector<32x32xf32> to vector<8x32xf32>
    %cst_24 = arith.constant dense<0.000000e+00> : vector<8x32xf32>
    %39 = tpu.matmul %37, %38, %cst_24 {dimension_numbers = #tpu.dot_dimension_numbers<[1], [0], [0], [1], [0, 0, 1, 1], [], []>} : vector<8x8xf32>, vector<8x32xf32>, vector<8x32xf32> -> vector<8x32xf32>
    %40 = vector.extract_strided_slice %10 {offsets = [0, 8], sizes = [8, 8], strides = [1, 1]} : vector<8x32xf32> to vector<8x8xf32>
    %41 = vector.extract_strided_slice %16 {offsets = [0, 8], sizes = [8, 8], strides = [1, 1]} : vector<8x32xf32> to vector<8x8xf32>
    %42 = vector.extract_strided_slice %17 {offsets = [0, 8], sizes = [8, 8], strides = [1, 1]} : vector<8x32xf32> to vector<8x8xf32>
    %43 = tpu.transpose %41, [1, 0] : vector<8x8xf32> -> vector<8x8xf32>
    %cst_25 = arith.constant dense<0.000000e+00> : vector<8x8xf32>
    %44 = tpu.matmul %40, %43, %cst_25 {dimension_numbers = #tpu.dot_dimension_numbers<[1], [0], [0], [1], [0, 0, 1, 1], [], []>} : vector<8x8xf32>, vector<8x8xf32>, vector<8x8xf32> -> vector<8x8xf32>
    %cst_26 = arith.constant 2.82842708 : f32
    %45 = vector.broadcast %cst_26 : f32 to vector<8x8xf32>
    %46 = arith.divf %44, %45 : vector<8x8xf32>
    %47 = vector.broadcast %5 : vector<1x8xf32> to vector<8x8xf32>
    %48 = arith.addf %46, %47 : vector<8x8xf32>
    %cst_27 = arith.constant dense<0xFF800000> : vector<8xf32>
    %49 = vector.multi_reduction <maximumf>, %48, %cst_27 [1] : vector<8x8xf32> to vector<8xf32>
    %50 = vector.shape_cast %49 : vector<8xf32> to vector<8x1xf32>
    %51 = vector.broadcast %50 : vector<8x1xf32> to vector<8x8xf32>
    %52 = arith.subf %48, %51 : vector<8x8xf32>
    %53 = math.exp %52 : vector<8x8xf32>
    %cst_28 = arith.constant dense<0.000000e+00> : vector<8xf32>
    %54 = vector.multi_reduction <add>, %53, %cst_28 [1] : vector<8x8xf32> to vector<8xf32>
    %55 = vector.shape_cast %54 : vector<8xf32> to vector<8x1xf32>
    %56 = vector.broadcast %55 : vector<8x1xf32> to vector<8x8xf32>
    %57 = arith.divf %53, %56 : vector<8x8xf32>
    %cst_29 = arith.constant dense<0.000000e+00> : vector<8x8xf32>
    %58 = tpu.matmul %57, %42, %cst_29 {dimension_numbers = #tpu.dot_dimension_numbers<[1], [0], [0], [1], [0, 0, 1, 1], [], []>} : vector<8x8xf32>, vector<8x8xf32>, vector<8x8xf32> -> vector<8x8xf32>
    %59 = vector.extract_strided_slice %18 {offsets = [8, 0], sizes = [8, 32], strides = [1, 1]} : vector<32x32xf32> to vector<8x32xf32>
    %cst_30 = arith.constant dense<0.000000e+00> : vector<8x32xf32>
    %60 = tpu.matmul %58, %59, %cst_30 {dimension_numbers = #tpu.dot_dimension_numbers<[1], [0], [0], [1], [0, 0, 1, 1], [], []>} : vector<8x8xf32>, vector<8x32xf32>, vector<8x32xf32> -> vector<8x32xf32>
    %61 = arith.addf %39, %60 : vector<8x32xf32>
    %62 = vector.extract_strided_slice %10 {offsets = [0, 16], sizes = [8, 8], strides = [1, 1]} : vector<8x32xf32> to vector<8x8xf32>
    %63 = vector.extract_strided_slice %16 {offsets = [0, 16], sizes = [8, 8], strides = [1, 1]} : vector<8x32xf32> to vector<8x8xf32>
    %64 = vector.extract_strided_slice %17 {offsets = [0, 16], sizes = [8, 8], strides = [1, 1]} : vector<8x32xf32> to vector<8x8xf32>
    %65 = tpu.transpose %63, [1, 0] : vector<8x8xf32> -> vector<8x8xf32>
    %cst_31 = arith.constant dense<0.000000e+00> : vector<8x8xf32>
    %66 = tpu.matmul %62, %65, %cst_31 {dimension_numbers = #tpu.dot_dimension_numbers<[1], [0], [0], [1], [0, 0, 1, 1], [], []>} : vector<8x8xf32>, vector<8x8xf32>, vector<8x8xf32> -> vector<8x8xf32>
    %cst_32 = arith.constant 2.82842708 : f32
    %67 = vector.broadcast %cst_32 : f32 to vector<8x8xf32>
    %68 = arith.divf %66, %67 : vector<8x8xf32>
    %69 = vector.broadcast %5 : vector<1x8xf32> to vector<8x8xf32>
    %70 = arith.addf %68, %69 : vector<8x8xf32>
    %cst_33 = arith.constant dense<0xFF800000> : vector<8xf32>
    %71 = vector.multi_reduction <maximumf>, %70, %cst_33 [1] : vector<8x8xf32> to vector<8xf32>
    %72 = vector.shape_cast %71 : vector<8xf32> to vector<8x1xf32>
    %73 = vector.broadcast %72 : vector<8x1xf32> to vector<8x8xf32>
    %74 = arith.subf %70, %73 : vector<8x8xf32>
    %75 = math.exp %74 : vector<8x8xf32>
    %cst_34 = arith.constant dense<0.000000e+00> : vector<8xf32>
    %76 = vector.multi_reduction <add>, %75, %cst_34 [1] : vector<8x8xf32> to vector<8xf32>
    %77 = vector.shape_cast %76 : vector<8xf32> to vector<8x1xf32>
    %78 = vector.broadcast %77 : vector<8x1xf32> to vector<8x8xf32>
    %79 = arith.divf %75, %78 : vector<8x8xf32>
    %cst_35 = arith.constant dense<0.000000e+00> : vector<8x8xf32>
    %80 = tpu.matmul %79, %64, %cst_35 {dimension_numbers = #tpu.dot_dimension_numbers<[1], [0], [0], [1], [0, 0, 1, 1], [], []>} : vector<8x8xf32>, vector<8x8xf32>, vector<8x8xf32> -> vector<8x8xf32>
    %81 = vector.extract_strided_slice %18 {offsets = [16, 0], sizes = [8, 32], strides = [1, 1]} : vector<32x32xf32> to vector<8x32xf32>
    %cst_36 = arith.constant dense<0.000000e+00> : vector<8x32xf32>
    %82 = tpu.matmul %80, %81, %cst_36 {dimension_numbers = #tpu.dot_dimension_numbers<[1], [0], [0], [1], [0, 0, 1, 1], [], []>} : vector<8x8xf32>, vector<8x32xf32>, vector<8x32xf32> -> vector<8x32xf32>
    %83 = arith.addf %61, %82 : vector<8x32xf32>
    %84 = vector.extract_strided_slice %10 {offsets = [0, 24], sizes = [8, 8], strides = [1, 1]} : vector<8x32xf32> to vector<8x8xf32>
    %85 = vector.extract_strided_slice %16 {offsets = [0, 24], sizes = [8, 8], strides = [1, 1]} : vector<8x32xf32> to vector<8x8xf32>
    %86 = vector.extract_strided_slice %17 {offsets = [0, 24], sizes = [8, 8], strides = [1, 1]} : vector<8x32xf32> to vector<8x8xf32>
    %87 = tpu.transpose %85, [1, 0] : vector<8x8xf32> -> vector<8x8xf32>
    %cst_37 = arith.constant dense<0.000000e+00> : vector<8x8xf32>
    %88 = tpu.matmul %84, %87, %cst_37 {dimension_numbers = #tpu.dot_dimension_numbers<[1], [0], [0], [1], [0, 0, 1, 1], [], []>} : vector<8x8xf32>, vector<8x8xf32>, vector<8x8xf32> -> vector<8x8xf32>
    %cst_38 = arith.constant 2.82842708 : f32
    %89 = vector.broadcast %cst_38 : f32 to vector<8x8xf32>
    %90 = arith.divf %88, %89 : vector<8x8xf32>
    %91 = vector.broadcast %5 : vector<1x8xf32> to vector<8x8xf32>
    %92 = arith.addf %90, %91 : vector<8x8xf32>
    %cst_39 = arith.constant dense<0xFF800000> : vector<8xf32>
    %93 = vector.multi_reduction <maximumf>, %92, %cst_39 [1] : vector<8x8xf32> to vector<8xf32>
    %94 = vector.shape_cast %93 : vector<8xf32> to vector<8x1xf32>
    %95 = vector.broadcast %94 : vector<8x1xf32> to vector<8x8xf32>
    %96 = arith.subf %92, %95 : vector<8x8xf32>
    %97 = math.exp %96 : vector<8x8xf32>
    %cst_40 = arith.constant dense<0.000000e+00> : vector<8xf32>
    %98 = vector.multi_reduction <add>, %97, %cst_40 [1] : vector<8x8xf32> to vector<8xf32>
    %99 = vector.shape_cast %98 : vector<8xf32> to vector<8x1xf32>
    %100 = vector.broadcast %99 : vector<8x1xf32> to vector<8x8xf32>
    %101 = arith.divf %97, %100 : vector<8x8xf32>
    %cst_41 = arith.constant dense<0.000000e+00> : vector<8x8xf32>
    %102 = tpu.matmul %101, %86, %cst_41 {dimension_numbers = #tpu.dot_dimension_numbers<[1], [0], [0], [1], [0, 0, 1, 1], [], []>} : vector<8x8xf32>, vector<8x8xf32>, vector<8x8xf32> -> vector<8x8xf32>
    %103 = vector.extract_strided_slice %18 {offsets = [24, 0], sizes = [8, 32], strides = [1, 1]} : vector<32x32xf32> to vector<8x32xf32>
    %cst_42 = arith.constant dense<0.000000e+00> : vector<8x32xf32>
    %104 = tpu.matmul %102, %103, %cst_42 {dimension_numbers = #tpu.dot_dimension_numbers<[1], [0], [0], [1], [0, 0, 1, 1], [], []>} : vector<8x8xf32>, vector<8x32xf32>, vector<8x32xf32> -> vector<8x32xf32>
    %105 = arith.addf %83, %104 : vector<8x32xf32>
    %c0_43 = arith.constant 0 : index
    %c0_44 = arith.constant 0 : index
    %106 = vector.load %arg10[%c0_43, %c0_44] : memref<1x32xf32, #tpu.memory_space<vmem>>, vector<1x32xf32>
    %107 = vector.broadcast %106 : vector<1x32xf32> to vector<8x32xf32>
    %108 = arith.addf %105, %107 : vector<8x32xf32>
    %109 = arith.addf %1, %108 : vector<8x32xf32>
    %cst_45 = arith.constant dense<0.000000e+00> : vector<8xf32>
    %110 = vector.multi_reduction <add>, %109, %cst_45 [1] : vector<8x32xf32> to vector<8xf32>
    %111 = vector.shape_cast %110 : vector<8xf32> to vector<8x1xf32>
    %cst_46 = arith.constant 3.200000e+01 : f32
    %112 = vector.broadcast %cst_46 : f32 to vector<8x1xf32>
    %113 = arith.divf %111, %112 : vector<8x1xf32>
    %114 = vector.broadcast %113 : vector<8x1xf32> to vector<8x32xf32>
    %115 = arith.subf %109, %114 : vector<8x32xf32>
    %116 = arith.mulf %115, %115 : vector<8x32xf32>
    %cst_47 = arith.constant dense<0.000000e+00> : vector<8xf32>
    %117 = vector.multi_reduction <add>, %116, %cst_47 [1] : vector<8x32xf32> to vector<8xf32>
    %118 = vector.shape_cast %117 : vector<8xf32> to vector<8x1xf32>
    %cst_48 = arith.constant 3.200000e+01 : f32
    %119 = vector.broadcast %cst_48 : f32 to vector<8x1xf32>
    %120 = arith.divf %118, %119 : vector<8x1xf32>
    %121 = vector.broadcast %113 : vector<8x1xf32> to vector<8x32xf32>
    %122 = arith.subf %109, %121 : vector<8x32xf32>
    %cst_49 = arith.constant 9.99999974E-6 : f32
    %123 = vector.broadcast %cst_49 : f32 to vector<8x1xf32>
    %124 = arith.addf %120, %123 : vector<8x1xf32>
    %125 = math.sqrt %124 : vector<8x1xf32>
    %126 = vector.broadcast %125 : vector<8x1xf32> to vector<8x32xf32>
    %127 = arith.divf %122, %126 : vector<8x32xf32>
    %c0_50 = arith.constant 0 : index
    %c0_51 = arith.constant 0 : index
    %128 = vector.load %arg11[%c0_50, %c0_51] : memref<1x32xf32, #tpu.memory_space<vmem>>, vector<1x32xf32>
    %129 = vector.broadcast %128 : vector<1x32xf32> to vector<8x32xf32>
    %130 = arith.mulf %127, %129 : vector<8x32xf32>
    %c0_52 = arith.constant 0 : index
    %c0_53 = arith.constant 0 : index
    %131 = vector.load %arg12[%c0_52, %c0_53] : memref<1x32xf32, #tpu.memory_space<vmem>>, vector<1x32xf32>
    %132 = vector.broadcast %131 : vector<1x32xf32> to vector<8x32xf32>
    %133 = arith.addf %130, %132 : vector<8x32xf32>
    %c0_54 = arith.constant 0 : index
    %c0_55 = arith.constant 0 : index
    %c0_56 = arith.constant 0 : index
    %c0_57 = arith.constant 0 : index
    %134 = vector.load %arg13[%c0_54, %c0_55, %c0_56, %c0_57] : memref<1x1x8x32xf32, #tpu.memory_space<vmem>>, vector<1x1x8x32xf32>
    %135 = vector.shape_cast %134 : vector<1x1x8x32xf32> to vector<8x32xf32>
    %136 = vector.shape_cast %133 : vector<8x32xf32> to vector<1x1x8x32xf32>
    tpu.vector_store %arg13[%c0_54, %c0_55, %c0_56, %c0_57], %136 {strides = array<i32>} : memref<1x1x8x32xf32, #tpu.memory_space<vmem>>, vector<1x1x8x32xf32>,
    return
  }
  func.func @transform_0(%arg0: i32, %arg1: i32) -> (i32, i32, i32) {
    %c0_i32 = arith.constant 0 : i32
    %c0_i32_0 = arith.constant 0 : i32
    %c0_i32_1 = arith.constant 0 : i32
    return %arg1, %c0_i32, %c0_i32_0 : i32, i32, i32
  }
  func.func @transform_1(%arg0: i32, %arg1: i32) -> (i32, i32, i32) {
    %c0_i32 = arith.constant 0 : i32
    %c0_i32_0 = arith.constant 0 : i32
    %c0_i32_1 = arith.constant 0 : i32
    return %arg1, %c0_i32, %c0_i32_0 : i32, i32, i32
  }
  func.func @transform_2(%arg0: i32, %arg1: i32) -> (i32, i32, i32) {
    %c0_i32 = arith.constant 0 : i32
    %c0_i32_0 = arith.constant 0 : i32
    %c0_i32_1 = arith.constant 0 : i32
    return %arg0, %c0_i32, %c0_i32_0 : i32, i32, i32
  }
  func.func @transform_3(%arg0: i32, %arg1: i32) -> (i32, i32) {
    %c0_i32 = arith.constant 0 : i32
    %c0_i32_0 = arith.constant 0 : i32
    %c0_i32_1 = arith.constant 0 : i32
    return %c0_i32, %c0_i32_0 : i32, i32
  }
  func.func @transform_4(%arg0: i32, %arg1: i32) -> (i32, i32) {
    %c0_i32 = arith.constant 0 : i32
    %c0_i32_0 = arith.constant 0 : i32
    %c0_i32_1 = arith.constant 0 : i32
    return %c0_i32, %c0_i32_0 : i32, i32
  }
  func.func @transform_5(%arg0: i32, %arg1: i32) -> (i32, i32) {
    %c0_i32 = arith.constant 0 : i32
    %c0_i32_0 = arith.constant 0 : i32
    %c0_i32_1 = arith.constant 0 : i32
    return %c0_i32, %c0_i32_0 : i32, i32
  }
  func.func @transform_6(%arg0: i32, %arg1: i32) -> (i32, i32) {
    %c0_i32 = arith.constant 0 : i32
    %c0_i32_0 = arith.constant 0 : i32
    %c0_i32_1 = arith.constant 0 : i32
    return %c0_i32, %c0_i32_0 : i32, i32
  }
  func.func @transform_7(%arg0: i32, %arg1: i32) -> (i32, i32) {
    %c0_i32 = arith.constant 0 : i32
    %c0_i32_0 = arith.constant 0 : i32
    %c0_i32_1 = arith.constant 0 : i32
    return %c0_i32, %c0_i32_0 : i32, i32
  }
  func.func @transform_8(%arg0: i32, %arg1: i32) -> (i32, i32) {
    %c0_i32 = arith.constant 0 : i32
    %c0_i32_0 = arith.constant 0 : i32
    %c0_i32_1 = arith.constant 0 : i32
    return %c0_i32, %c0_i32_0 : i32, i32
  }
  func.func @transform_9(%arg0: i32, %arg1: i32) -> (i32, i32) {
    %c0_i32 = arith.constant 0 : i32
    %c0_i32_0 = arith.constant 0 : i32
    %c0_i32_1 = arith.constant 0 : i32
    return %c0_i32, %c0_i32_0 : i32, i32
  }
  func.func @transform_10(%arg0: i32, %arg1: i32) -> (i32, i32) {
    %c0_i32 = arith.constant 0 : i32
    %c0_i32_0 = arith.constant 0 : i32
    %c0_i32_1 = arith.constant 0 : i32
    return %c0_i32, %c0_i32_0 : i32, i32
  }
  func.func @transform_11(%arg0: i32, %arg1: i32) -> (i32, i32, i32, i32) {
    %c0_i32 = arith.constant 0 : i32
    %c0_i32_0 = arith.constant 0 : i32
    %c0_i32_1 = arith.constant 0 : i32
    return %arg0, %arg1, %c0_i32, %c0_i32_0 : i32, i32, i32, i32
  }
}

module attributes {stable_mosaic.version = 11 : i64} {
  func.func @_mha_ln_kernel(%arg0: i32, %arg1: i32, %arg2: memref<1x1x8x32xf32, #tpu.memory_space<vmem>>, %arg3: memref<1x1x8x32xf32, #tpu.memory_space<vmem>>, %arg4: memref<1x8x8xf32, #tpu.memory_space<vmem>>, %arg5: memref<32x32xf32, #tpu.memory_space<vmem>>, %arg6: memref<1x32xf32, #tpu.memory_space<vmem>>, %arg7: memref<32x64xf32, #tpu.memory_space<vmem>>, %arg8: memref<1x64xf32, #tpu.memory_space<vmem>>, %arg9: memref<32x32xf32, #tpu.memory_space<vmem>>, %arg10: memref<1x32xf32, #tpu.memory_space<vmem>>, %arg11: memref<1x32xf32, #tpu.memory_space<vmem>>, %arg12: memref<1x32xf32, #tpu.memory_space<vmem>>, %arg13: memref<1x1x8x32xf32, #tpu.memory_space<vmem>>) attributes {dimension_semantics = [#tpu.dimension_semantics<parallel>, #tpu.dimension_semantics<parallel>], iteration_bounds = array<i64: 2, 2>, scalar_prefetch = 0 : i64, scratch_operands = 0 : i64, tpu.core_type = #tpu.core_type<tc>, window_params = [{transform_indices = @transform_0, window_bounds = array<i64: 1, 1, 8, 32>}, {transform_indices = @transform_1, window_bounds = array<i64: 1, 1, 8, 32>}, {transform_indices = @transform_2, window_bounds = array<i64: 1, 8, 8>}, {pipeline_mode = #tpu.pipeline_mode<synchronous>, transform_indices = @transform_3, window_bounds = array<i64: 32, 32>}, {pipeline_mode = #tpu.pipeline_mode<synchronous>, transform_indices = @transform_4, window_bounds = array<i64: 1, 32>}, {pipeline_mode = #tpu.pipeline_mode<synchronous>, transform_indices = @transform_5, window_bounds = array<i64: 32, 64>}, {pipeline_mode = #tpu.pipeline_mode<synchronous>, transform_indices = @transform_6, window_bounds = array<i64: 1, 64>}, {pipeline_mode = #tpu.pipeline_mode<synchronous>, transform_indices = @transform_7, window_bounds = array<i64: 32, 32>}, {pipeline_mode = #tpu.pipeline_mode<synchronous>, transform_indices = @transform_8, window_bounds = array<i64: 1, 32>}, {pipeline_mode = #tpu.pipeline_mode<synchronous>, transform_indices = @transform_9, window_bounds = array<i64: 1, 32>}, {pipeline_mode = #tpu.pipeline_mode<synchronous>, transform_indices = @transform_10, window_bounds = array<i64: 1, 32>}, {transform_indices = @transform_11, window_bounds = array<i64: 1, 1, 8, 32>}]} {
    %c0 = arith.constant 0 : index
    %c0_0 = arith.constant 0 : index
    %c0_1 = arith.constant 0 : index
    %c0_2 = arith.constant 0 : index
    %0 = vector.load %arg2[%c0, %c0_0, %c0_1, %c0_2] : memref<1x1x8x32xf32, #tpu.memory_space<vmem>>, vector<1x1x8x32xf32>
    %1 = vector.shape_cast %0 : vector<1x1x8x32xf32> to vector<8x32xf32>
    %c0_3 = arith.constant 0 : index
    %c0_4 = arith.constant 0 : index
    %c0_5 = arith.constant 0 : index
    %c0_6 = arith.constant 0 : index
    %2 = vector.load %arg3[%c0_3, %c0_4, %c0_5, %c0_6] : memref<1x1x8x32xf32, #tpu.memory_space<vmem>>, vector<1x1x8x32xf32>
    %3 = vector.shape_cast %2 : vector<1x1x8x32xf32> to vector<8x32xf32>
    %c0_7 = arith.constant 0 : index
    %c0_8 = arith.constant 0 : index
    %c0_9 = arith.constant 0 : index
    %4 = vector.load %arg4[%c0_7, %c0_8, %c0_9] : memref<1x8x8xf32, #tpu.memory_space<vmem>>, vector<1x8x8xf32>
    %5 = vector.shape_cast %4 : vector<1x8x8xf32> to vector<8x8xf32>
    %c0_10 = arith.constant 0 : index
    %c0_11 = arith.constant 0 : index
    %6 = vector.load %arg5[%c0_10, %c0_11] : memref<32x32xf32, #tpu.memory_space<vmem>>, vector<32x32xf32>
    %cst = arith.constant dense<0.000000e+00> : vector<8x32xf32>
    %7 = tpu.matmul %1, %6, %cst {dimension_numbers = #tpu.dot_dimension_numbers<[1], [0], [0], [1], [0, 0, 1, 1], [], []>} : vector<8x32xf32>, vector<32x32xf32>, vector<8x32xf32> -> vector<8x32xf32>
    %c0_12 = arith.constant 0 : index
    %c0_13 = arith.constant 0 : index
    %8 = vector.load %arg6[%c0_12, %c0_13] : memref<1x32xf32, #tpu.memory_space<vmem>>, vector<1x32xf32>
    %9 = vector.broadcast %8 : vector<1x32xf32> to vector<8x32xf32>
    %10 = arith.addf %7, %9 : vector<8x32xf32>
    %c0_14 = arith.constant 0 : index
    %c0_15 = arith.constant 0 : index
    %11 = vector.load %arg7[%c0_14, %c0_15] : memref<32x64xf32, #tpu.memory_space<vmem>>, vector<32x64xf32>
    %cst_16 = arith.constant dense<0.000000e+00> : vector<8x64xf32>
    %12 = tpu.matmul %3, %11, %cst_16 {dimension_numbers = #tpu.dot_dimension_numbers<[1], [0], [0], [1], [0, 0, 1, 1], [], []>} : vector<8x32xf32>, vector<32x64xf32>, vector<8x64xf32> -> vector<8x64xf32>
    %c0_17 = arith.constant 0 : index
    %c0_18 = arith.constant 0 : index
    %13 = vector.load %arg8[%c0_17, %c0_18] : memref<1x64xf32, #tpu.memory_space<vmem>>, vector<1x64xf32>
    %14 = vector.broadcast %13 : vector<1x64xf32> to vector<8x64xf32>
    %15 = arith.addf %12, %14 : vector<8x64xf32>
    %16 = vector.extract_strided_slice %15 {offsets = [0, 0], sizes = [8, 32], strides = [1, 1]} : vector<8x64xf32> to vector<8x32xf32>
    %17 = vector.extract_strided_slice %15 {offsets = [0, 32], sizes = [8, 32], strides = [1, 1]} : vector<8x64xf32> to vector<8x32xf32>
    %c0_19 = arith.constant 0 : index
    %c0_20 = arith.constant 0 : index
    %18 = vector.load %arg9[%c0_19, %c0_20] : memref<32x32xf32, #tpu.memory_space<vmem>>, vector<32x32xf32>
    %19 = vector.extract_strided_slice %10 {offsets = [0, 0], sizes = [8, 8], strides = [1, 1]} : vector<8x32xf32> to vector<8x8xf32>
    %20 = vector.extract_strided_slice %16 {offsets = [0, 0], sizes = [8, 8], strides = [1, 1]} : vector<8x32xf32> to vector<8x8xf32>
    %21 = vector.extract_strided_slice %17 {offsets = [0, 0], sizes = [8, 8], strides = [1, 1]} : vector<8x32xf32> to vector<8x8xf32>
    %22 = tpu.transpose %20, [1, 0] : vector<8x8xf32> -> vector<8x8xf32>
    %cst_21 = arith.constant dense<0.000000e+00> : vector<8x8xf32>
    %23 = tpu.matmul %19, %22, %cst_21 {dimension_numbers = #tpu.dot_dimension_numbers<[1], [0], [0], [1], [0, 0, 1, 1], [], []>} : vector<8x8xf32>, vector<8x8xf32>, vector<8x8xf32> -> vector<8x8xf32>
    %cst_22 = arith.constant 2.82842708 : f32
    %24 = vector.broadcast %cst_22 : f32 to vector<8x8xf32>
    %25 = arith.divf %23, %24 : vector<8x8xf32>
    %26 = arith.addf %25, %5 : vector<8x8xf32>
    %cst_23 = arith.constant dense<0xFF800000> : vector<8xf32>
    %27 = vector.multi_reduction <maximumf>, %26, %cst_23 [1] : vector<8x8xf32> to vector<8xf32>
    %28 = vector.shape_cast %27 : vector<8xf32> to vector<8x1xf32>
    %29 = vector.broadcast %28 : vector<8x1xf32> to vector<8x8xf32>
    %30 = arith.subf %26, %29 : vector<8x8xf32>
    %31 = math.exp %30 : vector<8x8xf32>
    %cst_24 = arith.constant dense<0.000000e+00> : vector<8xf32>
    %32 = vector.multi_reduction <add>, %31, %cst_24 [1] : vector<8x8xf32> to vector<8xf32>
    %33 = vector.shape_cast %32 : vector<8xf32> to vector<8x1xf32>
    %34 = vector.broadcast %33 : vector<8x1xf32> to vector<8x8xf32>
    %35 = arith.divf %31, %34 : vector<8x8xf32>
    %cst_25 = arith.constant dense<0.000000e+00> : vector<8x8xf32>
    %36 = tpu.matmul %35, %21, %cst_25 {dimension_numbers = #tpu.dot_dimension_numbers<[1], [0], [0], [1], [0, 0, 1, 1], [], []>} : vector<8x8xf32>, vector<8x8xf32>, vector<8x8xf32> -> vector<8x8xf32>
    %37 = vector.extract_strided_slice %18 {offsets = [0, 0], sizes = [8, 32], strides = [1, 1]} : vector<32x32xf32> to vector<8x32xf32>
    %cst_26 = arith.constant dense<0.000000e+00> : vector<8x32xf32>
    %38 = tpu.matmul %36, %37, %cst_26 {dimension_numbers = #tpu.dot_dimension_numbers<[1], [0], [0], [1], [0, 0, 1, 1], [], []>} : vector<8x8xf32>, vector<8x32xf32>, vector<8x32xf32> -> vector<8x32xf32>
    %39 = vector.extract_strided_slice %10 {offsets = [0, 8], sizes = [8, 8], strides = [1, 1]} : vector<8x32xf32> to vector<8x8xf32>
    %40 = vector.extract_strided_slice %16 {offsets = [0, 8], sizes = [8, 8], strides = [1, 1]} : vector<8x32xf32> to vector<8x8xf32>
    %41 = vector.extract_strided_slice %17 {offsets = [0, 8], sizes = [8, 8], strides = [1, 1]} : vector<8x32xf32> to vector<8x8xf32>
    %42 = tpu.transpose %40, [1, 0] : vector<8x8xf32> -> vector<8x8xf32>
    %cst_27 = arith.constant dense<0.000000e+00> : vector<8x8xf32>
    %43 = tpu.matmul %39, %42, %cst_27 {dimension_numbers = #tpu.dot_dimension_numbers<[1], [0], [0], [1], [0, 0, 1, 1], [], []>} : vector<8x8xf32>, vector<8x8xf32>, vector<8x8xf32> -> vector<8x8xf32>
    %cst_28 = arith.constant 2.82842708 : f32
    %44 = vector.broadcast %cst_28 : f32 to vector<8x8xf32>
    %45 = arith.divf %43, %44 : vector<8x8xf32>
    %46 = arith.addf %45, %5 : vector<8x8xf32>
    %cst_29 = arith.constant dense<0xFF800000> : vector<8xf32>
    %47 = vector.multi_reduction <maximumf>, %46, %cst_29 [1] : vector<8x8xf32> to vector<8xf32>
    %48 = vector.shape_cast %47 : vector<8xf32> to vector<8x1xf32>
    %49 = vector.broadcast %48 : vector<8x1xf32> to vector<8x8xf32>
    %50 = arith.subf %46, %49 : vector<8x8xf32>
    %51 = math.exp %50 : vector<8x8xf32>
    %cst_30 = arith.constant dense<0.000000e+00> : vector<8xf32>
    %52 = vector.multi_reduction <add>, %51, %cst_30 [1] : vector<8x8xf32> to vector<8xf32>
    %53 = vector.shape_cast %52 : vector<8xf32> to vector<8x1xf32>
    %54 = vector.broadcast %53 : vector<8x1xf32> to vector<8x8xf32>
    %55 = arith.divf %51, %54 : vector<8x8xf32>
    %cst_31 = arith.constant dense<0.000000e+00> : vector<8x8xf32>
    %56 = tpu.matmul %55, %41, %cst_31 {dimension_numbers = #tpu.dot_dimension_numbers<[1], [0], [0], [1], [0, 0, 1, 1], [], []>} : vector<8x8xf32>, vector<8x8xf32>, vector<8x8xf32> -> vector<8x8xf32>
    %57 = vector.extract_strided_slice %18 {offsets = [8, 0], sizes = [8, 32], strides = [1, 1]} : vector<32x32xf32> to vector<8x32xf32>
    %cst_32 = arith.constant dense<0.000000e+00> : vector<8x32xf32>
    %58 = tpu.matmul %56, %57, %cst_32 {dimension_numbers = #tpu.dot_dimension_numbers<[1], [0], [0], [1], [0, 0, 1, 1], [], []>} : vector<8x8xf32>, vector<8x32xf32>, vector<8x32xf32> -> vector<8x32xf32>
    %59 = arith.addf %38, %58 : vector<8x32xf32>
    %60 = vector.extract_strided_slice %10 {offsets = [0, 16], sizes = [8, 8], strides = [1, 1]} : vector<8x32xf32> to vector<8x8xf32>
    %61 = vector.extract_strided_slice %16 {offsets = [0, 16], sizes = [8, 8], strides = [1, 1]} : vector<8x32xf32> to vector<8x8xf32>
    %62 = vector.extract_strided_slice %17 {offsets = [0, 16], sizes = [8, 8], strides = [1, 1]} : vector<8x32xf32> to vector<8x8xf32>
    %63 = tpu.transpose %61, [1, 0] : vector<8x8xf32> -> vector<8x8xf32>
    %cst_33 = arith.constant dense<0.000000e+00> : vector<8x8xf32>
    %64 = tpu.matmul %60, %63, %cst_33 {dimension_numbers = #tpu.dot_dimension_numbers<[1], [0], [0], [1], [0, 0, 1, 1], [], []>} : vector<8x8xf32>, vector<8x8xf32>, vector<8x8xf32> -> vector<8x8xf32>
    %cst_34 = arith.constant 2.82842708 : f32
    %65 = vector.broadcast %cst_34 : f32 to vector<8x8xf32>
    %66 = arith.divf %64, %65 : vector<8x8xf32>
    %67 = arith.addf %66, %5 : vector<8x8xf32>
    %cst_35 = arith.constant dense<0xFF800000> : vector<8xf32>
    %68 = vector.multi_reduction <maximumf>, %67, %cst_35 [1] : vector<8x8xf32> to vector<8xf32>
    %69 = vector.shape_cast %68 : vector<8xf32> to vector<8x1xf32>
    %70 = vector.broadcast %69 : vector<8x1xf32> to vector<8x8xf32>
    %71 = arith.subf %67, %70 : vector<8x8xf32>
    %72 = math.exp %71 : vector<8x8xf32>
    %cst_36 = arith.constant dense<0.000000e+00> : vector<8xf32>
    %73 = vector.multi_reduction <add>, %72, %cst_36 [1] : vector<8x8xf32> to vector<8xf32>
    %74 = vector.shape_cast %73 : vector<8xf32> to vector<8x1xf32>
    %75 = vector.broadcast %74 : vector<8x1xf32> to vector<8x8xf32>
    %76 = arith.divf %72, %75 : vector<8x8xf32>
    %cst_37 = arith.constant dense<0.000000e+00> : vector<8x8xf32>
    %77 = tpu.matmul %76, %62, %cst_37 {dimension_numbers = #tpu.dot_dimension_numbers<[1], [0], [0], [1], [0, 0, 1, 1], [], []>} : vector<8x8xf32>, vector<8x8xf32>, vector<8x8xf32> -> vector<8x8xf32>
    %78 = vector.extract_strided_slice %18 {offsets = [16, 0], sizes = [8, 32], strides = [1, 1]} : vector<32x32xf32> to vector<8x32xf32>
    %cst_38 = arith.constant dense<0.000000e+00> : vector<8x32xf32>
    %79 = tpu.matmul %77, %78, %cst_38 {dimension_numbers = #tpu.dot_dimension_numbers<[1], [0], [0], [1], [0, 0, 1, 1], [], []>} : vector<8x8xf32>, vector<8x32xf32>, vector<8x32xf32> -> vector<8x32xf32>
    %80 = arith.addf %59, %79 : vector<8x32xf32>
    %81 = vector.extract_strided_slice %10 {offsets = [0, 24], sizes = [8, 8], strides = [1, 1]} : vector<8x32xf32> to vector<8x8xf32>
    %82 = vector.extract_strided_slice %16 {offsets = [0, 24], sizes = [8, 8], strides = [1, 1]} : vector<8x32xf32> to vector<8x8xf32>
    %83 = vector.extract_strided_slice %17 {offsets = [0, 24], sizes = [8, 8], strides = [1, 1]} : vector<8x32xf32> to vector<8x8xf32>
    %84 = tpu.transpose %82, [1, 0] : vector<8x8xf32> -> vector<8x8xf32>
    %cst_39 = arith.constant dense<0.000000e+00> : vector<8x8xf32>
    %85 = tpu.matmul %81, %84, %cst_39 {dimension_numbers = #tpu.dot_dimension_numbers<[1], [0], [0], [1], [0, 0, 1, 1], [], []>} : vector<8x8xf32>, vector<8x8xf32>, vector<8x8xf32> -> vector<8x8xf32>
    %cst_40 = arith.constant 2.82842708 : f32
    %86 = vector.broadcast %cst_40 : f32 to vector<8x8xf32>
    %87 = arith.divf %85, %86 : vector<8x8xf32>
    %88 = arith.addf %87, %5 : vector<8x8xf32>
    %cst_41 = arith.constant dense<0xFF800000> : vector<8xf32>
    %89 = vector.multi_reduction <maximumf>, %88, %cst_41 [1] : vector<8x8xf32> to vector<8xf32>
    %90 = vector.shape_cast %89 : vector<8xf32> to vector<8x1xf32>
    %91 = vector.broadcast %90 : vector<8x1xf32> to vector<8x8xf32>
    %92 = arith.subf %88, %91 : vector<8x8xf32>
    %93 = math.exp %92 : vector<8x8xf32>
    %cst_42 = arith.constant dense<0.000000e+00> : vector<8xf32>
    %94 = vector.multi_reduction <add>, %93, %cst_42 [1] : vector<8x8xf32> to vector<8xf32>
    %95 = vector.shape_cast %94 : vector<8xf32> to vector<8x1xf32>
    %96 = vector.broadcast %95 : vector<8x1xf32> to vector<8x8xf32>
    %97 = arith.divf %93, %96 : vector<8x8xf32>
    %cst_43 = arith.constant dense<0.000000e+00> : vector<8x8xf32>
    %98 = tpu.matmul %97, %83, %cst_43 {dimension_numbers = #tpu.dot_dimension_numbers<[1], [0], [0], [1], [0, 0, 1, 1], [], []>} : vector<8x8xf32>, vector<8x8xf32>, vector<8x8xf32> -> vector<8x8xf32>
    %99 = vector.extract_strided_slice %18 {offsets = [24, 0], sizes = [8, 32], strides = [1, 1]} : vector<32x32xf32> to vector<8x32xf32>
    %cst_44 = arith.constant dense<0.000000e+00> : vector<8x32xf32>
    %100 = tpu.matmul %98, %99, %cst_44 {dimension_numbers = #tpu.dot_dimension_numbers<[1], [0], [0], [1], [0, 0, 1, 1], [], []>} : vector<8x8xf32>, vector<8x32xf32>, vector<8x32xf32> -> vector<8x32xf32>
    %101 = arith.addf %80, %100 : vector<8x32xf32>
    %c0_45 = arith.constant 0 : index
    %c0_46 = arith.constant 0 : index
    %102 = vector.load %arg10[%c0_45, %c0_46] : memref<1x32xf32, #tpu.memory_space<vmem>>, vector<1x32xf32>
    %103 = vector.broadcast %102 : vector<1x32xf32> to vector<8x32xf32>
    %104 = arith.addf %101, %103 : vector<8x32xf32>
    %105 = arith.addf %1, %104 : vector<8x32xf32>
    %cst_47 = arith.constant dense<0.000000e+00> : vector<8xf32>
    %106 = vector.multi_reduction <add>, %105, %cst_47 [1] : vector<8x32xf32> to vector<8xf32>
    %107 = vector.shape_cast %106 : vector<8xf32> to vector<8x1xf32>
    %cst_48 = arith.constant 3.200000e+01 : f32
    %108 = vector.broadcast %cst_48 : f32 to vector<8x1xf32>
    %109 = arith.divf %107, %108 : vector<8x1xf32>
    %110 = vector.broadcast %109 : vector<8x1xf32> to vector<8x32xf32>
    %111 = arith.subf %105, %110 : vector<8x32xf32>
    %112 = arith.mulf %111, %111 : vector<8x32xf32>
    %cst_49 = arith.constant dense<0.000000e+00> : vector<8xf32>
    %113 = vector.multi_reduction <add>, %112, %cst_49 [1] : vector<8x32xf32> to vector<8xf32>
    %114 = vector.shape_cast %113 : vector<8xf32> to vector<8x1xf32>
    %cst_50 = arith.constant 3.200000e+01 : f32
    %115 = vector.broadcast %cst_50 : f32 to vector<8x1xf32>
    %116 = arith.divf %114, %115 : vector<8x1xf32>
    %117 = vector.broadcast %109 : vector<8x1xf32> to vector<8x32xf32>
    %118 = arith.subf %105, %117 : vector<8x32xf32>
    %cst_51 = arith.constant 9.99999974E-6 : f32
    %119 = vector.broadcast %cst_51 : f32 to vector<8x1xf32>
    %120 = arith.addf %116, %119 : vector<8x1xf32>
    %121 = math.sqrt %120 : vector<8x1xf32>
    %122 = vector.broadcast %121 : vector<8x1xf32> to vector<8x32xf32>
    %123 = arith.divf %118, %122 : vector<8x32xf32>
    %c0_52 = arith.constant 0 : index
    %c0_53 = arith.constant 0 : index
    %124 = vector.load %arg11[%c0_52, %c0_53] : memref<1x32xf32, #tpu.memory_space<vmem>>, vector<1x32xf32>
    %125 = vector.broadcast %124 : vector<1x32xf32> to vector<8x32xf32>
    %126 = arith.mulf %123, %125 : vector<8x32xf32>
    %c0_54 = arith.constant 0 : index
    %c0_55 = arith.constant 0 : index
    %127 = vector.load %arg12[%c0_54, %c0_55] : memref<1x32xf32, #tpu.memory_space<vmem>>, vector<1x32xf32>
    %128 = vector.broadcast %127 : vector<1x32xf32> to vector<8x32xf32>
    %129 = arith.addf %126, %128 : vector<8x32xf32>
    %c0_56 = arith.constant 0 : index
    %c0_57 = arith.constant 0 : index
    %c0_58 = arith.constant 0 : index
    %c0_59 = arith.constant 0 : index
    %130 = vector.load %arg13[%c0_56, %c0_57, %c0_58, %c0_59] : memref<1x1x8x32xf32, #tpu.memory_space<vmem>>, vector<1x1x8x32xf32>
    %131 = vector.shape_cast %130 : vector<1x1x8x32xf32> to vector<8x32xf32>
    %132 = vector.shape_cast %129 : vector<8x32xf32> to vector<1x1x8x32xf32>
    tpu.vector_store %arg13[%c0_56, %c0_57, %c0_58, %c0_59], %132 {strides = array<i32>} : memref<1x1x8x32xf32, #tpu.memory_space<vmem>>, vector<1x1x8x32xf32>,
    return
  }
  func.func @transform_0(%arg0: i32, %arg1: i32) -> (i32, i32, i32, i32) {
    %c0_i32 = arith.constant 0 : i32
    %c0_i32_0 = arith.constant 0 : i32
    %c0_i32_1 = arith.constant 0 : i32
    return %arg0, %arg1, %c0_i32, %c0_i32_0 : i32, i32, i32, i32
  }
  func.func @transform_1(%arg0: i32, %arg1: i32) -> (i32, i32, i32, i32) {
    %c0_i32 = arith.constant 0 : i32
    %c0_i32_0 = arith.constant 0 : i32
    %c0_i32_1 = arith.constant 0 : i32
    return %arg0, %arg1, %c0_i32, %c0_i32_0 : i32, i32, i32, i32
  }
  func.func @transform_2(%arg0: i32, %arg1: i32) -> (i32, i32, i32) {
    %c0_i32 = arith.constant 0 : i32
    %c0_i32_0 = arith.constant 0 : i32
    %c0_i32_1 = arith.constant 0 : i32
    return %arg0, %c0_i32, %c0_i32_0 : i32, i32, i32
  }
  func.func @transform_3(%arg0: i32, %arg1: i32) -> (i32, i32) {
    %c0_i32 = arith.constant 0 : i32
    %c0_i32_0 = arith.constant 0 : i32
    %c0_i32_1 = arith.constant 0 : i32
    return %c0_i32, %c0_i32_0 : i32, i32
  }
  func.func @transform_4(%arg0: i32, %arg1: i32) -> (i32, i32) {
    %c0_i32 = arith.constant 0 : i32
    %c0_i32_0 = arith.constant 0 : i32
    %c0_i32_1 = arith.constant 0 : i32
    return %c0_i32, %c0_i32_0 : i32, i32
  }
  func.func @transform_5(%arg0: i32, %arg1: i32) -> (i32, i32) {
    %c0_i32 = arith.constant 0 : i32
    %c0_i32_0 = arith.constant 0 : i32
    %c0_i32_1 = arith.constant 0 : i32
    return %c0_i32, %c0_i32_0 : i32, i32
  }
  func.func @transform_6(%arg0: i32, %arg1: i32) -> (i32, i32) {
    %c0_i32 = arith.constant 0 : i32
    %c0_i32_0 = arith.constant 0 : i32
    %c0_i32_1 = arith.constant 0 : i32
    return %c0_i32, %c0_i32_0 : i32, i32
  }
  func.func @transform_7(%arg0: i32, %arg1: i32) -> (i32, i32) {
    %c0_i32 = arith.constant 0 : i32
    %c0_i32_0 = arith.constant 0 : i32
    %c0_i32_1 = arith.constant 0 : i32
    return %c0_i32, %c0_i32_0 : i32, i32
  }
  func.func @transform_8(%arg0: i32, %arg1: i32) -> (i32, i32) {
    %c0_i32 = arith.constant 0 : i32
    %c0_i32_0 = arith.constant 0 : i32
    %c0_i32_1 = arith.constant 0 : i32
    return %c0_i32, %c0_i32_0 : i32, i32
  }
  func.func @transform_9(%arg0: i32, %arg1: i32) -> (i32, i32) {
    %c0_i32 = arith.constant 0 : i32
    %c0_i32_0 = arith.constant 0 : i32
    %c0_i32_1 = arith.constant 0 : i32
    return %c0_i32, %c0_i32_0 : i32, i32
  }
  func.func @transform_10(%arg0: i32, %arg1: i32) -> (i32, i32) {
    %c0_i32 = arith.constant 0 : i32
    %c0_i32_0 = arith.constant 0 : i32
    %c0_i32_1 = arith.constant 0 : i32
    return %c0_i32, %c0_i32_0 : i32, i32
  }
  func.func @transform_11(%arg0: i32, %arg1: i32) -> (i32, i32, i32, i32) {
    %c0_i32 = arith.constant 0 : i32
    %c0_i32_0 = arith.constant 0 : i32
    %c0_i32_1 = arith.constant 0 : i32
    return %arg0, %arg1, %c0_i32, %c0_i32_0 : i32, i32, i32, i32
  }
}

module attributes {stable_mosaic.version = 11 : i64} {
  func.func @_linear_kernel(%arg0: i32, %arg1: memref<32x32xf32, #tpu.memory_space<vmem>>, %arg2: memref<32x32xf32, #tpu.memory_space<vmem>>, %arg3: memref<1x32xf32, #tpu.memory_space<vmem>>, %arg4: memref<32x32xf32, #tpu.memory_space<vmem>>) attributes {dimension_semantics = [#tpu.dimension_semantics<parallel>], iteration_bounds = array<i64: 1>, scalar_prefetch = 0 : i64, scratch_operands = 0 : i64, tpu.core_type = #tpu.core_type<tc>, window_params = [{transform_indices = @transform_0, window_bounds = array<i64: 32, 32>}, {pipeline_mode = #tpu.pipeline_mode<synchronous>, transform_indices = @transform_1, window_bounds = array<i64: 32, 32>}, {pipeline_mode = #tpu.pipeline_mode<synchronous>, transform_indices = @transform_2, window_bounds = array<i64: 1, 32>}, {transform_indices = @transform_3, window_bounds = array<i64: 32, 32>}]} {
    %c0 = arith.constant 0 : index
    %c0_0 = arith.constant 0 : index
    %0 = vector.load %arg1[%c0, %c0_0] : memref<32x32xf32, #tpu.memory_space<vmem>>, vector<32x32xf32>
    %c0_1 = arith.constant 0 : index
    %c0_2 = arith.constant 0 : index
    %1 = vector.load %arg2[%c0_1, %c0_2] : memref<32x32xf32, #tpu.memory_space<vmem>>, vector<32x32xf32>
    %cst = arith.constant dense<0.000000e+00> : vector<32x32xf32>
    %2 = tpu.matmul %0, %1, %cst {dimension_numbers = #tpu.dot_dimension_numbers<[1], [0], [0], [1], [0, 0, 1, 1], [], []>} : vector<32x32xf32>, vector<32x32xf32>, vector<32x32xf32> -> vector<32x32xf32>
    %c0_3 = arith.constant 0 : index
    %c0_4 = arith.constant 0 : index
    %3 = vector.load %arg3[%c0_3, %c0_4] : memref<1x32xf32, #tpu.memory_space<vmem>>, vector<1x32xf32>
    %4 = vector.broadcast %3 : vector<1x32xf32> to vector<32x32xf32>
    %5 = arith.addf %2, %4 : vector<32x32xf32>
    %c0_5 = arith.constant 0 : index
    %c0_6 = arith.constant 0 : index
    %6 = vector.load %arg4[%c0_5, %c0_6] : memref<32x32xf32, #tpu.memory_space<vmem>>, vector<32x32xf32>
    tpu.vector_store %arg4[%c0_5, %c0_6], %5 {strides = array<i32>} : memref<32x32xf32, #tpu.memory_space<vmem>>, vector<32x32xf32>,
    return
  }
  func.func @transform_0(%arg0: i32) -> (i32, i32) {
    %c0_i32 = arith.constant 0 : i32
    %c0_i32_0 = arith.constant 0 : i32
    return %arg0, %c0_i32 : i32, i32
  }
  func.func @transform_1(%arg0: i32) -> (i32, i32) {
    %c0_i32 = arith.constant 0 : i32
    %c0_i32_0 = arith.constant 0 : i32
    %c0_i32_1 = arith.constant 0 : i32
    return %c0_i32, %c0_i32_0 : i32, i32
  }
  func.func @transform_2(%arg0: i32) -> (i32, i32) {
    %c0_i32 = arith.constant 0 : i32
    %c0_i32_0 = arith.constant 0 : i32
    %c0_i32_1 = arith.constant 0 : i32
    return %c0_i32, %c0_i32_0 : i32, i32
  }
  func.func @transform_3(%arg0: i32) -> (i32, i32) {
    %c0_i32 = arith.constant 0 : i32
    %c0_i32_0 = arith.constant 0 : i32
    return %arg0, %c0_i32 : i32, i32
  }
}

</mosaic_0001>

<bundles_post_ra>
// kernel: transformer_forward.12
= control target key start
LH: loop header
LB: loop body
LE: loop exit
PB: predicated region body
PF: predicated region fallthrough
CT: control target
= control target key end

     0   :  { %vm41_vm0 = vcmask 261120   ;;  %vm158_vm1 = vcmask 523264   ;;  %s607_s1 = inlined_call_operand.vmem [shape: f32[32,64], index: 1, kind: input, shape index: {}]   ;;  %s608_s0 = inlined_call_operand.vmem [shape: f32[32,32], index: 0, kind: input, shape index: {}]   ;;  %s609_s3 = inlined_call_operand.vmem [shape: f32[64,32], index: 3, kind: input, shape index: {}]   ;;  %s610_s2 = inlined_call_operand.vmem [shape: f32[1,64], index: 2, kind: input, shape index: {}]   ;;  %s611_s4 = inlined_call_operand.vmem [shape: f32[1,32], index: 4, kind: input, shape index: {}]   ;;  %s612_s5 = inlined_call_operand.vmem [shape: f32[1,32], index: 5, kind: input, shape index: {}]   ;;  %s613_s6 = inlined_call_operand.vmem [shape: f32[1,32], index: 6, kind: input, shape index: {}]   ;;  %s614_s7 = inlined_call_operand.vmem [shape: f32[32,32], index: 7, kind: output, shape index: {}]  }
   0x1   :  { %v33_v0 = vld [vmem:[%s607_s1 + $0x18] sm:$0xff]  ;;  %v32_v1 = vld [vmem:[%s607_s1 + $0x10] sm:$0xff]  ;;  %v504_v2 = vld [vmem:[%s608_s0] sm:$0xff] }
   0x2   :  { %403 = vmatprep.subr.mxu0 %v33_v0  ;;  %v31_v3 = vld [vmem:[%s607_s1 + $0x8] sm:$0xff]  ;;  %411 = vmatprep.mubr.msk.f32.mxu0 %vm41_vm0, %v504_v2  ;;  %v150_v4 = vld [vmem:[%s609_s3 + $0x38] sm:$0xff]  ;;  %v149_v5 = vld [vmem:[%s609_s3 + $0x30] sm:$0xff] }
   0x3   :  { %404 = vmatpush3.msra.mxu0 %v33_v0  ;;  %417 = vmatprep.subr.mxu1 %v150_v4  ;;  %v30_v6 = vld [vmem:[%s607_s1] sm:$0xff]  ;;  %v148_v7 = vld [vmem:[%s609_s3 + $0x28] sm:$0xff]  ;;  %v28_v10 = vld [vmem:[%s608_s0 + $0x10] sm:$0xff] }
   0x4   :  { %405 = vmatprep.subr.mxu0 %v32_v1  ;;  %418 = vmatpush3.msra.mxu1 %v150_v4  ;;  %v27_v8 = vld [vmem:[%s608_s0 + $0x8] sm:$0xff]  ;;  %v147_v9 = vld [vmem:[%s609_s3 + $0x20] sm:$0xff]  ;;  %v29_v11 = vld [vmem:[%s608_s0 + $0x18] sm:$0xff] }
   0x5   :  { %406 = vmatpush3.msra.mxu0 %v32_v1  ;;  %419 = vmatprep.subr.mxu1 %v149_v5  ;;  %v146_v12 = vld [vmem:[%s609_s3 + $0x18] sm:$0xff]  ;;  %v145_v13 = vld [vmem:[%s609_s3 + $0x10] sm:$0xff]  ;;  %v144_v14 = vld [vmem:[%s609_s3 + $0x8] sm:$0xff] }
   0x6   :  { %407 = vmatprep.subr.mxu0 %v31_v3  ;;  %420 = vmatpush3.msra.mxu1 %v149_v5  ;;  %v143_v15 = vld [vmem:[%s609_s3] sm:$0xff] }
   0x7   :  { %408 = vmatpush3.msra.mxu0 %v31_v3  ;;  %421 = vmatprep.subr.mxu1 %v148_v7  ;;  %v371_v16 = vld [vmem:[%s610_s2] ss:$0 sm:$0xff] }
   0x8   :  { %409 = vmatprep.subr.mxu0 %v30_v6  ;;  %422 = vmatpush3.msra.mxu1 %v148_v7  ;;  %v376_v30 = vld [vmem:[%s611_s4] ss:$0 sm:$0xff] }
   0x9   :  { %410 = vmatpush3.msra.mxu0 %v30_v6  ;;  %423 = vmatprep.subr.mxu1 %v147_v9 }
   0xa   :  { %412 = vmatmul.mubr.msk.f32.vlgmr.msra.gmra.mxu0 %vm41_vm0, %v27_v8  ;;  %424 = vmatpush3.msra.mxu1 %v147_v9 }
   0xb   :  { %414 = vmatprep.mubr.msk.f32.mxu0 %vm41_vm0, %v28_v10  ;;  %425 = vmatprep.subr.mxu1 %v146_v12 }
   0xc   :  { %426 = vmatpush3.msra.mxu1 %v146_v12 }
   0xd   :  { %427 = vmatprep.subr.mxu1 %v145_v13 }
   0xe   :  { %415 = vmatmul.mubr.msk.f32.gmra.mxu0 %vm41_vm0, %v29_v11  ;;  %428 = vmatpush3.msra.mxu1 %v145_v13 }
   0xf   :  { %429 = vmatprep.subr.mxu1 %v144_v14 }
  0x10   :  { %430 = vmatpush3.msra.mxu1 %v144_v14 }
  0x11   :  { %431 = vmatprep.subr.mxu1 %v143_v15 }
  0x12   :  { %432 = vmatpush3.msra.mxu1 %v143_v15 }
  0xca   :  { %v413_v17 = vpop.f32.mrf.mxu0 }
  0xcb   :  { %v126_v18 = vadd.f32 %v413_v17, %v371_v16 }
  0xcc   :  { %v120_v19 = vpop.f32.mrf.mxu0 }
  0xcd   :  { %v121_v20 = vadd.f32 %v371_v16, %v120_v19  ;;  %v140_v23 = vmax.f32 %v126_v18, 0.0 }
  0xce   :  { %v416_v21 = vpop.f32.mrf.mxu0 }
  0xcf   :  { %v139_v22 = vmax.f32 %v121_v20, 0.0  ;;  %v136_v24 = vadd.f32 %v416_v21, %v371_v16 }
  0xd0   :  { %v130_v25 = vpop.f32.mrf.mxu0 }
  0xd1   :  { %v131_v26 = vadd.f32 %v371_v16, %v130_v25  ;;  %433 = vmatprep.mubr.msk.f32.mxu1 %vm158_vm1, %v139_v22  ;;  %v142_v28 = vmax.f32 %v136_v24, 0.0 }
  0xd2   :  { %434 = vmatmul.mubr.msk.f32.vlgmr.msra.gmra.mxu1 %vm158_vm1, %v140_v23 }
  0xd3   :  { %v141_v27 = vmax.f32 %v131_v26, 0.0 }
  0xd5   :  { %436 = vmatprep.mubr.msk.f32.mxu1 %vm158_vm1, %v141_v27 }
  0xd6   :  { %437 = vmatmul.mubr.msk.f32.gmra.mxu1 %vm158_vm1, %v142_v28 }
 0x192   :  { %v435_v29 = vpop.f32.mrf.mxu1 }
 0x193   :  { %v243_v32 = vadd.f32 %v435_v29, %v376_v30 }
 0x194   :  { %v237_v31 = vpop.f32.mrf.mxu1 }
 0x195   :  { %v238_v33 = vadd.f32 %v376_v30, %v237_v31  ;;  %v257_v40 = vadd.f32 %v243_v32, %v27_v8 }
 0x196   :  { %v438_v34 = vpop.f32.mrf.mxu1 }
 0x197   :  { %v256_v35 = vadd.f32 %v238_v33, %v504_v2  ;;  %v253_v37 = vadd.f32 %v438_v34, %v376_v30  ;;  %v263_v43 = vsel %vm41_vm0, %v257_v40, 0.0 }
 0x198   :  { %v247_v36 = vpop.f32.mrf.mxu1 }
 0x199   :  { %v248_v38 = vadd.f32 %v376_v30, %v247_v36  ;;  %v260_v39 = vsel %vm41_vm0, %v256_v35, 0.0  ;;  %v259_v44 = vadd.f32 %v253_v37, %v29_v11  ;;  %v382_v37 = vld [vmem:[%s613_s6] ss:$0 sm:$0xff] }
 0x19a   :  { %261 = vadd.xlane.f32.xlu0 %v260_v39 }
 0x19b   :  { %v258_v41 = vadd.f32 %v248_v38, %v28_v10  ;;  %v269_v45 = vsel %vm41_vm0, %v259_v44, 0.0 }
 0x19d   :  { %v266_v42 = vsel %vm41_vm0, %v258_v41, 0.0 }
 0x19e   :  { %267 = vadd.xlane.f32.xlu1 %v266_v42  ;;  %264 = vadd.xlane.f32.xlu0 %v263_v43 }
 0x1a2   :  { %270 = vadd.xlane.f32.xlu1 %v269_v45 }
 0x223   :  { %v262_v46 = vpop.xlane.xlu0 %261 }
 0x224   :  { %v273_v47 = vmul.f32 0.03125, %v262_v46 }
 0x226   :  { %v561_v48 = vsub.f32 %v256_v35, %v273_v47  ;;  %v381_v35 = vld [vmem:[%s612_s5] ss:$0 sm:$0xff] }
 0x227   :  { %v268_v49 = vpop.xlane.xlu1 %267  ;;  %v265_v50 = vpop.xlane.xlu0 %264 }
 0x228   :  { %v275_v51 = vmul.f32 0.03125, %v268_v49  ;;  %v274_v52 = vmul.f32 0.03125, %v265_v50  ;;  %v281_v53 = vmul.f32 %v561_v48, %v561_v48 }
 0x22a   :  { %v565_v54 = vsub.f32 %v258_v41, %v275_v51  ;;  %v567_v55 = vsub.f32 %v257_v40, %v274_v52  ;;  %v285_v56 = vsel %vm41_vm0, %v281_v53, 0.0 }
 0x22b   :  { %v271_v57 = vpop.xlane.xlu1 %270  ;;  %286 = vadd.xlane.f32.xlu0 %v285_v56 }
 0x22c   :  { %v276_v58 = vmul.f32 0.03125, %v271_v57  ;;  %v283_v59 = vmul.f32 %v565_v54, %v565_v54  ;;  %v282_v60 = vmul.f32 %v567_v55, %v567_v55 }
 0x22e   :  { %v574_v61 = vsub.f32 %v259_v44, %v276_v58  ;;  %v291_v62 = vsel %vm41_vm0, %v283_v59, 0.0  ;;  %v288_v63 = vsel %vm41_vm0, %v282_v60, 0.0 }
 0x22f   :  { %292 = vadd.xlane.f32.xlu0 %v291_v62  ;;  %289 = vadd.xlane.f32.xlu1 %v288_v63 }
 0x230   :  { %v284_v0 = vmul.f32 %v574_v61, %v574_v61 }
 0x232   :  { %v294_v1 = vsel %vm41_vm0, %v284_v0, 0.0 }
 0x233   :  { %295 = vadd.xlane.f32.xlu1 %v294_v1 }
 0x2b4   :  { %v287_v2 = vpop.xlane.xlu0 %286 }
 0x2b5   :  { %v297_v3 = vmul.f32 0.03125, %v287_v2 }
 0x2b7   :  { %v301_v4 = vadd.f32 1e-05, %v297_v3 }
 0x2b8   :  { %v290_v5 = vpop.xlane.xlu1 %289  ;;  %v293_v6 = vpop.xlane.xlu0 %292 }
 0x2b9   :  { %439 = vrsqrt.f32 %v301_v4  ;;  %v298_v7 = vmul.f32 0.03125, %v290_v5  ;;  %v299_v8 = vmul.f32 0.03125, %v293_v6  ;;  %vm307_vm2 = vcmp.eq.f32.partialorder %v301_v4, inf }
 0x2ba   :  { %v310_v16 = vand.u32 2147483648, %v301_v4  ;;  %vm309_vm3 = vcmp.eq.f32.partialorder %v301_v4, 0.0 }
 0x2bb   :  { %v302_v9 = vadd.f32 1e-05, %v298_v7  ;;  %v303_v10 = vadd.f32 1e-05, %v299_v8 }
 0x2bc   :  { %v296_v11 = vpop.xlane.xlu1 %295 }
 0x2bd   :  { %v300_v12 = vmul.f32 0.03125, %v296_v11  ;;  %441 = vrsqrt.f32 %v302_v9  ;;  %vm314_vm4 = vcmp.eq.f32.partialorder %v302_v9, inf  ;;  %v317_v22 = vand.u32 2147483648, %v302_v9 }
 0x2be   :  { %443 = vrsqrt.f32 %v303_v10  ;;  %vm316_vm5 = vcmp.eq.f32.partialorder %v302_v9, 0.0  ;;  %vm321_vm6 = vcmp.eq.f32.partialorder %v303_v10, inf  ;;  %v324_v25 = vand.u32 2147483648, %v303_v10 }
 0x2bf   :  { %v304_v13 = vadd.f32 1e-05, %v300_v12  ;;  %vm323_vm7 = vcmp.eq.f32.partialorder %v303_v10, 0.0 }
 0x2c1   :  { %445 = vrsqrt.f32 %v304_v13  ;;  %vm328_vm8 = vcmp.eq.f32.partialorder %v304_v13, inf  ;;  %v331_v31 = vand.u32 2147483648, %v304_v13  ;;  %vm330_vm9 = vcmp.eq.f32.partialorder %v304_v13, 0.0 }
 0x2c6   :  { %v440_v14 = vpop.eup %439 }
 0x2c7   :  { %v306_v15 = vmul.f32 %v440_v14, %v301_v4 }
 0x2c9   :  { %v308_v17 = vsel %vm307_vm2, %v301_v4, %v306_v15 }
 0x2ca   :  { %v311_v18 = vsel %vm309_vm3, %v310_v16, %v308_v17  ;;  %v442_v19 = vpop.eup %441 }
 0x2cb   :  { %447 = vrcp.f32 %v311_v18  ;;  %v444_v20 = vpop.eup %443  ;;  %v313_v21 = vmul.f32 %v442_v19, %v302_v9 }
 0x2cc   :  { %v320_v23 = vmul.f32 %v444_v20, %v303_v10 }
 0x2cd   :  { %v315_v24 = vsel %vm314_vm4, %v302_v9, %v313_v21 }
 0x2ce   :  { %v446_v26 = vpop.eup %445  ;;  %v318_v27 = vsel %vm316_vm5, %v317_v22, %v315_v24  ;;  %v322_v28 = vsel %vm321_vm6, %v303_v10, %v320_v23 }
 0x2cf   :  { %449 = vrcp.f32 %v318_v27  ;;  %v325_v29 = vsel %vm323_vm7, %v324_v25, %v322_v28  ;;  %v327_v30 = vmul.f32 %v446_v26, %v304_v13 }
 0x2d0   :  { %451 = vrcp.f32 %v325_v29 }
 0x2d1   :  { %v329_v32 = vsel %vm328_vm8, %v304_v13, %v327_v30 }
 0x2d2   :  { %v332_v33 = vsel %vm330_vm9, %v331_v31, %v329_v32 }
 0x2d3   :  { %453 = vrcp.f32 %v332_v33 }
 0x2d8   :  { %v448_v34 = vpop.eup %447 }
 0x2d9   :  { %v334_v36 = vmul.f32 %v448_v34, %v561_v48 }
 0x2db   :  { %v348_v38 = vmul.f32 %v381_v35, %v334_v36 }
 0x2dc   :  { %v450_v39 = vpop.eup %449 }
 0x2dd   :  { %v359_v40 = vadd.f32 %v382_v37, %v348_v38  ;;  %v452_v41 = vpop.eup %451  ;;  %v336_v42 = vmul.f32 %v450_v39, %v567_v55 }
 0x2de   :  { %v338_v43 = vmul.f32 %v452_v41, %v565_v54 }
 0x2df   :  { %363 = vst.msk [vmem:[%s614_s7] sm:$0xff] %vm41_vm0, %v359_v40  ;;  %v349_v44 = vmul.f32 %v381_v35, %v336_v42 }
 0x2e0   :  { %v454_v45 = vpop.eup %453  ;;  %v350_v46 = vmul.f32 %v381_v35, %v338_v43 }
 0x2e1   :  { %v360_v47 = vadd.f32 %v382_v37, %v349_v44  ;;  %v340_v48 = vmul.f32 %v454_v45, %v574_v61 }
 0x2e2   :  { %v361_v49 = vadd.f32 %v382_v37, %v350_v46 }
 0x2e3   :  { %364 = vst.msk [vmem:[%s614_s7 + $0x8] sm:$0xff] %vm41_vm0, %v360_v47  ;;  %v351_v50 = vmul.f32 %v381_v35, %v340_v48 }
 0x2e4   :  { %365 = vst.msk [vmem:[%s614_s7 + $0x10] sm:$0xff] %vm41_vm0, %v361_v49 }
 0x2e5   :  { %v362_v51 = vadd.f32 %v382_v37, %v351_v50 }
 0x2e7   :  { %366 = vst.msk [vmem:[%s614_s7 + $0x18] sm:$0xff] %vm41_vm0, %v362_v51 }

// kernel: transformer_forward.13
= control target key start
LH: loop header
LB: loop body
LE: loop exit
PB: predicated region body
PF: predicated region fallthrough
CT: control target
= control target key end

     0   :  { %s2098_s17 = smov 0   ;;  %s2100_s18 = smov 0   ;;  %s2322_s0 = inlined_call_operand.vmem [shape: f32[2,2,8,32], index: 0, kind: input, shape index: {}, may-alias: {0,1}]   ;;  %s2323_s1 = inlined_call_operand.vmem [shape: f32[2,2,8,32], index: 1, kind: input, shape index: {}, may-alias: {0,1}]   ;;  %s2324_s2 = inlined_call_operand.vmem [shape: f32[2,1,8], index: 2, kind: input, shape index: {}]   ;;  %s2325_s3 = inlined_call_operand.vmem [shape: f32[32,32], index: 3, kind: input, shape index: {}]   ;;  %s2326_s4 = inlined_call_operand.vmem [shape: f32[1,32], index: 4, kind: input, shape index: {}]   ;;  %s2327_s5 = inlined_call_operand.vmem [shape: f32[32,64], index: 5, kind: input, shape index: {}]   ;;  %s2328_s6 = inlined_call_operand.vmem [shape: f32[1,64], index: 6, kind: input, shape index: {}]   ;;  %s2329_s7 = inlined_call_operand.vmem [shape: f32[32,32], index: 7, kind: input, shape index: {}]   ;;  %s2330_s8 = inlined_call_operand.vmem [shape: f32[1,32], index: 8, kind: input, shape index: {}]   ;;  %s2331_s9 = inlined_call_operand.vmem [shape: f32[1,32], index: 9, kind: input, shape index: {}]   ;;  %s2332_s10 = inlined_call_operand.vmem [shape: f32[1,32], index: 10, kind: input, shape index: {}]   ;;  %s2333_s11 = inlined_call_operand.vmem [shape: f32[2,2,8,32], index: 11, kind: output, shape index: {}]  }
   0x1   :  { %s2102_s19 = smov 0   ;;  %s2104_s20 = smov 0  }
   0x2   :  { %s2106_s21 = smov 0  }
   0x3 LB: > { %s30_s22 = sadd.s32 1, %s2019_s19  ;;  %s33_s23 = sadd.s32 1, %s2023_s20  ;;  %s2027_s21 = sphi %s2106_s21, %s21_s21   ;;  %s2023_s20 = sphi %s2104_s20, %s2337_s20   ;;  %s2019_s19 = sphi %s2102_s19, %s2336_s19   ;;  %s2015_s18 = sphi %s2100_s18, %s2335_s18   ;;  %s2011_s17 = sphi %s2098_s17, %s2334_s17  }
   0x4   : > { %p31_p0 = scmp.ge.s32.totalorder %s30_s22, 2  ;;  %p1771_p1 = scmp.ge.s32.totalorder %s2027_s21, 1 }
   0x5   : > { %p379_p2 = scmp.lt.s32.totalorder %s2027_s21, 5 }
   0x6   : > { %s2339_s22 = smov (%p31_p0, %s30_s22), 0  ;;  %s2341_s23 = smov (!%p31_p0, %s33_s23), %s2023_s20 }
   0x7   : > { %p380_p3 = pnand %p1771_p1, %p379_p2  ;;  %p35_p4 = scmp.ge.s32.totalorder %s2341_s23, 2 }
   0x8   : > { %p436_p5 = scmp.lt.s32.totalorder (!%p380_p3), %s2015_s18, 1  ;;  %p438_p6 = scmp.lt.s32.totalorder (!%p380_p3), %s2011_s17, 1 }
   0x9   : > { %s2343_s23 = smov (%p35_p4, %s2341_s23), 0  ;;  %383 = sbr.rel (%p380_p3) target bundleno = 2784 (0xae0), region = 64 }
   0xa   : > { %s2031_s29 = smov (!%p380_p3), 120   ;;  %s2034_s14 = smov (!%p380_p3), 112  }
   0xb   : > { %s2035_s26 = smov (!%p380_p3), 80   ;;  %s2037_s12 = smov (!%p380_p3), 72  }
   0xe   : > { %v554_v0 = vld [vmem:[%s2327_s5 + $0x18] sm:$0xff]  ;;  %v2029_v2 = vmov 0.0   ;;  %v553_v3 = vld [vmem:[%s2327_s5 + $0x10] sm:$0xff]  ;;  %s2345_s18 = smov (!%p436_p5, %s2015_s18), 1  ;;  %v552_v5 = vld [vmem:[%s2327_s5 + $0x8] sm:$0xff]  ;;  %s2347_s17 = smov (!%p438_p6, %s2011_s17), 1 }
   0xf   : > { %v469_v1 = vld [vmem:[%s2325_s3 + $0x18] sm:$0xff]  ;;  %1849 = vmatprep.subr.mxu1 %v2029_v2  ;;  %1838 = vmatprep.subr.mxu0 %v2029_v2  ;;  %v468_v4 = vld [vmem:[%s2325_s3 + $0x10] sm:$0xff]  ;;  %v467_v6 = vld [vmem:[%s2325_s3 + $0x8] sm:$0xff]  ;;  %s1772_s24 = sshll.u32 %s2345_s18, 1  ;;  %vm477_vm0 = vcmask 261120   ;;  %vm2030_vm1 = vmmov 0   ;;  %s454_s13 = scalar_lea.vmem %s2324_s2, %s2345_s18 }
  0x10   : > { %1850 = vmatpush3.msra.mxu1 %v554_v0  ;;  %1839 = vmatpush3.msra.mxu0 %v469_v1  ;;  %v551_v7 = vld [vmem:[%s2327_s5] sm:$0xff]  ;;  %s441_s27 = sadd.s32 %s1772_s24, %s2347_s17  ;;  %vm639_vm2 = vcmask 64512   ;;  %s2033_s18 = smov 88   ;;  %v636_v46 = vld [vmem:[%s2329_s7 + $0x8] sm:$0xff] }
  0x11   : > { %1851 = vmatprep.subr.mxu1 %v2029_v2  ;;  %1840 = vmatprep.subr.mxu0 %v2029_v2  ;;  %s2162_s28 = sshll.u32 %s441_s27, 3  ;;  %v466_v8 = vld [vmem:[%s2325_s3] sm:$0xff]  ;;  %s2036_s27 = smov 104  }
  0x12   : > { %1852 = vmatpush3.msra.mxu1 %v553_v3  ;;  %1841 = vmatpush3.msra.mxu0 %v468_v4  ;;  %s451_s17 = scalar_lea.vmem %s2323_s1, %s2162_s28  ;;  %s443_s16 = scalar_lea.vmem %s2322_s0, %s2162_s28  ;;  %v1780_v11 = vld [vmem:[%s2328_s6] ss:$0 sm:$0xff] }
  0x13   : > { %1853 = vmatprep.subr.mxu1 %v2029_v2  ;;  %1842 = vmatprep.subr.mxu0 %v2029_v2  ;;  %v464_v9 = vld [vmem:[%s451_s17] sm:$0xff]  ;;  %s2032_s17 = smov 96  }
  0x14   : > { %1854 = vmatpush3.msra.mxu1 %v552_v5  ;;  %1843 = vmatpush3.msra.mxu0 %v467_v6  ;;  %v2180_v10 = vld [vmem:[%s443_s16] sm:$0xff] }
  0x15   : > { %1855 = vmatprep.subr.mxu1 %v2029_v2  ;;  %1857 = vmatprep.mubr.msk.f32.mxu1 %vm2030_vm1, %v2029_v2  ;;  %v1778_v13 = vld [vmem:[%s2326_s4] ss:$0 sm:$0xff] }
  0x16   : > { %1856 = vmatpush3.msra.mxu1 %v551_v7  ;;  %1844 = vmatprep.subr.mxu0 %v2029_v2  ;;  %v2220_v22 = vld [vmem:[%s454_s13] ss:$0 sm:$0xff] }
  0x17   : > { %1858 = vmatmul.mubr.msk.f32.vlgmr.msra.gmra.mxu1 %vm477_vm0, %v464_v9  ;;  %1845 = vmatpush3.msra.mxu0 %v466_v8  ;;  %v635_v51 = vld [vmem:[%s2329_s7] sm:$0xff] }
  0x18   : > { %1846 = vmatprep.mubr.msk.f32.mxu0 %vm2030_vm1, %v2029_v2  ;;  %1860 = vmatprep.subr.mxu0 %v2029_v2 }
  0x19   : > { %1847 = vmatmul.mubr.msk.f32.vlgmr.msra.gmra.mxu0 %vm477_vm0, %v2180_v10  ;;  %1865 = vmatprep.subr.mxu1 %v2029_v2 }
  0x1a   : > { %1862 = vmatprep.mubr.msk.f32.mxu0 %vm2030_vm1, %v2029_v2  ;;  %1867 = vmatprep.mubr.msk.f32.mxu1 %vm2030_vm1, %v2029_v2 }
  0xd7   : > { %v631_v12 = vpop.f32.mrf.mxu1 }
  0xd8   : > { %v2198_v14 = vadd.f32 %v1780_v11, %v631_v12 }
  0xd9   : > { %v547_v15 = vpop.f32.mrf.mxu0  ;;  %v1859_v16 = vpop.f32.mrf.mxu1 }
  0xda   : > { %v2200_v17 = vadd.f32 %v1778_v13, %v547_v15  ;;  %814 = vrot.lane.b32.xlu0 %v2198_v14, %s2031_s29  ;;  %1861 = vmatpush3.xpose.msk.msra.mxu0 %vm639_vm2, %v2198_v14 }
  0xdb   : > { %v1848_v18 = vpop.f32.mrf.mxu0  ;;  %1870 = vmatprep.subr.mxu0 %v2029_v2 }
  0xdd   : > { %1863 = vmatmul.mubr.msk.f32.vlgmr.msra.gmra.mxu0 %vm639_vm2, %v2200_v17 }
  0xde   : > { %812 = vrot.lane.b32.xlu0 %v2200_v17, %s2031_s29  ;;  %1872 = vmatprep.mubr.msk.f32.mxu0 %vm2030_vm1, %v2029_v2  ;;  %s462_s29 = scalar_lea.vmem %s2333_s11, %s2162_s28 }
 0x14c   : > { %v815_v19 = vpop.permute.xlu0 %814 }
 0x14d   : > { %1871 = vmatpush3.xpose.msk.msra.mxu0 %vm639_vm2, %v815_v19 }
 0x14e   : > { %1880 = vmatprep.subr.mxu0 %v2029_v2 }
 0x150   : > { %v813_v20 = vpop.permute.xlu0 %812 }
 0x151   : > { %1873 = vmatmul.mubr.msk.f32.vlgmr.msra.gmra.mxu0 %vm639_vm2, %v813_v20 }
 0x152   : > { %1882 = vmatprep.mubr.msk.f32.mxu0 %vm2030_vm1, %v2029_v2  ;;  %1881 = vmatpush3.msra.mxu0 %v636_v46 }
 0x153   : > { %1890 = vmatprep.subr.mxu0 %v2029_v2 }
 0x19d   : > { %v712_v21 = vpop.f32.mrf.mxu0 }
 0x19e   : > { %v717_v23 = vmul.f32 0.35355338, %v712_v21 }
 0x19f   : > { %v1864_v24 = vpop.f32.mrf.mxu0 }
 0x1a0   : > { %v724_v25 = vadd.f32 %v2220_v22, %v717_v23 }
 0x1a2   : > { %v725_v26 = vsel %vm639_vm2, %v724_v25, -inf }
 0x1a3   : > { %726 = vmax.xlane.f32.xlu1 %v725_v26 }
 0x211   : > { %v886_v27 = vpop.f32.mrf.mxu0 }
 0x212   : > { %v890_v28 = vmul.f32 0.35355338, %v886_v27 }
 0x213   : > { %v1874_v29 = vpop.f32.mrf.mxu0 }
 0x214   : > { %v891_v30 = vadd.f32 %v2220_v22, %v890_v28 }
 0x216   : > { %v892_v31 = vsel %vm639_vm2, %v891_v30, -inf }
 0x217   : > { %893 = vmax.xlane.f32.xlu1 %v892_v31 }
 0x228   : > { %736 = vrot.lane.b32.xlu1 %v2198_v14, %s2032_s17 }
 0x22c   : > { %v727_v32 = vpop.xlane.xlu1 %726 }
 0x22d   : > { %v728_v33 = vsub.f32 %v724_v25, %v727_v32 }
 0x22f   : > { %v729_v34 = vmul.f32 1.442695, %v728_v33 }
 0x231   : > { %1969 = vpow2.f32 %v729_v34 }
 0x23e   : > { %v1970_v35 = vpop.eup %1969 }
 0x23f   : > { %v731_v36 = vsel %vm639_vm2, %v1970_v35, 0.0 }
 0x240   : > { %732 = vadd.xlane.f32.xlu0 %v731_v36 }
 0x2a0   : > { %v894_v37 = vpop.xlane.xlu1 %893 }
 0x2a1   : > { %v895_v38 = vsub.f32 %v891_v30, %v894_v37 }
 0x2a3   : > { %v896_v39 = vmul.f32 1.442695, %v895_v38 }
 0x2a4   : > { %v737_v40 = vpop.permute.xlu1 %736 }
 0x2a5   : > { %1971 = vpow2.f32 %v896_v39  ;;  %1866 = vmatpush3.msra.mxu1 %v737_v40  ;;  %v1799_v40 = vld [vmem:[%s2330_s8] ss:$0 sm:$0xff] }
 0x2a6   : > { %1875 = vmatprep.subr.mxu1 %v2029_v2 }
 0x2b2   : > { %v1972_v41 = vpop.eup %1971 }
 0x2b3   : > { %v898_v42 = vsel %vm639_vm2, %v1972_v41, 0.0 }
 0x2b4   : > { %899 = vadd.xlane.f32.xlu1 %v898_v42 }
 0x2c5   : > { %903 = vrot.lane.b32.xlu1 %v2198_v14, %s2033_s18 }
 0x2c9   : > { %v733_v43 = vpop.xlane.xlu0 %732  ;;  %1127 = vrot.lane.b32.xlu1 %v2198_v14, %s2034_s14 }
 0x2ca   : > { %1973 = vrcp.f32 %v733_v43 }
 0x2cd   : > { %1125 = vrot.lane.b32.xlu1 %v2200_v17, %s2034_s14 }
 0x2d7   : > { %v1974_v44 = vpop.eup %1973 }
 0x2d8   : > { %v735_v45 = vmul.f32 %v1974_v44, %v1970_v35 }
 0x2da   : > { %1868 = vmatmul.mubr.msk.f32.vlgmr.msra.gmra.mxu1 %vm639_vm2, %v735_v45 }
 0x2db   : > { %1877 = vmatprep.mubr.msk.f32.mxu1 %vm2030_vm1, %v2029_v2 }
 0x33d   : > { %v900_v47 = vpop.xlane.xlu1 %899 }
 0x33e   : > { %1975 = vrcp.f32 %v900_v47 }
 0x341   : > { %v904_v48 = vpop.permute.xlu1 %903 }
 0x342   : > { %1876 = vmatpush3.msra.mxu1 %v904_v48 }
 0x343   : > { %1885 = vmatprep.subr.mxu1 %v2029_v2 }
 0x345   : > { %v1128_v54 = vpop.permute.xlu1 %1127 }
 0x349   : > { %v1126_v57 = vpop.permute.xlu1 %1125 }
 0x34b   : > { %v1976_v49 = vpop.eup %1975 }
 0x34c   : > { %v902_v50 = vmul.f32 %v1976_v49, %v1972_v41 }
 0x34e   : > { %1878 = vmatmul.mubr.msk.f32.vlgmr.msra.gmra.mxu1 %vm639_vm2, %v902_v50 }
 0x34f   : > { %1886 = vmatpush3.msra.mxu1 %v635_v51  ;;  %1887 = vmatprep.mubr.msk.f32.mxu1 %vm2030_vm1, %v2029_v2 }
 0x350   : > { %1895 = vmatprep.subr.mxu1 %v2029_v2 }
 0x39a   : > { %v808_v52 = vpop.f32.mrf.mxu1 }
 0x39b   : > { %1888 = vmatmul.mubr.msk.f32.vlgmr.msra.gmra.mxu1 %vm639_vm2, %v808_v52 }
 0x39c   : > { %v1869_v53 = vpop.f32.mrf.mxu1  ;;  %1897 = vmatprep.mubr.msk.f32.mxu1 %vm2030_vm1, %v2029_v2 }
 0x40e   : > { %v975_v55 = vpop.f32.mrf.mxu1 }
 0x40f   : > { %1883 = vmatmul.mubr.msk.f32.vlgmr.msra.gmra.mxu0 %vm639_vm2, %v975_v55 }
 0x410   : > { %1891 = vmatpush3.xpose.msk.msra.mxu0 %vm639_vm2, %v1128_v54  ;;  %v1879_v56 = vpop.f32.mrf.mxu1  ;;  %1892 = vmatprep.mubr.msk.f32.mxu0 %vm2030_vm1, %v2029_v2 }
 0x411   : > { %1900 = vmatprep.subr.mxu0 %v2029_v2 }
 0x413   : > { %1893 = vmatmul.mubr.msk.f32.vlgmr.msra.gmra.mxu0 %vm639_vm2, %v1126_v57 }
 0x414   : > { %1902 = vmatprep.mubr.msk.f32.mxu0 %vm2030_vm1, %v2029_v2 }
 0x45b   : > { %v1121_v58 = vpop.f32.mrf.mxu1 }
 0x45d   : > { %v1889_v59 = vpop.f32.mrf.mxu1 }
 0x45e   : > { %v1800_v59 = vld [vmem:[%s2331_s9] ss:$0 sm:$0xff] }
 0x4cf   : > { %v1048_v60 = vpop.f32.mrf.mxu0 }
 0x4d1   : > { %v1884_v61 = vpop.f32.mrf.mxu0 }
 0x4d2   : > { %v1801_v61 = vld [vmem:[%s2332_s10] ss:$0 sm:$0xff] }
 0x4d3   : > { %v1199_v62 = vpop.f32.mrf.mxu0 }
 0x4d4   : > { %v1203_v63 = vmul.f32 0.35355338, %v1199_v62 }
 0x4d5   : > { %v1894_v0 = vpop.f32.mrf.mxu0 }
 0x4d6   : > { %v1204_v1 = vadd.f32 %v2220_v22, %v1203_v63 }
 0x4d8   : > { %v1205_v3 = vsel %vm639_vm2, %v1204_v1, -inf }
 0x4d9   : > { %1206 = vmax.xlane.f32.xlu0 %v1205_v3 }
 0x4ef   : > { %1216 = vrot.lane.b32.xlu0 %v2198_v14, %s2035_s26 }
 0x4f3   : > { %1368 = vrot.lane.b32.xlu0 %v2198_v14, %s2036_s27 }
 0x4f7   : > { %1366 = vrot.lane.b32.xlu0 %v2200_v17, %s2036_s27  ;;  %v637_v17 = vld [vmem:[%s2329_s7 + $0x10] sm:$0xff] }
 0x4f8   : > { %1901 = vmatpush3.msra.mxu0 %v637_v17 }
 0x4f9   : > { %1910 = vmatprep.subr.mxu0 %v2029_v2 }
 0x562   : > { %v1207_v4 = vpop.xlane.xlu0 %1206 }
 0x563   : > { %v1208_v5 = vsub.f32 %v1204_v1, %v1207_v4 }
 0x565   : > { %v1209_v6 = vmul.f32 1.442695, %v1208_v5 }
 0x566   : > { %v1217_v7 = vpop.permute.xlu0 %1216 }
 0x567   : > { %1977 = vpow2.f32 %v1209_v6  ;;  %1896 = vmatpush3.msra.mxu1 %v1217_v7 }
 0x568   : > { %1905 = vmatprep.subr.mxu1 %v2029_v2 }
 0x56a   : > { %v1369_v13 = vpop.permute.xlu0 %1368 }
 0x56e   : > { %v1367_v16 = vpop.permute.xlu0 %1366 }
 0x574   : > { %v1978_v8 = vpop.eup %1977 }
 0x575   : > { %v1211_v9 = vsel %vm639_vm2, %v1978_v8, 0.0 }
 0x576   : > { %1212 = vadd.xlane.f32.xlu1 %v1211_v9 }
 0x5ff   : > { %v1213_v11 = vpop.xlane.xlu1 %1212 }
 0x600   : > { %1979 = vrcp.f32 %v1213_v11 }
 0x60d   : > { %v1980_v12 = vpop.eup %1979 }
 0x60e   : > { %v1215_v15 = vmul.f32 %v1980_v12, %v1978_v8 }
 0x610   : > { %1898 = vmatmul.mubr.msk.f32.vlgmr.msra.gmra.mxu1 %vm639_vm2, %v1215_v15 }
 0x611   : > { %1906 = vmatpush3.xpose.msk.msra.mxu1 %vm639_vm2, %v1369_v13  ;;  %1907 = vmatprep.mubr.msk.f32.mxu1 %vm2030_vm1, %v2029_v2 }
 0x612   : > { %1915 = vmatprep.subr.mxu1 %v2029_v2 }
 0x614   : > { %1908 = vmatmul.mubr.msk.f32.vlgmr.msra.gmra.mxu1 %vm639_vm2, %v1367_v16 }
 0x615   : > { %1917 = vmatprep.mubr.msk.f32.mxu1 %vm2030_vm1, %v2029_v2 }
 0x6d0   : > { %v1288_v18 = vpop.f32.mrf.mxu1 }
 0x6d1   : > { %1903 = vmatmul.mubr.msk.f32.vlgmr.msra.gmra.mxu0 %vm639_vm2, %v1288_v18 }
 0x6d2   : > { %v1899_v19 = vpop.f32.mrf.mxu1  ;;  %1912 = vmatprep.mubr.msk.f32.mxu0 %vm2030_vm1, %v2029_v2  ;;  %v1122_v2 = vadd.f32 %v1121_v58, %v1048_v60 }
 0x6d4   : > { %v1440_v20 = vpop.f32.mrf.mxu1 }
 0x6d5   : > { %v1444_v21 = vmul.f32 0.35355338, %v1440_v20 }
 0x6d6   : > { %v1909_v23 = vpop.f32.mrf.mxu1 }
 0x6d7   : > { %v1445_v24 = vadd.f32 %v2220_v22, %v1444_v21  ;;  %v638_v22 = vld [vmem:[%s2329_s7 + $0x18] sm:$0xff] }
 0x6d8   : > { %1916 = vmatpush3.msra.mxu1 %v638_v22 }
 0x6d9   : > { %v1446_v25 = vsel %vm639_vm2, %v1445_v24, -inf }
 0x6da   : > { %1447 = vmax.xlane.f32.xlu0 %v1446_v25 }
 0x763   : > { %v1448_v26 = vpop.xlane.xlu0 %1447 }
 0x764   : > { %v1449_v27 = vsub.f32 %v1445_v24, %v1448_v26 }
 0x766   : > { %v1450_v28 = vmul.f32 1.442695, %v1449_v27 }
 0x768   : > { %1981 = vpow2.f32 %v1450_v28 }
 0x775   : > { %v1982_v29 = vpop.eup %1981 }
 0x776   : > { %v1452_v30 = vsel %vm639_vm2, %v1982_v29, 0.0 }
 0x777   : > { %1453 = vadd.xlane.f32.xlu1 %v1452_v30 }
 0x788   : > { %1457 = vrot.lane.b32.xlu1 %v2198_v14, %s2037_s12 }
 0x791   : > { %v1361_v31 = vpop.f32.mrf.mxu0 }
 0x792   : > { %v1365_v32 = vadd.f32 %v1361_v31, %v1122_v2 }
 0x793   : > { %v1904_v33 = vpop.f32.mrf.mxu0 }
 0x800   : > { %v1454_v34 = vpop.xlane.xlu1 %1453 }
 0x801   : > { %1983 = vrcp.f32 %v1454_v34 }
 0x804   : > { %v1458_v35 = vpop.permute.xlu1 %1457 }
 0x805   : > { %1911 = vmatpush3.msra.mxu0 %v1458_v35 }
 0x80e   : > { %v1984_v36 = vpop.eup %1983 }
 0x80f   : > { %v1456_v37 = vmul.f32 %v1984_v36, %v1982_v29 }
 0x811   : > { %1913 = vmatmul.mubr.msk.f32.vlgmr.msra.gmra.mxu0 %vm639_vm2, %v1456_v37 }
 0x8d1   : > { %v1529_v38 = vpop.f32.mrf.mxu0 }
 0x8d2   : > { %1918 = vmatmul.mubr.msk.f32.vlgmr.msra.gmra.mxu1 %vm639_vm2, %v1529_v38 }
 0x8d3   : > { %v1914_v14 = vpop.f32.mrf.mxu0 }
 0x992   : > { %v1602_v39 = vpop.f32.mrf.mxu1 }
 0x993   : > { %v1606_v41 = vadd.f32 %v1602_v39, %v1365_v32 }
 0x994   : > { %v1919_v42 = vpop.f32.mrf.mxu1 }
 0x995   : > { %v1614_v43 = vadd.f32 %v1799_v40, %v1606_v41 }
 0x997   : > { %v1615_v44 = vadd.f32 %v1614_v43, %v2180_v10 }
 0x999   : > { %v1616_v45 = vsel %vm477_vm0, %v1615_v44, 0.0 }
 0x99a   : > { %1617 = vadd.xlane.f32.xlu1 %v1616_v45 }
 0xa23   : > { %v1618_v46 = vpop.xlane.xlu1 %1617 }
 0xa24   : > { %v1620_v47 = vmul.f32 0.03125, %v1618_v46 }
 0xa26   : > { %v1621_v48 = vsub.f32 %v1615_v44, %v1620_v47 }
 0xa28   : > { %v1622_v49 = vmul.f32 %v1621_v48, %v1621_v48 }
 0xa2a   : > { %v1623_v50 = vsel %vm477_vm0, %v1622_v49, 0.0 }
 0xa2b   : > { %1624 = vadd.xlane.f32.xlu0 %v1623_v50 }
 0xab4   : > { %v1625_v51 = vpop.xlane.xlu0 %1624 }
 0xab5   : > { %v1626_v52 = vmul.f32 0.03125, %v1625_v51 }
 0xab7   : > { %v1627_v53 = vadd.f32 1e-05, %v1626_v52 }
 0xab9   : > { %1985 = vrsqrt.f32 %v1627_v53  ;;  %vm1630_vm3 = vcmp.eq.f32.partialorder %v1627_v53, inf  ;;  %v1633_v56 = vand.u32 2147483648, %v1627_v53  ;;  %vm1632_vm4 = vcmp.eq.f32.partialorder %v1627_v53, 0.0 }
 0xac6   : > { %v1986_v54 = vpop.eup %1985 }
 0xac7   : > { %v1629_v55 = vmul.f32 %v1986_v54, %v1627_v53 }
 0xac9   : > { %v1631_v10 = vsel %vm1630_vm3, %v1627_v53, %v1629_v55 }
 0xaca   : > { %v1634_v57 = vsel %vm1632_vm4, %v1633_v56, %v1631_v10 }
 0xacb   : > { %1987 = vrcp.f32 %v1634_v57 }
 0xad8   : > { %v1988_v58 = vpop.eup %1987 }
 0xad9   : > { %v1636_v60 = vmul.f32 %v1988_v58, %v1621_v48 }
 0xadb   : > { %v1644_v62 = vmul.f32 %v1800_v59, %v1636_v60 }
 0xadd   : > { %v1652_v63 = vadd.f32 %v1801_v61, %v1644_v62 }
 0xadf   : > { %1653 = vst.msk [vmem:[%s462_s29] sm:$0xff] %vm477_vm0, %v1652_v63 }
 0xae0 PF: > { %s21_s21 = sadd.s32 1, %s2027_s21   ;;  %s2334_s17 = smov %s2019_s19 }
 0xae1   : > { %p18_p7 = scmp.ge.s32.totalorder %s21_s21, 6   ;;  %s2335_s18 = smov %s2023_s20 }
 0xae2   : > { %s2336_s19 = smov %s2339_s22  ;;  %s2337_s20 = smov %s2343_s23 }
 0xae3   :  { %20 = sbr.rel (!%p18_p7) target bundleno = 3 (0x3), region = 100 }

// kernel: transformer_forward.15
= control target key start
LH: loop header
LB: loop body
LE: loop exit
PB: predicated region body
PF: predicated region fallthrough
CT: control target
= control target key end

     0   :  { %s2056_s17 = smov 0   ;;  %s2058_s18 = smov 0   ;;  %s2279_s0 = inlined_call_operand.vmem [shape: f32[2,8,32], index: 0, kind: input, shape index: {}, may-alias: {0,1}]   ;;  %s2280_s1 = inlined_call_operand.vmem [shape: f32[2,8,32], index: 1, kind: input, shape index: {}, may-alias: {0,1}]   ;;  %s2281_s2 = inlined_call_operand.vmem [shape: f32[2,8,8], index: 2, kind: input, shape index: {}]   ;;  %s2282_s3 = inlined_call_operand.vmem [shape: f32[32,32], index: 3, kind: input, shape index: {}]   ;;  %s2283_s4 = inlined_call_operand.vmem [shape: f32[1,32], index: 4, kind: input, shape index: {}]   ;;  %s2284_s5 = inlined_call_operand.vmem [shape: f32[32,64], index: 5, kind: input, shape index: {}]   ;;  %s2285_s6 = inlined_call_operand.vmem [shape: f32[1,64], index: 6, kind: input, shape index: {}]   ;;  %s2286_s7 = inlined_call_operand.vmem [shape: f32[32,32], index: 7, kind: input, shape index: {}]   ;;  %s2287_s8 = inlined_call_operand.vmem [shape: f32[1,32], index: 8, kind: input, shape index: {}]   ;;  %s2288_s9 = inlined_call_operand.vmem [shape: f32[1,32], index: 9, kind: input, shape index: {}]   ;;  %s2289_s10 = inlined_call_operand.vmem [shape: f32[1,32], index: 10, kind: input, shape index: {}]   ;;  %s2290_s11 = inlined_call_operand.vmem [shape: f32[2,2,8,32], index: 11, kind: output, shape index: {}]  }
   0x1   :  { %s2060_s19 = smov 0   ;;  %s2062_s20 = smov 0  }
   0x2   :  { %s2064_s21 = smov 0  }
   0x3 LB: > { %s30_s22 = sadd.s32 1, %s1977_s19  ;;  %s33_s23 = sadd.s32 1, %s1981_s20  ;;  %s1985_s21 = sphi %s2064_s21, %s21_s21   ;;  %s1981_s20 = sphi %s2062_s20, %s2294_s20   ;;  %s1977_s19 = sphi %s2060_s19, %s2293_s19   ;;  %s1973_s18 = sphi %s2058_s18, %s2292_s18   ;;  %s1969_s17 = sphi %s2056_s17, %s2291_s17  }
   0x4   : > { %p31_p0 = scmp.ge.s32.totalorder %s30_s22, 2  ;;  %p1731_p1 = scmp.ge.s32.totalorder %s1985_s21, 1 }
   0x5   : > { %p368_p2 = scmp.lt.s32.totalorder %s1985_s21, 5 }
   0x6   : > { %s2296_s22 = smov (%p31_p0, %s30_s22), 0  ;;  %s2298_s23 = smov (!%p31_p0, %s33_s23), %s1981_s20 }
   0x7   : > { %p369_p3 = pnand %p1731_p1, %p368_p2  ;;  %p35_p4 = scmp.ge.s32.totalorder %s2298_s23, 2 }
   0x8   : > { %p418_p5 = scmp.lt.s32.totalorder (!%p369_p3), %s1969_s17, 1  ;;  %s1989_s27 = smov (!%p369_p3), 120  }
   0x9   : > { %s2300_s23 = smov (%p35_p4, %s2298_s23), 0  ;;  %372 = sbr.rel (%p369_p3) target bundleno = 2784 (0xae0), region = 64 }
   0xa   : > { %p426_p6 = scmp.lt.s32.totalorder (!%p369_p3), %s1973_s18, 1  ;;  %s1991_s14 = smov (!%p369_p3), 88  }
   0xb   : > { %s1992_s15 = smov (!%p369_p3), 112  }
   0xe   : > { %v529_v0 = vld [vmem:[%s2284_s5 + $0x18] sm:$0xff]  ;;  %v1987_v2 = vmov 0.0   ;;  %v528_v3 = vld [vmem:[%s2284_s5 + $0x10] sm:$0xff]  ;;  %s2302_s17 = smov (!%p418_p5, %s1969_s17), 1  ;;  %v527_v5 = vld [vmem:[%s2284_s5 + $0x8] sm:$0xff]  ;;  %vm452_vm0 = vcmask 261120  }
   0xf   : > { %v444_v1 = vld [vmem:[%s2282_s3 + $0x18] sm:$0xff]  ;;  %1807 = vmatprep.subr.mxu1 %v1987_v2  ;;  %1796 = vmatprep.subr.mxu0 %v1987_v2  ;;  %v443_v4 = vld [vmem:[%s2282_s3 + $0x10] sm:$0xff]  ;;  %v442_v6 = vld [vmem:[%s2282_s3 + $0x8] sm:$0xff]  ;;  %s1732_s24 = sshll.u32 %s2302_s17, 3  ;;  %vm1988_vm1 = vmmov 0   ;;  %vm614_vm2 = vcmask 64512  }
  0x10   : > { %1808 = vmatpush3.msra.mxu1 %v529_v0  ;;  %1797 = vmatpush3.msra.mxu0 %v444_v1  ;;  %v526_v7 = vld [vmem:[%s2284_s5] sm:$0xff]  ;;  %s425_s29 = scalar_lea.vmem %s2280_s1, %s1732_s24  ;;  %s421_s13 = scalar_lea.vmem %s2279_s0, %s1732_s24  ;;  %v611_v46 = vld [vmem:[%s2286_s7 + $0x8] sm:$0xff] }
  0x11   : > { %1809 = vmatprep.subr.mxu1 %v1987_v2  ;;  %1798 = vmatprep.subr.mxu0 %v1987_v2  ;;  %v439_v8 = vld [vmem:[%s425_s29] sm:$0xff]  ;;  %s2304_s18 = smov (!%p426_p6, %s1973_s18), 1 }
  0x12   : > { %1810 = vmatpush3.msra.mxu1 %v528_v3  ;;  %1799 = vmatpush3.msra.mxu0 %v443_v4  ;;  %v441_v9 = vld [vmem:[%s2282_s3] sm:$0xff]  ;;  %s1734_s28 = sshll.u32 %s2304_s18, 3  ;;  %s1735_s24 = sshll.u32 %s2304_s18, 1 }
  0x13   : > { %1811 = vmatprep.subr.mxu1 %v1987_v2  ;;  %1800 = vmatprep.subr.mxu0 %v1987_v2  ;;  %v2131_v10 = vld [vmem:[%s421_s13] sm:$0xff]  ;;  %s429_s12 = scalar_lea.vmem %s2281_s2, %s1734_s28  ;;  %s1990_s13 = smov 96  }
  0x14   : > { %1812 = vmatpush3.msra.mxu1 %v527_v5  ;;  %1801 = vmatpush3.msra.mxu0 %v442_v6  ;;  %v1739_v11 = vld [vmem:[%s2285_s6] ss:$0 sm:$0xff]  ;;  %s1994_s28 = smov 104   ;;  %s435_s25 = sadd.s32 %s1735_s24, %s2302_s17 }
  0x15   : > { %1813 = vmatprep.subr.mxu1 %v1987_v2  ;;  %1815 = vmatprep.mubr.msk.f32.mxu1 %vm1988_vm1, %v1987_v2  ;;  %v1737_v13 = vld [vmem:[%s2283_s4] ss:$0 sm:$0xff] }
  0x16   : > { %1814 = vmatpush3.msra.mxu1 %v526_v7  ;;  %1802 = vmatprep.subr.mxu0 %v1987_v2  ;;  %v2176_v22 = vld [vmem:[%s429_s12] sm:$0xff]  ;;  %s1995_s12 = smov 72  }
  0x17   : > { %1816 = vmatmul.mubr.msk.f32.vlgmr.msra.gmra.mxu1 %vm452_vm0, %v439_v8  ;;  %1803 = vmatpush3.msra.mxu0 %v441_v9  ;;  %v610_v51 = vld [vmem:[%s2286_s7] sm:$0xff] }
  0x18   : > { %1804 = vmatprep.mubr.msk.f32.mxu0 %vm1988_vm1, %v1987_v2  ;;  %1818 = vmatprep.subr.mxu0 %v1987_v2 }
  0x19   : > { %1805 = vmatmul.mubr.msk.f32.vlgmr.msra.gmra.mxu0 %vm452_vm0, %v2131_v10  ;;  %1823 = vmatprep.subr.mxu1 %v1987_v2 }
  0x1a   : > { %1820 = vmatprep.mubr.msk.f32.mxu0 %vm1988_vm1, %v1987_v2  ;;  %1825 = vmatprep.mubr.msk.f32.mxu1 %vm1988_vm1, %v1987_v2 }
  0xd7   : > { %v606_v12 = vpop.f32.mrf.mxu1 }
  0xd8   : > { %v2150_v14 = vadd.f32 %v1739_v11, %v606_v12 }
  0xd9   : > { %v522_v15 = vpop.f32.mrf.mxu0  ;;  %v1817_v16 = vpop.f32.mrf.mxu1 }
  0xda   : > { %v2152_v17 = vadd.f32 %v1737_v13, %v522_v15  ;;  %783 = vrot.lane.b32.xlu0 %v2150_v14, %s1989_s27  ;;  %1819 = vmatpush3.xpose.msk.msra.mxu0 %vm614_vm2, %v2150_v14 }
  0xdb   : > { %v1806_v18 = vpop.f32.mrf.mxu0  ;;  %1828 = vmatprep.subr.mxu0 %v1987_v2 }
  0xdd   : > { %1821 = vmatmul.mubr.msk.f32.vlgmr.msra.gmra.mxu0 %vm614_vm2, %v2152_v17 }
  0xde   : > { %781 = vrot.lane.b32.xlu0 %v2152_v17, %s1989_s27  ;;  %1830 = vmatprep.mubr.msk.f32.mxu0 %vm1988_vm1, %v1987_v2  ;;  %s1993_s27 = smov 80  }
 0x14c   : > { %v784_v19 = vpop.permute.xlu0 %783 }
 0x14d   : > { %1829 = vmatpush3.xpose.msk.msra.mxu0 %vm614_vm2, %v784_v19 }
 0x14e   : > { %1838 = vmatprep.subr.mxu0 %v1987_v2 }
 0x150   : > { %v782_v20 = vpop.permute.xlu0 %781 }
 0x151   : > { %1831 = vmatmul.mubr.msk.f32.vlgmr.msra.gmra.mxu0 %vm614_vm2, %v782_v20 }
 0x152   : > { %1840 = vmatprep.mubr.msk.f32.mxu0 %vm1988_vm1, %v1987_v2  ;;  %1839 = vmatpush3.msra.mxu0 %v611_v46 }
 0x153   : > { %1848 = vmatprep.subr.mxu0 %v1987_v2 }
 0x19d   : > { %v687_v21 = vpop.f32.mrf.mxu0 }
 0x19e   : > { %v692_v23 = vmul.f32 0.35355338, %v687_v21 }
 0x19f   : > { %v1822_v24 = vpop.f32.mrf.mxu0 }
 0x1a0   : > { %v693_v25 = vadd.f32 %v692_v23, %v2176_v22 }
 0x1a2   : > { %v694_v26 = vsel %vm614_vm2, %v693_v25, -inf }
 0x1a3   : > { %695 = vmax.xlane.f32.xlu1 %v694_v26 }
 0x211   : > { %v855_v27 = vpop.f32.mrf.mxu0 }
 0x212   : > { %v859_v28 = vmul.f32 0.35355338, %v855_v27 }
 0x213   : > { %v1832_v29 = vpop.f32.mrf.mxu0 }
 0x214   : > { %v860_v30 = vadd.f32 %v859_v28, %v2176_v22 }
 0x216   : > { %v861_v31 = vsel %vm614_vm2, %v860_v30, -inf }
 0x217   : > { %862 = vmax.xlane.f32.xlu1 %v861_v31 }
 0x228   : > { %705 = vrot.lane.b32.xlu1 %v2150_v14, %s1990_s13 }
 0x22c   : > { %v696_v32 = vpop.xlane.xlu1 %695 }
 0x22d   : > { %v697_v33 = vsub.f32 %v693_v25, %v696_v32 }
 0x22f   : > { %v698_v34 = vmul.f32 1.442695, %v697_v33 }
 0x231   : > { %1927 = vpow2.f32 %v698_v34 }
 0x23e   : > { %v1928_v35 = vpop.eup %1927 }
 0x23f   : > { %v700_v36 = vsel %vm614_vm2, %v1928_v35, 0.0 }
 0x240   : > { %701 = vadd.xlane.f32.xlu0 %v700_v36 }
 0x2a0   : > { %v863_v37 = vpop.xlane.xlu1 %862 }
 0x2a1   : > { %v864_v38 = vsub.f32 %v860_v30, %v863_v37 }
 0x2a3   : > { %v865_v39 = vmul.f32 1.442695, %v864_v38 }
 0x2a4   : > { %v706_v40 = vpop.permute.xlu1 %705 }
 0x2a5   : > { %1929 = vpow2.f32 %v865_v39  ;;  %1824 = vmatpush3.msra.mxu1 %v706_v40  ;;  %v1757_v40 = vld [vmem:[%s2287_s8] ss:$0 sm:$0xff] }
 0x2a6   : > { %1833 = vmatprep.subr.mxu1 %v1987_v2 }
 0x2b2   : > { %v1930_v41 = vpop.eup %1929 }
 0x2b3   : > { %v867_v42 = vsel %vm614_vm2, %v1930_v41, 0.0 }
 0x2b4   : > { %868 = vadd.xlane.f32.xlu1 %v867_v42 }
 0x2c5   : > { %872 = vrot.lane.b32.xlu1 %v2150_v14, %s1991_s14 }
 0x2c9   : > { %v702_v43 = vpop.xlane.xlu0 %701  ;;  %1096 = vrot.lane.b32.xlu1 %v2150_v14, %s1992_s15 }
 0x2ca   : > { %1931 = vrcp.f32 %v702_v43 }
 0x2cd   : > { %1094 = vrot.lane.b32.xlu1 %v2152_v17, %s1992_s15 }
 0x2d7   : > { %v1932_v44 = vpop.eup %1931 }
 0x2d8   : > { %v704_v45 = vmul.f32 %v1932_v44, %v1928_v35 }
 0x2da   : > { %1826 = vmatmul.mubr.msk.f32.vlgmr.msra.gmra.mxu1 %vm614_vm2, %v704_v45 }
 0x2db   : > { %1835 = vmatprep.mubr.msk.f32.mxu1 %vm1988_vm1, %v1987_v2 }
 0x33d   : > { %v869_v47 = vpop.xlane.xlu1 %868 }
 0x33e   : > { %1933 = vrcp.f32 %v869_v47 }
 0x341   : > { %v873_v48 = vpop.permute.xlu1 %872 }
 0x342   : > { %1834 = vmatpush3.msra.mxu1 %v873_v48 }
 0x343   : > { %1843 = vmatprep.subr.mxu1 %v1987_v2 }
 0x345   : > { %v1097_v54 = vpop.permute.xlu1 %1096 }
 0x349   : > { %v1095_v57 = vpop.permute.xlu1 %1094 }
 0x34b   : > { %v1934_v49 = vpop.eup %1933 }
 0x34c   : > { %v871_v50 = vmul.f32 %v1934_v49, %v1930_v41 }
 0x34e   : > { %1836 = vmatmul.mubr.msk.f32.vlgmr.msra.gmra.mxu1 %vm614_vm2, %v871_v50 }
 0x34f   : > { %1844 = vmatpush3.msra.mxu1 %v610_v51  ;;  %1845 = vmatprep.mubr.msk.f32.mxu1 %vm1988_vm1, %v1987_v2 }
 0x350   : > { %1853 = vmatprep.subr.mxu1 %v1987_v2 }
 0x39a   : > { %v777_v52 = vpop.f32.mrf.mxu1 }
 0x39b   : > { %1846 = vmatmul.mubr.msk.f32.vlgmr.msra.gmra.mxu1 %vm614_vm2, %v777_v52 }
 0x39c   : > { %v1827_v53 = vpop.f32.mrf.mxu1  ;;  %1855 = vmatprep.mubr.msk.f32.mxu1 %vm1988_vm1, %v1987_v2 }
 0x40e   : > { %v944_v55 = vpop.f32.mrf.mxu1 }
 0x40f   : > { %1841 = vmatmul.mubr.msk.f32.vlgmr.msra.gmra.mxu0 %vm614_vm2, %v944_v55 }
 0x410   : > { %1849 = vmatpush3.xpose.msk.msra.mxu0 %vm614_vm2, %v1097_v54  ;;  %v1837_v56 = vpop.f32.mrf.mxu1  ;;  %1850 = vmatprep.mubr.msk.f32.mxu0 %vm1988_vm1, %v1987_v2 }
 0x411   : > { %1858 = vmatprep.subr.mxu0 %v1987_v2 }
 0x413   : > { %1851 = vmatmul.mubr.msk.f32.vlgmr.msra.gmra.mxu0 %vm614_vm2, %v1095_v57 }
 0x414   : > { %1860 = vmatprep.mubr.msk.f32.mxu0 %vm1988_vm1, %v1987_v2 }
 0x45b   : > { %v1090_v58 = vpop.f32.mrf.mxu1 }
 0x45d   : > { %v1847_v59 = vpop.f32.mrf.mxu1 }
 0x45e   : > { %v1758_v59 = vld [vmem:[%s2288_s9] ss:$0 sm:$0xff] }
 0x4cf   : > { %v1017_v60 = vpop.f32.mrf.mxu0 }
 0x4d1   : > { %v1842_v61 = vpop.f32.mrf.mxu0 }
 0x4d2   : > { %v1759_v61 = vld [vmem:[%s2289_s10] ss:$0 sm:$0xff] }
 0x4d3   : > { %v1168_v62 = vpop.f32.mrf.mxu0 }
 0x4d4   : > { %v1172_v63 = vmul.f32 0.35355338, %v1168_v62 }
 0x4d5   : > { %v1852_v0 = vpop.f32.mrf.mxu0 }
 0x4d6   : > { %v1173_v1 = vadd.f32 %v1172_v63, %v2176_v22 }
 0x4d8   : > { %v1174_v3 = vsel %vm614_vm2, %v1173_v1, -inf }
 0x4d9   : > { %1175 = vmax.xlane.f32.xlu0 %v1174_v3 }
 0x4ef   : > { %1185 = vrot.lane.b32.xlu0 %v2150_v14, %s1993_s27 }
 0x4f3   : > { %1337 = vrot.lane.b32.xlu0 %v2150_v14, %s1994_s28 }
 0x4f7   : > { %1335 = vrot.lane.b32.xlu0 %v2152_v17, %s1994_s28  ;;  %v612_v17 = vld [vmem:[%s2286_s7 + $0x10] sm:$0xff]  ;;  %s1736_s28 = sshll.u32 %s435_s25, 3 }
 0x4f8   : > { %1859 = vmatpush3.msra.mxu0 %v612_v17  ;;  %s437_s14 = scalar_lea.vmem %s2290_s11, %s1736_s28 }
 0x4f9   : > { %1868 = vmatprep.subr.mxu0 %v1987_v2 }
 0x562   : > { %v1176_v4 = vpop.xlane.xlu0 %1175 }
 0x563   : > { %v1177_v5 = vsub.f32 %v1173_v1, %v1176_v4 }
 0x565   : > { %v1178_v6 = vmul.f32 1.442695, %v1177_v5 }
 0x566   : > { %v1186_v7 = vpop.permute.xlu0 %1185 }
 0x567   : > { %1935 = vpow2.f32 %v1178_v6  ;;  %1854 = vmatpush3.msra.mxu1 %v1186_v7 }
 0x568   : > { %1863 = vmatprep.subr.mxu1 %v1987_v2 }
 0x56a   : > { %v1338_v13 = vpop.permute.xlu0 %1337 }
 0x56e   : > { %v1336_v16 = vpop.permute.xlu0 %1335 }
 0x574   : > { %v1936_v8 = vpop.eup %1935 }
 0x575   : > { %v1180_v9 = vsel %vm614_vm2, %v1936_v8, 0.0 }
 0x576   : > { %1181 = vadd.xlane.f32.xlu1 %v1180_v9 }
 0x5ff   : > { %v1182_v11 = vpop.xlane.xlu1 %1181 }
 0x600   : > { %1937 = vrcp.f32 %v1182_v11 }
 0x60d   : > { %v1938_v12 = vpop.eup %1937 }
 0x60e   : > { %v1184_v15 = vmul.f32 %v1938_v12, %v1936_v8 }
 0x610   : > { %1856 = vmatmul.mubr.msk.f32.vlgmr.msra.gmra.mxu1 %vm614_vm2, %v1184_v15 }
 0x611   : > { %1864 = vmatpush3.xpose.msk.msra.mxu1 %vm614_vm2, %v1338_v13  ;;  %1865 = vmatprep.mubr.msk.f32.mxu1 %vm1988_vm1, %v1987_v2 }
 0x612   : > { %1873 = vmatprep.subr.mxu1 %v1987_v2 }
 0x614   : > { %1866 = vmatmul.mubr.msk.f32.vlgmr.msra.gmra.mxu1 %vm614_vm2, %v1336_v16 }
 0x615   : > { %1875 = vmatprep.mubr.msk.f32.mxu1 %vm1988_vm1, %v1987_v2 }
 0x6d0   : > { %v1257_v18 = vpop.f32.mrf.mxu1 }
 0x6d1   : > { %1861 = vmatmul.mubr.msk.f32.vlgmr.msra.gmra.mxu0 %vm614_vm2, %v1257_v18 }
 0x6d2   : > { %v1857_v19 = vpop.f32.mrf.mxu1  ;;  %1870 = vmatprep.mubr.msk.f32.mxu0 %vm1988_vm1, %v1987_v2  ;;  %v1091_v2 = vadd.f32 %v1090_v58, %v1017_v60 }
 0x6d4   : > { %v1409_v20 = vpop.f32.mrf.mxu1 }
 0x6d5   : > { %v1413_v21 = vmul.f32 0.35355338, %v1409_v20 }
 0x6d6   : > { %v1867_v23 = vpop.f32.mrf.mxu1 }
 0x6d7   : > { %v1414_v24 = vadd.f32 %v1413_v21, %v2176_v22  ;;  %v613_v22 = vld [vmem:[%s2286_s7 + $0x18] sm:$0xff] }
 0x6d8   : > { %1874 = vmatpush3.msra.mxu1 %v613_v22 }
 0x6d9   : > { %v1415_v25 = vsel %vm614_vm2, %v1414_v24, -inf }
 0x6da   : > { %1416 = vmax.xlane.f32.xlu0 %v1415_v25 }
 0x763   : > { %v1417_v26 = vpop.xlane.xlu0 %1416 }
 0x764   : > { %v1418_v27 = vsub.f32 %v1414_v24, %v1417_v26 }
 0x766   : > { %v1419_v28 = vmul.f32 1.442695, %v1418_v27 }
 0x768   : > { %1939 = vpow2.f32 %v1419_v28 }
 0x775   : > { %v1940_v29 = vpop.eup %1939 }
 0x776   : > { %v1421_v30 = vsel %vm614_vm2, %v1940_v29, 0.0 }
 0x777   : > { %1422 = vadd.xlane.f32.xlu1 %v1421_v30 }
 0x788   : > { %1426 = vrot.lane.b32.xlu1 %v2150_v14, %s1995_s12 }
 0x791   : > { %v1330_v31 = vpop.f32.mrf.mxu0 }
 0x792   : > { %v1334_v32 = vadd.f32 %v1330_v31, %v1091_v2 }
 0x793   : > { %v1862_v33 = vpop.f32.mrf.mxu0 }
 0x800   : > { %v1423_v34 = vpop.xlane.xlu1 %1422 }
 0x801   : > { %1941 = vrcp.f32 %v1423_v34 }
 0x804   : > { %v1427_v35 = vpop.permute.xlu1 %1426 }
 0x805   : > { %1869 = vmatpush3.msra.mxu0 %v1427_v35 }
 0x80e   : > { %v1942_v36 = vpop.eup %1941 }
 0x80f   : > { %v1425_v37 = vmul.f32 %v1942_v36, %v1940_v29 }
 0x811   : > { %1871 = vmatmul.mubr.msk.f32.vlgmr.msra.gmra.mxu0 %vm614_vm2, %v1425_v37 }
 0x8d1   : > { %v1498_v38 = vpop.f32.mrf.mxu0 }
 0x8d2   : > { %1876 = vmatmul.mubr.msk.f32.vlgmr.msra.gmra.mxu1 %vm614_vm2, %v1498_v38 }
 0x8d3   : > { %v1872_v14 = vpop.f32.mrf.mxu0 }
 0x992   : > { %v1571_v39 = vpop.f32.mrf.mxu1 }
 0x993   : > { %v1575_v41 = vadd.f32 %v1571_v39, %v1334_v32 }
 0x994   : > { %v1877_v42 = vpop.f32.mrf.mxu1 }
 0x995   : > { %v1583_v43 = vadd.f32 %v1757_v40, %v1575_v41 }
 0x997   : > { %v1584_v44 = vadd.f32 %v1583_v43, %v2131_v10 }
 0x999   : > { %v1585_v45 = vsel %vm452_vm0, %v1584_v44, 0.0 }
 0x99a   : > { %1586 = vadd.xlane.f32.xlu1 %v1585_v45 }
 0xa23   : > { %v1587_v46 = vpop.xlane.xlu1 %1586 }
 0xa24   : > { %v1589_v47 = vmul.f32 0.03125, %v1587_v46 }
 0xa26   : > { %v1590_v48 = vsub.f32 %v1584_v44, %v1589_v47 }
 0xa28   : > { %v1591_v49 = vmul.f32 %v1590_v48, %v1590_v48 }
 0xa2a   : > { %v1592_v50 = vsel %vm452_vm0, %v1591_v49, 0.0 }
 0xa2b   : > { %1593 = vadd.xlane.f32.xlu0 %v1592_v50 }
 0xab4   : > { %v1594_v51 = vpop.xlane.xlu0 %1593 }
 0xab5   : > { %v1595_v52 = vmul.f32 0.03125, %v1594_v51 }
 0xab7   : > { %v1596_v53 = vadd.f32 1e-05, %v1595_v52 }
 0xab9   : > { %1943 = vrsqrt.f32 %v1596_v53  ;;  %vm1599_vm3 = vcmp.eq.f32.partialorder %v1596_v53, inf  ;;  %v1602_v10 = vand.u32 2147483648, %v1596_v53  ;;  %vm1601_vm4 = vcmp.eq.f32.partialorder %v1596_v53, 0.0 }
 0xac6   : > { %v1944_v54 = vpop.eup %1943 }
 0xac7   : > { %v1598_v55 = vmul.f32 %v1944_v54, %v1596_v53 }
 0xac9   : > { %v1600_v56 = vsel %vm1599_vm3, %v1596_v53, %v1598_v55 }
 0xaca   : > { %v1603_v57 = vsel %vm1601_vm4, %v1602_v10, %v1600_v56 }
 0xacb   : > { %1945 = vrcp.f32 %v1603_v57 }
 0xad8   : > { %v1946_v58 = vpop.eup %1945 }
 0xad9   : > { %v1605_v60 = vmul.f32 %v1946_v58, %v1590_v48 }
 0xadb   : > { %v1613_v62 = vmul.f32 %v1758_v59, %v1605_v60 }
 0xadd   : > { %v1621_v63 = vadd.f32 %v1759_v61, %v1613_v62 }
 0xadf   : > { %1622 = vst.msk [vmem:[%s437_s14] sm:$0xff] %vm452_vm0, %v1621_v63 }
 0xae0 PF: > { %s21_s21 = sadd.s32 1, %s1985_s21   ;;  %s2291_s17 = smov %s1977_s19 }
 0xae1   : > { %p18_p7 = scmp.ge.s32.totalorder %s21_s21, 6   ;;  %s2292_s18 = smov %s1981_s20 }
 0xae2   : > { %s2293_s19 = smov %s2296_s22  ;;  %s2294_s20 = smov %s2300_s23 }
 0xae3   :  { %20 = sbr.rel (!%p18_p7) target bundleno = 3 (0x3), region = 100 }

// kernel: transformer_forward.11
= control target key start
LH: loop header
LB: loop body
LE: loop exit
PB: predicated region body
PF: predicated region fallthrough
CT: control target
= control target key end

     0   :  { %s2056_s17 = smov 0   ;;  %s2058_s18 = smov 0   ;;  %s2279_s0 = inlined_call_operand.vmem [shape: f32[2,8,32], index: 0, kind: input, shape index: {}, may-alias: {0,1}]   ;;  %s2280_s1 = inlined_call_operand.vmem [shape: f32[2,8,32], index: 1, kind: input, shape index: {}, may-alias: {0,1}]   ;;  %s2281_s2 = inlined_call_operand.vmem [shape: f32[2,1,8], index: 2, kind: input, shape index: {}]   ;;  %s2282_s3 = inlined_call_operand.vmem [shape: f32[32,32], index: 3, kind: input, shape index: {}]   ;;  %s2283_s4 = inlined_call_operand.vmem [shape: f32[1,32], index: 4, kind: input, shape index: {}]   ;;  %s2284_s5 = inlined_call_operand.vmem [shape: f32[32,64], index: 5, kind: input, shape index: {}]   ;;  %s2285_s6 = inlined_call_operand.vmem [shape: f32[1,64], index: 6, kind: input, shape index: {}]   ;;  %s2286_s7 = inlined_call_operand.vmem [shape: f32[32,32], index: 7, kind: input, shape index: {}]   ;;  %s2287_s8 = inlined_call_operand.vmem [shape: f32[1,32], index: 8, kind: input, shape index: {}]   ;;  %s2288_s9 = inlined_call_operand.vmem [shape: f32[1,32], index: 9, kind: input, shape index: {}]   ;;  %s2289_s10 = inlined_call_operand.vmem [shape: f32[1,32], index: 10, kind: input, shape index: {}]   ;;  %s2290_s11 = inlined_call_operand.vmem [shape: f32[2,2,8,32], index: 11, kind: output, shape index: {}]  }
   0x1   :  { %s2060_s19 = smov 0   ;;  %s2062_s20 = smov 0  }
   0x2   :  { %s2064_s21 = smov 0  }
   0x3 LB: > { %s30_s22 = sadd.s32 1, %s1977_s19  ;;  %s33_s23 = sadd.s32 1, %s1981_s20  ;;  %s1985_s21 = sphi %s2064_s21, %s21_s21   ;;  %s1981_s20 = sphi %s2062_s20, %s2294_s20   ;;  %s1977_s19 = sphi %s2060_s19, %s2293_s19   ;;  %s1973_s18 = sphi %s2058_s18, %s2292_s18   ;;  %s1969_s17 = sphi %s2056_s17, %s2291_s17  }
   0x4   : > { %p31_p0 = scmp.ge.s32.totalorder %s30_s22, 2  ;;  %p1731_p1 = scmp.ge.s32.totalorder %s1985_s21, 1 }
   0x5   : > { %p367_p2 = scmp.lt.s32.totalorder %s1985_s21, 5 }
   0x6   : > { %s2296_s22 = smov (%p31_p0, %s30_s22), 0  ;;  %s2298_s23 = smov (!%p31_p0, %s33_s23), %s1981_s20 }
   0x7   : > { %p368_p3 = pnand %p1731_p1, %p367_p2  ;;  %p35_p4 = scmp.ge.s32.totalorder %s2298_s23, 2 }
   0x8   : > { %p416_p5 = scmp.lt.s32.totalorder (!%p368_p3), %s1969_s17, 1  ;;  %s1989_s27 = smov (!%p368_p3), 120  }
   0x9   : > { %s2300_s23 = smov (%p35_p4, %s2298_s23), 0  ;;  %371 = sbr.rel (%p368_p3) target bundleno = 2784 (0xae0), region = 64 }
   0xa   : > { %p424_p6 = scmp.lt.s32.totalorder (!%p368_p3), %s1973_s18, 1  ;;  %s1990_s12 = smov (!%p368_p3), 96  }
   0xb   : > { %s1992_s14 = smov (!%p368_p3), 112   ;;  %s1993_s26 = smov (!%p368_p3), 80  }
   0xe   : > { %v526_v0 = vld [vmem:[%s2284_s5 + $0x18] sm:$0xff]  ;;  %v1987_v2 = vmov 0.0   ;;  %v525_v3 = vld [vmem:[%s2284_s5 + $0x10] sm:$0xff]  ;;  %s2302_s17 = smov (!%p416_p5, %s1969_s17), 1  ;;  %v524_v5 = vld [vmem:[%s2284_s5 + $0x8] sm:$0xff]  ;;  %vm449_vm0 = vcmask 261120  }
   0xf   : > { %v441_v1 = vld [vmem:[%s2282_s3 + $0x18] sm:$0xff]  ;;  %1807 = vmatprep.subr.mxu1 %v1987_v2  ;;  %1796 = vmatprep.subr.mxu0 %v1987_v2  ;;  %v440_v4 = vld [vmem:[%s2282_s3 + $0x10] sm:$0xff]  ;;  %v439_v6 = vld [vmem:[%s2282_s3 + $0x8] sm:$0xff]  ;;  %s1732_s24 = sshll.u32 %s2302_s17, 3  ;;  %vm1988_vm1 = vmmov 0   ;;  %vm611_vm2 = vcmask 64512  }
  0x10   : > { %1808 = vmatpush3.msra.mxu1 %v526_v0  ;;  %1797 = vmatpush3.msra.mxu0 %v441_v1  ;;  %v523_v7 = vld [vmem:[%s2284_s5] sm:$0xff]  ;;  %s423_s29 = scalar_lea.vmem %s2280_s1, %s1732_s24  ;;  %s419_s13 = scalar_lea.vmem %s2279_s0, %s1732_s24  ;;  %v608_v46 = vld [vmem:[%s2286_s7 + $0x8] sm:$0xff] }
  0x11   : > { %1809 = vmatprep.subr.mxu1 %v1987_v2  ;;  %1798 = vmatprep.subr.mxu0 %v1987_v2  ;;  %v436_v8 = vld [vmem:[%s423_s29] sm:$0xff]  ;;  %s2304_s18 = smov (!%p424_p6, %s1973_s18), 1 }
  0x12   : > { %1810 = vmatpush3.msra.mxu1 %v525_v3  ;;  %1799 = vmatpush3.msra.mxu0 %v440_v4  ;;  %v438_v9 = vld [vmem:[%s2282_s3] sm:$0xff]  ;;  %s426_s30 = scalar_lea.vmem %s2281_s2, %s2304_s18  ;;  %s1734_s16 = sshll.u32 %s2304_s18, 1 }
  0x13   : > { %1811 = vmatprep.subr.mxu1 %v1987_v2  ;;  %1800 = vmatprep.subr.mxu0 %v1987_v2  ;;  %v2131_v10 = vld [vmem:[%s419_s13] sm:$0xff]  ;;  %s1991_s13 = smov 88   ;;  %s432_s24 = sadd.s32 %s1734_s16, %s2302_s17 }
  0x14   : > { %1812 = vmatpush3.msra.mxu1 %v524_v5  ;;  %1801 = vmatpush3.msra.mxu0 %v439_v6  ;;  %v1738_v11 = vld [vmem:[%s2285_s6] ss:$0 sm:$0xff] }
  0x15   : > { %1813 = vmatprep.subr.mxu1 %v1987_v2  ;;  %1815 = vmatprep.mubr.msk.f32.mxu1 %vm1988_vm1, %v1987_v2  ;;  %v1736_v13 = vld [vmem:[%s2283_s4] ss:$0 sm:$0xff] }
  0x16   : > { %1814 = vmatpush3.msra.mxu1 %v523_v7  ;;  %1802 = vmatprep.subr.mxu0 %v1987_v2  ;;  %v2176_v22 = vld [vmem:[%s426_s30] ss:$0 sm:$0xff]  ;;  %s1995_s30 = smov 72  }
  0x17   : > { %1816 = vmatmul.mubr.msk.f32.vlgmr.msra.gmra.mxu1 %vm449_vm0, %v436_v8  ;;  %1803 = vmatpush3.msra.mxu0 %v438_v9  ;;  %v607_v51 = vld [vmem:[%s2286_s7] sm:$0xff] }
  0x18   : > { %1804 = vmatprep.mubr.msk.f32.mxu0 %vm1988_vm1, %v1987_v2  ;;  %1818 = vmatprep.subr.mxu0 %v1987_v2 }
  0x19   : > { %1805 = vmatmul.mubr.msk.f32.vlgmr.msra.gmra.mxu0 %vm449_vm0, %v2131_v10  ;;  %1823 = vmatprep.subr.mxu1 %v1987_v2 }
  0x1a   : > { %1820 = vmatprep.mubr.msk.f32.mxu0 %vm1988_vm1, %v1987_v2  ;;  %1825 = vmatprep.mubr.msk.f32.mxu1 %vm1988_vm1, %v1987_v2 }
  0xd7   : > { %v603_v12 = vpop.f32.mrf.mxu1 }
  0xd8   : > { %v2150_v14 = vadd.f32 %v1738_v11, %v603_v12 }
  0xd9   : > { %v519_v15 = vpop.f32.mrf.mxu0  ;;  %v1817_v16 = vpop.f32.mrf.mxu1 }
  0xda   : > { %v2152_v17 = vadd.f32 %v1736_v13, %v519_v15  ;;  %786 = vrot.lane.b32.xlu0 %v2150_v14, %s1989_s27  ;;  %1819 = vmatpush3.xpose.msk.msra.mxu0 %vm611_vm2, %v2150_v14 }
  0xdb   : > { %v1806_v18 = vpop.f32.mrf.mxu0  ;;  %1828 = vmatprep.subr.mxu0 %v1987_v2 }
  0xdd   : > { %1821 = vmatmul.mubr.msk.f32.vlgmr.msra.gmra.mxu0 %vm611_vm2, %v2152_v17 }
  0xde   : > { %784 = vrot.lane.b32.xlu0 %v2152_v17, %s1989_s27  ;;  %1830 = vmatprep.mubr.msk.f32.mxu0 %vm1988_vm1, %v1987_v2  ;;  %s1994_s27 = smov 104  }
 0x14c   : > { %v787_v19 = vpop.permute.xlu0 %786 }
 0x14d   : > { %1829 = vmatpush3.xpose.msk.msra.mxu0 %vm611_vm2, %v787_v19 }
 0x14e   : > { %1838 = vmatprep.subr.mxu0 %v1987_v2 }
 0x150   : > { %v785_v20 = vpop.permute.xlu0 %784 }
 0x151   : > { %1831 = vmatmul.mubr.msk.f32.vlgmr.msra.gmra.mxu0 %vm611_vm2, %v785_v20 }
 0x152   : > { %1840 = vmatprep.mubr.msk.f32.mxu0 %vm1988_vm1, %v1987_v2  ;;  %1839 = vmatpush3.msra.mxu0 %v608_v46 }
 0x153   : > { %1848 = vmatprep.subr.mxu0 %v1987_v2 }
 0x19d   : > { %v684_v21 = vpop.f32.mrf.mxu0 }
 0x19e   : > { %v689_v23 = vmul.f32 0.35355338, %v684_v21 }
 0x19f   : > { %v1822_v24 = vpop.f32.mrf.mxu0 }
 0x1a0   : > { %v696_v25 = vadd.f32 %v2176_v22, %v689_v23 }
 0x1a2   : > { %v697_v26 = vsel %vm611_vm2, %v696_v25, -inf }
 0x1a3   : > { %698 = vmax.xlane.f32.xlu1 %v697_v26 }
 0x211   : > { %v858_v27 = vpop.f32.mrf.mxu0 }
 0x212   : > { %v862_v28 = vmul.f32 0.35355338, %v858_v27 }
 0x213   : > { %v1832_v29 = vpop.f32.mrf.mxu0 }
 0x214   : > { %v863_v30 = vadd.f32 %v2176_v22, %v862_v28 }
 0x216   : > { %v864_v31 = vsel %vm611_vm2, %v863_v30, -inf }
 0x217   : > { %865 = vmax.xlane.f32.xlu1 %v864_v31 }
 0x228   : > { %708 = vrot.lane.b32.xlu1 %v2150_v14, %s1990_s12 }
 0x22c   : > { %v699_v32 = vpop.xlane.xlu1 %698 }
 0x22d   : > { %v700_v33 = vsub.f32 %v696_v25, %v699_v32 }
 0x22f   : > { %v701_v34 = vmul.f32 1.442695, %v700_v33 }
 0x231   : > { %1927 = vpow2.f32 %v701_v34 }
 0x23e   : > { %v1928_v35 = vpop.eup %1927 }
 0x23f   : > { %v703_v36 = vsel %vm611_vm2, %v1928_v35, 0.0 }
 0x240   : > { %704 = vadd.xlane.f32.xlu0 %v703_v36 }
 0x2a0   : > { %v866_v37 = vpop.xlane.xlu1 %865 }
 0x2a1   : > { %v867_v38 = vsub.f32 %v863_v30, %v866_v37 }
 0x2a3   : > { %v868_v39 = vmul.f32 1.442695, %v867_v38 }
 0x2a4   : > { %v709_v40 = vpop.permute.xlu1 %708 }
 0x2a5   : > { %1929 = vpow2.f32 %v868_v39  ;;  %1824 = vmatpush3.msra.mxu1 %v709_v40  ;;  %v1757_v40 = vld [vmem:[%s2287_s8] ss:$0 sm:$0xff] }
 0x2a6   : > { %1833 = vmatprep.subr.mxu1 %v1987_v2 }
 0x2b2   : > { %v1930_v41 = vpop.eup %1929 }
 0x2b3   : > { %v870_v42 = vsel %vm611_vm2, %v1930_v41, 0.0 }
 0x2b4   : > { %871 = vadd.xlane.f32.xlu1 %v870_v42 }
 0x2c5   : > { %875 = vrot.lane.b32.xlu1 %v2150_v14, %s1991_s13 }
 0x2c9   : > { %v705_v43 = vpop.xlane.xlu0 %704  ;;  %1099 = vrot.lane.b32.xlu1 %v2150_v14, %s1992_s14 }
 0x2ca   : > { %1931 = vrcp.f32 %v705_v43 }
 0x2cd   : > { %1097 = vrot.lane.b32.xlu1 %v2152_v17, %s1992_s14 }
 0x2d7   : > { %v1932_v44 = vpop.eup %1931 }
 0x2d8   : > { %v707_v45 = vmul.f32 %v1932_v44, %v1928_v35 }
 0x2da   : > { %1826 = vmatmul.mubr.msk.f32.vlgmr.msra.gmra.mxu1 %vm611_vm2, %v707_v45 }
 0x2db   : > { %1835 = vmatprep.mubr.msk.f32.mxu1 %vm1988_vm1, %v1987_v2 }
 0x33d   : > { %v872_v47 = vpop.xlane.xlu1 %871 }
 0x33e   : > { %1933 = vrcp.f32 %v872_v47 }
 0x341   : > { %v876_v48 = vpop.permute.xlu1 %875 }
 0x342   : > { %1834 = vmatpush3.msra.mxu1 %v876_v48 }
 0x343   : > { %1843 = vmatprep.subr.mxu1 %v1987_v2 }
 0x345   : > { %v1100_v54 = vpop.permute.xlu1 %1099 }
 0x349   : > { %v1098_v57 = vpop.permute.xlu1 %1097 }
 0x34b   : > { %v1934_v49 = vpop.eup %1933 }
 0x34c   : > { %v874_v50 = vmul.f32 %v1934_v49, %v1930_v41 }
 0x34e   : > { %1836 = vmatmul.mubr.msk.f32.vlgmr.msra.gmra.mxu1 %vm611_vm2, %v874_v50 }
 0x34f   : > { %1844 = vmatpush3.msra.mxu1 %v607_v51  ;;  %1845 = vmatprep.mubr.msk.f32.mxu1 %vm1988_vm1, %v1987_v2 }
 0x350   : > { %1853 = vmatprep.subr.mxu1 %v1987_v2 }
 0x39a   : > { %v780_v52 = vpop.f32.mrf.mxu1 }
 0x39b   : > { %1846 = vmatmul.mubr.msk.f32.vlgmr.msra.gmra.mxu1 %vm611_vm2, %v780_v52 }
 0x39c   : > { %v1827_v53 = vpop.f32.mrf.mxu1  ;;  %1855 = vmatprep.mubr.msk.f32.mxu1 %vm1988_vm1, %v1987_v2 }
 0x40e   : > { %v947_v55 = vpop.f32.mrf.mxu1 }
 0x40f   : > { %1841 = vmatmul.mubr.msk.f32.vlgmr.msra.gmra.mxu0 %vm611_vm2, %v947_v55 }
 0x410   : > { %1849 = vmatpush3.xpose.msk.msra.mxu0 %vm611_vm2, %v1100_v54  ;;  %v1837_v56 = vpop.f32.mrf.mxu1  ;;  %1850 = vmatprep.mubr.msk.f32.mxu0 %vm1988_vm1, %v1987_v2 }
 0x411   : > { %1858 = vmatprep.subr.mxu0 %v1987_v2 }
 0x413   : > { %1851 = vmatmul.mubr.msk.f32.vlgmr.msra.gmra.mxu0 %vm611_vm2, %v1098_v57 }
 0x414   : > { %1860 = vmatprep.mubr.msk.f32.mxu0 %vm1988_vm1, %v1987_v2 }
 0x45b   : > { %v1093_v58 = vpop.f32.mrf.mxu1 }
 0x45d   : > { %v1847_v59 = vpop.f32.mrf.mxu1 }
 0x45e   : > { %v1758_v59 = vld [vmem:[%s2288_s9] ss:$0 sm:$0xff] }
 0x4cf   : > { %v1020_v60 = vpop.f32.mrf.mxu0 }
 0x4d1   : > { %v1842_v61 = vpop.f32.mrf.mxu0 }
 0x4d2   : > { %v1759_v61 = vld [vmem:[%s2289_s10] ss:$0 sm:$0xff] }
 0x4d3   : > { %v1171_v62 = vpop.f32.mrf.mxu0 }
 0x4d4   : > { %v1175_v63 = vmul.f32 0.35355338, %v1171_v62 }
 0x4d5   : > { %v1852_v0 = vpop.f32.mrf.mxu0 }
 0x4d6   : > { %v1176_v1 = vadd.f32 %v2176_v22, %v1175_v63 }
 0x4d8   : > { %v1177_v3 = vsel %vm611_vm2, %v1176_v1, -inf }
 0x4d9   : > { %1178 = vmax.xlane.f32.xlu0 %v1177_v3 }
 0x4ef   : > { %1188 = vrot.lane.b32.xlu0 %v2150_v14, %s1993_s26 }
 0x4f3   : > { %1340 = vrot.lane.b32.xlu0 %v2150_v14, %s1994_s27 }
 0x4f7   : > { %1338 = vrot.lane.b32.xlu0 %v2152_v17, %s1994_s27  ;;  %v609_v17 = vld [vmem:[%s2286_s7 + $0x10] sm:$0xff]  ;;  %s1735_s27 = sshll.u32 %s432_s24, 3 }
 0x4f8   : > { %1859 = vmatpush3.msra.mxu0 %v609_v17  ;;  %s434_s13 = scalar_lea.vmem %s2290_s11, %s1735_s27 }
 0x4f9   : > { %1868 = vmatprep.subr.mxu0 %v1987_v2 }
 0x562   : > { %v1179_v4 = vpop.xlane.xlu0 %1178 }
 0x563   : > { %v1180_v5 = vsub.f32 %v1176_v1, %v1179_v4 }
 0x565   : > { %v1181_v6 = vmul.f32 1.442695, %v1180_v5 }
 0x566   : > { %v1189_v7 = vpop.permute.xlu0 %1188 }
 0x567   : > { %1935 = vpow2.f32 %v1181_v6  ;;  %1854 = vmatpush3.msra.mxu1 %v1189_v7 }
 0x568   : > { %1863 = vmatprep.subr.mxu1 %v1987_v2 }
 0x56a   : > { %v1341_v13 = vpop.permute.xlu0 %1340 }
 0x56e   : > { %v1339_v16 = vpop.permute.xlu0 %1338 }
 0x574   : > { %v1936_v8 = vpop.eup %1935 }
 0x575   : > { %v1183_v9 = vsel %vm611_vm2, %v1936_v8, 0.0 }
 0x576   : > { %1184 = vadd.xlane.f32.xlu1 %v1183_v9 }
 0x5ff   : > { %v1185_v11 = vpop.xlane.xlu1 %1184 }
 0x600   : > { %1937 = vrcp.f32 %v1185_v11 }
 0x60d   : > { %v1938_v12 = vpop.eup %1937 }
 0x60e   : > { %v1187_v15 = vmul.f32 %v1938_v12, %v1936_v8 }
 0x610   : > { %1856 = vmatmul.mubr.msk.f32.vlgmr.msra.gmra.mxu1 %vm611_vm2, %v1187_v15 }
 0x611   : > { %1864 = vmatpush3.xpose.msk.msra.mxu1 %vm611_vm2, %v1341_v13  ;;  %1865 = vmatprep.mubr.msk.f32.mxu1 %vm1988_vm1, %v1987_v2 }
 0x612   : > { %1873 = vmatprep.subr.mxu1 %v1987_v2 }
 0x614   : > { %1866 = vmatmul.mubr.msk.f32.vlgmr.msra.gmra.mxu1 %vm611_vm2, %v1339_v16 }
 0x615   : > { %1875 = vmatprep.mubr.msk.f32.mxu1 %vm1988_vm1, %v1987_v2 }
 0x6d0   : > { %v1260_v18 = vpop.f32.mrf.mxu1 }
 0x6d1   : > { %1861 = vmatmul.mubr.msk.f32.vlgmr.msra.gmra.mxu0 %vm611_vm2, %v1260_v18 }
 0x6d2   : > { %v1857_v19 = vpop.f32.mrf.mxu1  ;;  %1870 = vmatprep.mubr.msk.f32.mxu0 %vm1988_vm1, %v1987_v2  ;;  %v1094_v2 = vadd.f32 %v1093_v58, %v1020_v60 }
 0x6d4   : > { %v1412_v20 = vpop.f32.mrf.mxu1 }
 0x6d5   : > { %v1416_v21 = vmul.f32 0.35355338, %v1412_v20 }
 0x6d6   : > { %v1867_v23 = vpop.f32.mrf.mxu1 }
 0x6d7   : > { %v1417_v24 = vadd.f32 %v2176_v22, %v1416_v21  ;;  %v610_v22 = vld [vmem:[%s2286_s7 + $0x18] sm:$0xff] }
 0x6d8   : > { %1874 = vmatpush3.msra.mxu1 %v610_v22 }
 0x6d9   : > { %v1418_v25 = vsel %vm611_vm2, %v1417_v24, -inf }
 0x6da   : > { %1419 = vmax.xlane.f32.xlu0 %v1418_v25 }
 0x763   : > { %v1420_v26 = vpop.xlane.xlu0 %1419 }
 0x764   : > { %v1421_v27 = vsub.f32 %v1417_v24, %v1420_v26 }
 0x766   : > { %v1422_v28 = vmul.f32 1.442695, %v1421_v27 }
 0x768   : > { %1939 = vpow2.f32 %v1422_v28 }
 0x775   : > { %v1940_v29 = vpop.eup %1939 }
 0x776   : > { %v1424_v30 = vsel %vm611_vm2, %v1940_v29, 0.0 }
 0x777   : > { %1425 = vadd.xlane.f32.xlu1 %v1424_v30 }
 0x788   : > { %1429 = vrot.lane.b32.xlu1 %v2150_v14, %s1995_s30 }
 0x791   : > { %v1333_v31 = vpop.f32.mrf.mxu0 }
 0x792   : > { %v1337_v32 = vadd.f32 %v1333_v31, %v1094_v2 }
 0x793   : > { %v1862_v33 = vpop.f32.mrf.mxu0 }
 0x800   : > { %v1426_v34 = vpop.xlane.xlu1 %1425 }
 0x801   : > { %1941 = vrcp.f32 %v1426_v34 }
 0x804   : > { %v1430_v35 = vpop.permute.xlu1 %1429 }
 0x805   : > { %1869 = vmatpush3.msra.mxu0 %v1430_v35 }
 0x80e   : > { %v1942_v36 = vpop.eup %1941 }
 0x80f   : > { %v1428_v37 = vmul.f32 %v1942_v36, %v1940_v29 }
 0x811   : > { %1871 = vmatmul.mubr.msk.f32.vlgmr.msra.gmra.mxu0 %vm611_vm2, %v1428_v37 }
 0x8d1   : > { %v1501_v38 = vpop.f32.mrf.mxu0 }
 0x8d2   : > { %1876 = vmatmul.mubr.msk.f32.vlgmr.msra.gmra.mxu1 %vm611_vm2, %v1501_v38 }
 0x8d3   : > { %v1872_v14 = vpop.f32.mrf.mxu0 }
 0x992   : > { %v1574_v39 = vpop.f32.mrf.mxu1 }
 0x993   : > { %v1578_v41 = vadd.f32 %v1574_v39, %v1337_v32 }
 0x994   : > { %v1877_v42 = vpop.f32.mrf.mxu1 }
 0x995   : > { %v1586_v43 = vadd.f32 %v1757_v40, %v1578_v41 }
 0x997   : > { %v1587_v44 = vadd.f32 %v1586_v43, %v2131_v10 }
 0x999   : > { %v1588_v45 = vsel %vm449_vm0, %v1587_v44, 0.0 }
 0x99a   : > { %1589 = vadd.xlane.f32.xlu1 %v1588_v45 }
 0xa23   : > { %v1590_v46 = vpop.xlane.xlu1 %1589 }
 0xa24   : > { %v1592_v47 = vmul.f32 0.03125, %v1590_v46 }
 0xa26   : > { %v1593_v48 = vsub.f32 %v1587_v44, %v1592_v47 }
 0xa28   : > { %v1594_v49 = vmul.f32 %v1593_v48, %v1593_v48 }
 0xa2a   : > { %v1595_v50 = vsel %vm449_vm0, %v1594_v49, 0.0 }
 0xa2b   : > { %1596 = vadd.xlane.f32.xlu0 %v1595_v50 }
 0xab4   : > { %v1597_v51 = vpop.xlane.xlu0 %1596 }
 0xab5   : > { %v1598_v52 = vmul.f32 0.03125, %v1597_v51 }
 0xab7   : > { %v1599_v53 = vadd.f32 1e-05, %v1598_v52 }
 0xab9   : > { %1943 = vrsqrt.f32 %v1599_v53  ;;  %vm1602_vm3 = vcmp.eq.f32.partialorder %v1599_v53, inf  ;;  %v1605_v10 = vand.u32 2147483648, %v1599_v53  ;;  %vm1604_vm4 = vcmp.eq.f32.partialorder %v1599_v53, 0.0 }
 0xac6   : > { %v1944_v54 = vpop.eup %1943 }
 0xac7   : > { %v1601_v55 = vmul.f32 %v1944_v54, %v1599_v53 }
 0xac9   : > { %v1603_v56 = vsel %vm1602_vm3, %v1599_v53, %v1601_v55 }
 0xaca   : > { %v1606_v57 = vsel %vm1604_vm4, %v1605_v10, %v1603_v56 }
 0xacb   : > { %1945 = vrcp.f32 %v1606_v57 }
 0xad8   : > { %v1946_v58 = vpop.eup %1945 }
 0xad9   : > { %v1608_v60 = vmul.f32 %v1946_v58, %v1593_v48 }
 0xadb   : > { %v1616_v62 = vmul.f32 %v1758_v59, %v1608_v60 }
 0xadd   : > { %v1624_v63 = vadd.f32 %v1759_v61, %v1616_v62 }
 0xadf   : > { %1625 = vst.msk [vmem:[%s434_s13] sm:$0xff] %vm449_vm0, %v1624_v63 }
 0xae0 PF: > { %s21_s21 = sadd.s32 1, %s1985_s21   ;;  %s2291_s17 = smov %s1977_s19 }
 0xae1   : > { %p18_p7 = scmp.ge.s32.totalorder %s21_s21, 6   ;;  %s2292_s18 = smov %s1981_s20 }
 0xae2   : > { %s2293_s19 = smov %s2296_s22  ;;  %s2294_s20 = smov %s2300_s23 }
 0xae3   :  { %20 = sbr.rel (!%p18_p7) target bundleno = 3 (0x3), region = 100 }

// kernel: transformer_forward.21
= control target key start
LH: loop header
LB: loop body
LE: loop exit
PB: predicated region body
PF: predicated region fallthrough
CT: control target
= control target key end

     0   :  { %s269_s0 = inlined_call_operand.vmem [shape: f32[32,32], index: 0, kind: input, shape index: {}]   ;;  %s270_s1 = inlined_call_operand.vmem [shape: f32[32,32], index: 1, kind: input, shape index: {}]   ;;  %s271_s2 = inlined_call_operand.vmem [shape: f32[1,32], index: 2, kind: input, shape index: {}]   ;;  %s272_s3 = inlined_call_operand.hbm [shape: f32[32,32], index: 3, kind: output, shape index: {}]  }
   0x1   :  { %v22_v0 = vld [vmem:[%s270_s1 + $0x18] sm:$0xff]  ;;  %v21_v1 = vld [vmem:[%s270_s1 + $0x10] sm:$0xff]  ;;  %v20_v2 = vld [vmem:[%s270_s1 + $0x8] sm:$0xff] }
   0x2   :  { %161 = vmatprep.subr.mxu0 %v22_v0  ;;  %175 = vmatprep.subr.mxu1 %v22_v0 }
   0x3   :  { %162 = vmatpush3.msra.mxu0 %v22_v0  ;;  %179 = vmatpush3.msra.mxu1 %v22_v0 }
   0x4   :  { %8 = vsyncpa [#allocation3], 0  ;;  %163 = vmatprep.subr.mxu0 %v21_v1  ;;  %176 = vmatprep.subr.mxu1 %v21_v1  ;;  %v19_v3 = vld [vmem:[%s270_s1] sm:$0xff]  ;;  %vm30_vm0 = vcmask 261120   ;;  %v17_v5 = vld [vmem:[%s269_s0 + $0x10] sm:$0xff]  ;;  %s208_s29 = smov [#allocation2]  }
   0x5   :  { %164 = vmatpush3.msra.mxu0 %v21_v1  ;;  %180 = vmatpush3.msra.mxu1 %v21_v1  ;;  %v15_v4 = vld [vmem:[%s269_s0] sm:$0xff]  ;;  %v16_v6 = vld [vmem:[%s269_s0 + $0x8] sm:$0xff]  ;;  %v18_v7 = vld [vmem:[%s269_s0 + $0x18] sm:$0xff]  ;;  %s137_s30 = sshll.u32 %s208_s29, 4  ;;  %s138_s30 = int_to_ptr.vmem [resolvable:$true] %s137_s30 }
   0x6   :  { %165 = vmatprep.subr.mxu0 %v20_v2  ;;  %177 = vmatprep.subr.mxu1 %v20_v2  ;;  %v148_v8 = vld [vmem:[%s271_s2] ss:$0 sm:$0xff]  ;;  %s186_s0 = scalar_lea.vmem %s138_s30, 512  ;;  %p191_p1 = scmp.lt.s32.totalorder %s138_s30, %s138_s30 }
   0x7   :  { %166 = vmatpush3.msra.mxu0 %v20_v2  ;;  %181 = vmatpush3.msra.mxu1 %v20_v2  ;;  %p187_p0 = scmp.ne.s32.totalorder %s138_s30, %s186_s0  ;;  %p192_p2 = scmp.lt.s32.totalorder %s186_s0, %s186_s0 }
   0x8   :  { %167 = vmatprep.subr.mxu0 %v19_v3  ;;  %178 = vmatprep.subr.mxu1 %v19_v3 }
   0x9   :  { %168 = vmatpush3.msra.mxu0 %v19_v3  ;;  %182 = vmatpush3.msra.mxu1 %v19_v3  ;;  %p193_p3 = por %p192_p2, %p191_p1 }
   0xa   :  { %169 = vmatprep.mubr.msk.f32.mxu0 %vm30_vm0, %v15_v4  ;;  %172 = vmatprep.mubr.msk.f32.mxu1 %vm30_vm0, %v17_v5 }
   0xb   :  { %170 = vmatmul.mubr.msk.f32.vlgmr.msra.gmra.mxu0 %vm30_vm0, %v16_v6  ;;  %173 = vmatmul.mubr.msk.f32.vlgmr.msra.gmra.mxu1 %vm30_vm0, %v18_v7  ;;  %p194_p4 = pnand %p193_p3, %p187_p0 }
  0xcb   :  { %v171_v9 = vpop.f32.mrf.mxu0  ;;  %v174_v10 = vpop.f32.mrf.mxu1 }
  0xcc   :  { %v115_v11 = vadd.f32 %v171_v9, %v148_v8  ;;  %v125_v12 = vadd.f32 %v174_v10, %v148_v8 }
  0xcd   :  { %v109_v13 = vpop.f32.mrf.mxu0  ;;  %v119_v14 = vpop.f32.mrf.mxu1 }
  0xce   :  { %129 = vst.msk [vmem:[#allocation2 + $0x8] sm:$0xff] %vm30_vm0, %v115_v11  ;;  %131 = vst.msk [vmem:[#allocation2 + $0x18] sm:$0xff] %vm30_vm0, %v125_v12  ;;  %v110_v15 = vadd.f32 %v148_v8, %v109_v13  ;;  %v120_v16 = vadd.f32 %v148_v8, %v119_v14 }
  0xd0   :  { %128 = vst.msk [vmem:[#allocation2] sm:$0xff] %vm30_vm0, %v110_v15  ;;  %130 = vst.msk [vmem:[#allocation2 + $0x10] sm:$0xff] %vm30_vm0, %v120_v16 }
  0xd1   :  { %197 = shalt.err (!%p194_p4)
}
  0xd2   :  { %s209_s2 = smov 128   ;;  %s210_s4 = smov 8  }
  0xd3   :  { %143 = dma.vmem_to_hbm [thread:$0]  %s138_s30, 512, %s272_s3, [#allocation3], %s209_s2, %s209_s2, %s210_s4  }
  0xd4   :  { %206 = dma.done.wait [#allocation3], 512  }
  0xd5   :  { %207 = vsyncadd [#allocation3], 4294966784 }
  0xd6   :  { %147 = vsyncpa [#allocation3], 1 }

// kernel: transformer_forward.18
= control target key start
LH: loop header
LB: loop body
LE: loop exit
PB: predicated region body
PF: predicated region fallthrough
CT: control target
= control target key end

     0   :  { %s2098_s17 = smov 0   ;;  %s2100_s18 = smov 0   ;;  %s2322_s0 = inlined_call_operand.vmem [shape: f32[2,2,8,32], index: 0, kind: input, shape index: {}, may-alias: {0,1}]   ;;  %s2323_s1 = inlined_call_operand.vmem [shape: f32[2,2,8,32], index: 1, kind: input, shape index: {}, may-alias: {0,1}]   ;;  %s2324_s2 = inlined_call_operand.vmem [shape: f32[2,8,8], index: 2, kind: input, shape index: {}]   ;;  %s2325_s3 = inlined_call_operand.vmem [shape: f32[32,32], index: 3, kind: input, shape index: {}]   ;;  %s2326_s4 = inlined_call_operand.vmem [shape: f32[1,32], index: 4, kind: input, shape index: {}]   ;;  %s2327_s5 = inlined_call_operand.vmem [shape: f32[32,64], index: 5, kind: input, shape index: {}]   ;;  %s2328_s6 = inlined_call_operand.vmem [shape: f32[1,64], index: 6, kind: input, shape index: {}]   ;;  %s2329_s7 = inlined_call_operand.vmem [shape: f32[32,32], index: 7, kind: input, shape index: {}]   ;;  %s2330_s8 = inlined_call_operand.vmem [shape: f32[1,32], index: 8, kind: input, shape index: {}]   ;;  %s2331_s9 = inlined_call_operand.vmem [shape: f32[1,32], index: 9, kind: input, shape index: {}]   ;;  %s2332_s10 = inlined_call_operand.vmem [shape: f32[1,32], index: 10, kind: input, shape index: {}]   ;;  %s2333_s11 = inlined_call_operand.vmem [shape: f32[2,2,8,32], index: 11, kind: output, shape index: {}]  }
   0x1   :  { %s2102_s19 = smov 0   ;;  %s2104_s20 = smov 0  }
   0x2   :  { %s2106_s21 = smov 0  }
   0x3 LB: > { %s30_s22 = sadd.s32 1, %s2019_s19  ;;  %s33_s23 = sadd.s32 1, %s2023_s20  ;;  %s2027_s21 = sphi %s2106_s21, %s21_s21   ;;  %s2023_s20 = sphi %s2104_s20, %s2337_s20   ;;  %s2019_s19 = sphi %s2102_s19, %s2336_s19   ;;  %s2015_s18 = sphi %s2100_s18, %s2335_s18   ;;  %s2011_s17 = sphi %s2098_s17, %s2334_s17  }
   0x4   : > { %p31_p0 = scmp.ge.s32.totalorder %s30_s22, 2  ;;  %p1771_p1 = scmp.ge.s32.totalorder %s2027_s21, 1 }
   0x5   : > { %p380_p2 = scmp.lt.s32.totalorder %s2027_s21, 5 }
   0x6   : > { %s2339_s22 = smov (%p31_p0, %s30_s22), 0  ;;  %s2341_s23 = smov (!%p31_p0, %s33_s23), %s2023_s20 }
   0x7   : > { %p381_p3 = pnand %p1771_p1, %p380_p2  ;;  %p35_p4 = scmp.ge.s32.totalorder %s2341_s23, 2 }
   0x8   : > { %p438_p5 = scmp.lt.s32.totalorder (!%p381_p3), %s2015_s18, 1  ;;  %p440_p6 = scmp.lt.s32.totalorder (!%p381_p3), %s2011_s17, 1 }
   0x9   : > { %s2343_s23 = smov (%p35_p4, %s2341_s23), 0  ;;  %384 = sbr.rel (%p381_p3) target bundleno = 2784 (0xae0), region = 64 }
   0xa   : > { %s2031_s29 = smov (!%p381_p3), 120   ;;  %s2033_s14 = smov (!%p381_p3), 88  }
   0xb   : > { %s2034_s15 = smov (!%p381_p3), 112   ;;  %s2037_s13 = smov (!%p381_p3), 72  }
   0xe   : > { %v557_v0 = vld [vmem:[%s2327_s5 + $0x18] sm:$0xff]  ;;  %v2029_v2 = vmov 0.0   ;;  %v556_v3 = vld [vmem:[%s2327_s5 + $0x10] sm:$0xff]  ;;  %s2345_s18 = smov (!%p438_p5, %s2015_s18), 1  ;;  %v555_v5 = vld [vmem:[%s2327_s5 + $0x8] sm:$0xff]  ;;  %s2347_s17 = smov (!%p440_p6, %s2011_s17), 1 }
   0xf   : > { %v472_v1 = vld [vmem:[%s2325_s3 + $0x18] sm:$0xff]  ;;  %1849 = vmatprep.subr.mxu1 %v2029_v2  ;;  %1838 = vmatprep.subr.mxu0 %v2029_v2  ;;  %v471_v4 = vld [vmem:[%s2325_s3 + $0x10] sm:$0xff]  ;;  %v470_v6 = vld [vmem:[%s2325_s3 + $0x8] sm:$0xff]  ;;  %s1772_s24 = sshll.u32 %s2345_s18, 1  ;;  %vm480_vm0 = vcmask 261120   ;;  %vm2030_vm1 = vmmov 0  }
  0x10   : > { %1850 = vmatpush3.msra.mxu1 %v557_v0  ;;  %1839 = vmatpush3.msra.mxu0 %v472_v1  ;;  %v554_v7 = vld [vmem:[%s2327_s5] sm:$0xff]  ;;  %s443_s27 = sadd.s32 %s1772_s24, %s2347_s17  ;;  %vm642_vm2 = vcmask 64512   ;;  %s1776_s30 = sshll.u32 %s2345_s18, 3  ;;  %v639_v46 = vld [vmem:[%s2329_s7 + $0x8] sm:$0xff] }
  0x11   : > { %1851 = vmatprep.subr.mxu1 %v2029_v2  ;;  %1840 = vmatprep.subr.mxu0 %v2029_v2  ;;  %s2162_s28 = sshll.u32 %s443_s27, 3  ;;  %v469_v8 = vld [vmem:[%s2325_s3] sm:$0xff]  ;;  %s2032_s18 = smov 96  }
  0x12   : > { %1852 = vmatpush3.msra.mxu1 %v556_v3  ;;  %1841 = vmatpush3.msra.mxu0 %v471_v4  ;;  %s453_s17 = scalar_lea.vmem %s2323_s1, %s2162_s28  ;;  %s445_s16 = scalar_lea.vmem %s2322_s0, %s2162_s28  ;;  %v1781_v11 = vld [vmem:[%s2328_s6] ss:$0 sm:$0xff] }
  0x13   : > { %1853 = vmatprep.subr.mxu1 %v2029_v2  ;;  %1842 = vmatprep.subr.mxu0 %v2029_v2  ;;  %v467_v9 = vld [vmem:[%s453_s17] sm:$0xff]  ;;  %s457_s17 = scalar_lea.vmem %s2324_s2, %s1776_s30  ;;  %s2035_s27 = smov 80  }
  0x14   : > { %1854 = vmatpush3.msra.mxu1 %v555_v5  ;;  %1843 = vmatpush3.msra.mxu0 %v470_v6  ;;  %v2180_v10 = vld [vmem:[%s445_s16] sm:$0xff]  ;;  %s465_s30 = scalar_lea.vmem %s2333_s11, %s2162_s28 }
  0x15   : > { %1855 = vmatprep.subr.mxu1 %v2029_v2  ;;  %1857 = vmatprep.mubr.msk.f32.mxu1 %vm2030_vm1, %v2029_v2  ;;  %v1779_v13 = vld [vmem:[%s2326_s4] ss:$0 sm:$0xff] }
  0x16   : > { %1856 = vmatpush3.msra.mxu1 %v554_v7  ;;  %1844 = vmatprep.subr.mxu0 %v2029_v2  ;;  %v2220_v22 = vld [vmem:[%s457_s17] sm:$0xff] }
  0x17   : > { %1858 = vmatmul.mubr.msk.f32.vlgmr.msra.gmra.mxu1 %vm480_vm0, %v467_v9  ;;  %1845 = vmatpush3.msra.mxu0 %v469_v8  ;;  %v638_v51 = vld [vmem:[%s2329_s7] sm:$0xff] }
  0x18   : > { %1846 = vmatprep.mubr.msk.f32.mxu0 %vm2030_vm1, %v2029_v2  ;;  %1860 = vmatprep.subr.mxu0 %v2029_v2 }
  0x19   : > { %1847 = vmatmul.mubr.msk.f32.vlgmr.msra.gmra.mxu0 %vm480_vm0, %v2180_v10  ;;  %1865 = vmatprep.subr.mxu1 %v2029_v2 }
  0x1a   : > { %1862 = vmatprep.mubr.msk.f32.mxu0 %vm2030_vm1, %v2029_v2  ;;  %1867 = vmatprep.mubr.msk.f32.mxu1 %vm2030_vm1, %v2029_v2 }
  0xd7   : > { %v634_v12 = vpop.f32.mrf.mxu1 }
  0xd8   : > { %v2198_v14 = vadd.f32 %v1781_v11, %v634_v12 }
  0xd9   : > { %v550_v15 = vpop.f32.mrf.mxu0  ;;  %v1859_v16 = vpop.f32.mrf.mxu1 }
  0xda   : > { %v2200_v17 = vadd.f32 %v1779_v13, %v550_v15  ;;  %811 = vrot.lane.b32.xlu0 %v2198_v14, %s2031_s29  ;;  %1861 = vmatpush3.xpose.msk.msra.mxu0 %vm642_vm2, %v2198_v14 }
  0xdb   : > { %v1848_v18 = vpop.f32.mrf.mxu0  ;;  %1870 = vmatprep.subr.mxu0 %v2029_v2 }
  0xdd   : > { %1863 = vmatmul.mubr.msk.f32.vlgmr.msra.gmra.mxu0 %vm642_vm2, %v2200_v17 }
  0xde   : > { %809 = vrot.lane.b32.xlu0 %v2200_v17, %s2031_s29  ;;  %1872 = vmatprep.mubr.msk.f32.mxu0 %vm2030_vm1, %v2029_v2  ;;  %s2036_s29 = smov 104  }
 0x14c   : > { %v812_v19 = vpop.permute.xlu0 %811 }
 0x14d   : > { %1871 = vmatpush3.xpose.msk.msra.mxu0 %vm642_vm2, %v812_v19 }
 0x14e   : > { %1880 = vmatprep.subr.mxu0 %v2029_v2 }
 0x150   : > { %v810_v20 = vpop.permute.xlu0 %809 }
 0x151   : > { %1873 = vmatmul.mubr.msk.f32.vlgmr.msra.gmra.mxu0 %vm642_vm2, %v810_v20 }
 0x152   : > { %1882 = vmatprep.mubr.msk.f32.mxu0 %vm2030_vm1, %v2029_v2  ;;  %1881 = vmatpush3.msra.mxu0 %v639_v46 }
 0x153   : > { %1890 = vmatprep.subr.mxu0 %v2029_v2 }
 0x19d   : > { %v715_v21 = vpop.f32.mrf.mxu0 }
 0x19e   : > { %v720_v23 = vmul.f32 0.35355338, %v715_v21 }
 0x19f   : > { %v1864_v24 = vpop.f32.mrf.mxu0 }
 0x1a0   : > { %v721_v25 = vadd.f32 %v720_v23, %v2220_v22 }
 0x1a2   : > { %v722_v26 = vsel %vm642_vm2, %v721_v25, -inf }
 0x1a3   : > { %723 = vmax.xlane.f32.xlu1 %v722_v26 }
 0x211   : > { %v883_v27 = vpop.f32.mrf.mxu0 }
 0x212   : > { %v887_v28 = vmul.f32 0.35355338, %v883_v27 }
 0x213   : > { %v1874_v29 = vpop.f32.mrf.mxu0 }
 0x214   : > { %v888_v30 = vadd.f32 %v887_v28, %v2220_v22 }
 0x216   : > { %v889_v31 = vsel %vm642_vm2, %v888_v30, -inf }
 0x217   : > { %890 = vmax.xlane.f32.xlu1 %v889_v31 }
 0x228   : > { %733 = vrot.lane.b32.xlu1 %v2198_v14, %s2032_s18 }
 0x22c   : > { %v724_v32 = vpop.xlane.xlu1 %723 }
 0x22d   : > { %v725_v33 = vsub.f32 %v721_v25, %v724_v32 }
 0x22f   : > { %v726_v34 = vmul.f32 1.442695, %v725_v33 }
 0x231   : > { %1969 = vpow2.f32 %v726_v34 }
 0x23e   : > { %v1970_v35 = vpop.eup %1969 }
 0x23f   : > { %v728_v36 = vsel %vm642_vm2, %v1970_v35, 0.0 }
 0x240   : > { %729 = vadd.xlane.f32.xlu0 %v728_v36 }
 0x2a0   : > { %v891_v37 = vpop.xlane.xlu1 %890 }
 0x2a1   : > { %v892_v38 = vsub.f32 %v888_v30, %v891_v37 }
 0x2a3   : > { %v893_v39 = vmul.f32 1.442695, %v892_v38 }
 0x2a4   : > { %v734_v40 = vpop.permute.xlu1 %733 }
 0x2a5   : > { %1971 = vpow2.f32 %v893_v39  ;;  %1866 = vmatpush3.msra.mxu1 %v734_v40  ;;  %v1799_v40 = vld [vmem:[%s2330_s8] ss:$0 sm:$0xff] }
 0x2a6   : > { %1875 = vmatprep.subr.mxu1 %v2029_v2 }
 0x2b2   : > { %v1972_v41 = vpop.eup %1971 }
 0x2b3   : > { %v895_v42 = vsel %vm642_vm2, %v1972_v41, 0.0 }
 0x2b4   : > { %896 = vadd.xlane.f32.xlu1 %v895_v42 }
 0x2c5   : > { %900 = vrot.lane.b32.xlu1 %v2198_v14, %s2033_s14 }
 0x2c9   : > { %v730_v43 = vpop.xlane.xlu0 %729  ;;  %1124 = vrot.lane.b32.xlu1 %v2198_v14, %s2034_s15 }
 0x2ca   : > { %1973 = vrcp.f32 %v730_v43 }
 0x2cd   : > { %1122 = vrot.lane.b32.xlu1 %v2200_v17, %s2034_s15 }
 0x2d7   : > { %v1974_v44 = vpop.eup %1973 }
 0x2d8   : > { %v732_v45 = vmul.f32 %v1974_v44, %v1970_v35 }
 0x2da   : > { %1868 = vmatmul.mubr.msk.f32.vlgmr.msra.gmra.mxu1 %vm642_vm2, %v732_v45 }
 0x2db   : > { %1877 = vmatprep.mubr.msk.f32.mxu1 %vm2030_vm1, %v2029_v2 }
 0x33d   : > { %v897_v47 = vpop.xlane.xlu1 %896 }
 0x33e   : > { %1975 = vrcp.f32 %v897_v47 }
 0x341   : > { %v901_v48 = vpop.permute.xlu1 %900 }
 0x342   : > { %1876 = vmatpush3.msra.mxu1 %v901_v48 }
 0x343   : > { %1885 = vmatprep.subr.mxu1 %v2029_v2 }
 0x345   : > { %v1125_v54 = vpop.permute.xlu1 %1124 }
 0x349   : > { %v1123_v57 = vpop.permute.xlu1 %1122 }
 0x34b   : > { %v1976_v49 = vpop.eup %1975 }
 0x34c   : > { %v899_v50 = vmul.f32 %v1976_v49, %v1972_v41 }
 0x34e   : > { %1878 = vmatmul.mubr.msk.f32.vlgmr.msra.gmra.mxu1 %vm642_vm2, %v899_v50 }
 0x34f   : > { %1886 = vmatpush3.msra.mxu1 %v638_v51  ;;  %1887 = vmatprep.mubr.msk.f32.mxu1 %vm2030_vm1, %v2029_v2 }
 0x350   : > { %1895 = vmatprep.subr.mxu1 %v2029_v2 }
 0x39a   : > { %v805_v52 = vpop.f32.mrf.mxu1 }
 0x39b   : > { %1888 = vmatmul.mubr.msk.f32.vlgmr.msra.gmra.mxu1 %vm642_vm2, %v805_v52 }
 0x39c   : > { %v1869_v53 = vpop.f32.mrf.mxu1  ;;  %1897 = vmatprep.mubr.msk.f32.mxu1 %vm2030_vm1, %v2029_v2 }
 0x40e   : > { %v972_v55 = vpop.f32.mrf.mxu1 }
 0x40f   : > { %1883 = vmatmul.mubr.msk.f32.vlgmr.msra.gmra.mxu0 %vm642_vm2, %v972_v55 }
 0x410   : > { %1891 = vmatpush3.xpose.msk.msra.mxu0 %vm642_vm2, %v1125_v54  ;;  %v1879_v56 = vpop.f32.mrf.mxu1  ;;  %1892 = vmatprep.mubr.msk.f32.mxu0 %vm2030_vm1, %v2029_v2 }
 0x411   : > { %1900 = vmatprep.subr.mxu0 %v2029_v2 }
 0x413   : > { %1893 = vmatmul.mubr.msk.f32.vlgmr.msra.gmra.mxu0 %vm642_vm2, %v1123_v57 }
 0x414   : > { %1902 = vmatprep.mubr.msk.f32.mxu0 %vm2030_vm1, %v2029_v2 }
 0x45b   : > { %v1118_v58 = vpop.f32.mrf.mxu1 }
 0x45d   : > { %v1889_v59 = vpop.f32.mrf.mxu1 }
 0x45e   : > { %v1800_v59 = vld [vmem:[%s2331_s9] ss:$0 sm:$0xff] }
 0x4cf   : > { %v1045_v60 = vpop.f32.mrf.mxu0 }
 0x4d1   : > { %v1884_v61 = vpop.f32.mrf.mxu0 }
 0x4d2   : > { %v1801_v61 = vld [vmem:[%s2332_s10] ss:$0 sm:$0xff] }
 0x4d3   : > { %v1196_v62 = vpop.f32.mrf.mxu0 }
 0x4d4   : > { %v1200_v63 = vmul.f32 0.35355338, %v1196_v62 }
 0x4d5   : > { %v1894_v0 = vpop.f32.mrf.mxu0 }
 0x4d6   : > { %v1201_v1 = vadd.f32 %v1200_v63, %v2220_v22 }
 0x4d8   : > { %v1202_v3 = vsel %vm642_vm2, %v1201_v1, -inf }
 0x4d9   : > { %1203 = vmax.xlane.f32.xlu0 %v1202_v3 }
 0x4ef   : > { %1213 = vrot.lane.b32.xlu0 %v2198_v14, %s2035_s27 }
 0x4f3   : > { %1365 = vrot.lane.b32.xlu0 %v2198_v14, %s2036_s29 }
 0x4f7   : > { %1363 = vrot.lane.b32.xlu0 %v2200_v17, %s2036_s29  ;;  %v640_v17 = vld [vmem:[%s2329_s7 + $0x10] sm:$0xff] }
 0x4f8   : > { %1901 = vmatpush3.msra.mxu0 %v640_v17 }
 0x4f9   : > { %1910 = vmatprep.subr.mxu0 %v2029_v2 }
 0x562   : > { %v1204_v4 = vpop.xlane.xlu0 %1203 }
 0x563   : > { %v1205_v5 = vsub.f32 %v1201_v1, %v1204_v4 }
 0x565   : > { %v1206_v6 = vmul.f32 1.442695, %v1205_v5 }
 0x566   : > { %v1214_v7 = vpop.permute.xlu0 %1213 }
 0x567   : > { %1977 = vpow2.f32 %v1206_v6  ;;  %1896 = vmatpush3.msra.mxu1 %v1214_v7 }
 0x568   : > { %1905 = vmatprep.subr.mxu1 %v2029_v2 }
 0x56a   : > { %v1366_v13 = vpop.permute.xlu0 %1365 }
 0x56e   : > { %v1364_v16 = vpop.permute.xlu0 %1363 }
 0x574   : > { %v1978_v8 = vpop.eup %1977 }
 0x575   : > { %v1208_v9 = vsel %vm642_vm2, %v1978_v8, 0.0 }
 0x576   : > { %1209 = vadd.xlane.f32.xlu1 %v1208_v9 }
 0x5ff   : > { %v1210_v11 = vpop.xlane.xlu1 %1209 }
 0x600   : > { %1979 = vrcp.f32 %v1210_v11 }
 0x60d   : > { %v1980_v12 = vpop.eup %1979 }
 0x60e   : > { %v1212_v15 = vmul.f32 %v1980_v12, %v1978_v8 }
 0x610   : > { %1898 = vmatmul.mubr.msk.f32.vlgmr.msra.gmra.mxu1 %vm642_vm2, %v1212_v15 }
 0x611   : > { %1906 = vmatpush3.xpose.msk.msra.mxu1 %vm642_vm2, %v1366_v13  ;;  %1907 = vmatprep.mubr.msk.f32.mxu1 %vm2030_vm1, %v2029_v2 }
 0x612   : > { %1915 = vmatprep.subr.mxu1 %v2029_v2 }
 0x614   : > { %1908 = vmatmul.mubr.msk.f32.vlgmr.msra.gmra.mxu1 %vm642_vm2, %v1364_v16 }
 0x615   : > { %1917 = vmatprep.mubr.msk.f32.mxu1 %vm2030_vm1, %v2029_v2 }
 0x6d0   : > { %v1285_v18 = vpop.f32.mrf.mxu1 }
 0x6d1   : > { %1903 = vmatmul.mubr.msk.f32.vlgmr.msra.gmra.mxu0 %vm642_vm2, %v1285_v18 }
 0x6d2   : > { %v1899_v19 = vpop.f32.mrf.mxu1  ;;  %1912 = vmatprep.mubr.msk.f32.mxu0 %vm2030_vm1, %v2029_v2  ;;  %v1119_v2 = vadd.f32 %v1118_v58, %v1045_v60 }
 0x6d4   : > { %v1437_v20 = vpop.f32.mrf.mxu1 }
 0x6d5   : > { %v1441_v21 = vmul.f32 0.35355338, %v1437_v20 }
 0x6d6   : > { %v1909_v23 = vpop.f32.mrf.mxu1 }
 0x6d7   : > { %v1442_v24 = vadd.f32 %v1441_v21, %v2220_v22  ;;  %v641_v22 = vld [vmem:[%s2329_s7 + $0x18] sm:$0xff] }
 0x6d8   : > { %1916 = vmatpush3.msra.mxu1 %v641_v22 }
 0x6d9   : > { %v1443_v25 = vsel %vm642_vm2, %v1442_v24, -inf }
 0x6da   : > { %1444 = vmax.xlane.f32.xlu0 %v1443_v25 }
 0x763   : > { %v1445_v26 = vpop.xlane.xlu0 %1444 }
 0x764   : > { %v1446_v27 = vsub.f32 %v1442_v24, %v1445_v26 }
 0x766   : > { %v1447_v28 = vmul.f32 1.442695, %v1446_v27 }
 0x768   : > { %1981 = vpow2.f32 %v1447_v28 }
 0x775   : > { %v1982_v29 = vpop.eup %1981 }
 0x776   : > { %v1449_v30 = vsel %vm642_vm2, %v1982_v29, 0.0 }
 0x777   : > { %1450 = vadd.xlane.f32.xlu1 %v1449_v30 }
 0x788   : > { %1454 = vrot.lane.b32.xlu1 %v2198_v14, %s2037_s13 }
 0x791   : > { %v1358_v31 = vpop.f32.mrf.mxu0 }
 0x792   : > { %v1362_v32 = vadd.f32 %v1358_v31, %v1119_v2 }
 0x793   : > { %v1904_v33 = vpop.f32.mrf.mxu0 }
 0x800   : > { %v1451_v34 = vpop.xlane.xlu1 %1450 }
 0x801   : > { %1983 = vrcp.f32 %v1451_v34 }
 0x804   : > { %v1455_v35 = vpop.permute.xlu1 %1454 }
 0x805   : > { %1911 = vmatpush3.msra.mxu0 %v1455_v35 }
 0x80e   : > { %v1984_v36 = vpop.eup %1983 }
 0x80f   : > { %v1453_v37 = vmul.f32 %v1984_v36, %v1982_v29 }
 0x811   : > { %1913 = vmatmul.mubr.msk.f32.vlgmr.msra.gmra.mxu0 %vm642_vm2, %v1453_v37 }
 0x8d1   : > { %v1526_v38 = vpop.f32.mrf.mxu0 }
 0x8d2   : > { %1918 = vmatmul.mubr.msk.f32.vlgmr.msra.gmra.mxu1 %vm642_vm2, %v1526_v38 }
 0x8d3   : > { %v1914_v14 = vpop.f32.mrf.mxu0 }
 0x992   : > { %v1599_v39 = vpop.f32.mrf.mxu1 }
 0x993   : > { %v1603_v41 = vadd.f32 %v1599_v39, %v1362_v32 }
 0x994   : > { %v1919_v42 = vpop.f32.mrf.mxu1 }
 0x995   : > { %v1611_v43 = vadd.f32 %v1799_v40, %v1603_v41 }
 0x997   : > { %v1612_v44 = vadd.f32 %v1611_v43, %v2180_v10 }
 0x999   : > { %v1613_v45 = vsel %vm480_vm0, %v1612_v44, 0.0 }
 0x99a   : > { %1614 = vadd.xlane.f32.xlu1 %v1613_v45 }
 0xa23   : > { %v1615_v46 = vpop.xlane.xlu1 %1614 }
 0xa24   : > { %v1617_v47 = vmul.f32 0.03125, %v1615_v46 }
 0xa26   : > { %v1618_v48 = vsub.f32 %v1612_v44, %v1617_v47 }
 0xa28   : > { %v1619_v49 = vmul.f32 %v1618_v48, %v1618_v48 }
 0xa2a   : > { %v1620_v50 = vsel %vm480_vm0, %v1619_v49, 0.0 }
 0xa2b   : > { %1621 = vadd.xlane.f32.xlu0 %v1620_v50 }
 0xab4   : > { %v1622_v51 = vpop.xlane.xlu0 %1621 }
 0xab5   : > { %v1623_v52 = vmul.f32 0.03125, %v1622_v51 }
 0xab7   : > { %v1624_v53 = vadd.f32 1e-05, %v1623_v52 }
 0xab9   : > { %1985 = vrsqrt.f32 %v1624_v53  ;;  %vm1627_vm3 = vcmp.eq.f32.partialorder %v1624_v53, inf  ;;  %v1630_v56 = vand.u32 2147483648, %v1624_v53  ;;  %vm1629_vm4 = vcmp.eq.f32.partialorder %v1624_v53, 0.0 }
 0xac6   : > { %v1986_v54 = vpop.eup %1985 }
 0xac7   : > { %v1626_v55 = vmul.f32 %v1986_v54, %v1624_v53 }
 0xac9   : > { %v1628_v10 = vsel %vm1627_vm3, %v1624_v53, %v1626_v55 }
 0xaca   : > { %v1631_v57 = vsel %vm1629_vm4, %v1630_v56, %v1628_v10 }
 0xacb   : > { %1987 = vrcp.f32 %v1631_v57 }
 0xad8   : > { %v1988_v58 = vpop.eup %1987 }
 0xad9   : > { %v1633_v60 = vmul.f32 %v1988_v58, %v1618_v48 }
 0xadb   : > { %v1641_v62 = vmul.f32 %v1800_v59, %v1633_v60 }
 0xadd   : > { %v1649_v63 = vadd.f32 %v1801_v61, %v1641_v62 }
 0xadf   : > { %1650 = vst.msk [vmem:[%s465_s30] sm:$0xff] %vm480_vm0, %v1649_v63 }
 0xae0 PF: > { %s21_s21 = sadd.s32 1, %s2027_s21   ;;  %s2334_s17 = smov %s2019_s19 }
 0xae1   : > { %p18_p7 = scmp.ge.s32.totalorder %s21_s21, 6   ;;  %s2335_s18 = smov %s2023_s20 }
 0xae2   : > { %s2336_s19 = smov %s2339_s22  ;;  %s2337_s20 = smov %s2343_s23 }
 0xae3   :  { %20 = sbr.rel (!%p18_p7) target bundleno = 3 (0x3), region = 100 }

</bundles_post_ra>
